<compile_context>
chip_gen: v6e
topology: v6e:2x2x1
jax: 0.10.0
libtpu: 0.0.40
codegen_flags: <defaults>
</compile_context>

<pallas_src>
import jax
import jax.numpy as jnp
from jax.experimental import pallas as pl
from jax.experimental.pallas import tpu as pltpu

# Fixed hidden sizes from the PyTorch module
HIDDEN_SIZES = (800, 512, 456, 256, 100)

LANE = 128          # lane width: pad every feature dim to a multiple of this
TILE_B_MAX = 512    # max batch tile (rows per grid step)


def _round_up(n, m):
    return ((n + m - 1) // m) * m


def _choose_tile_b(batch, tile_b_max=TILE_B_MAX):
    """Pick a batch tile: as big as useful, but keep >=2 grid steps when batch allows
    (so the 'parallel' batch axis can shard across both TensorCores on v7x)."""
    b128 = _round_up(max(batch, 1), 128)
    tile = min(tile_b_max, b128)
    if b128 >= 2 * 128 and _round_up(batch, tile) // tile < 2:
        tile = min(tile_b_max, max(128, _round_up(b128 // 2, 128)))
    return tile


def mlp_kernel(x_ref,
               w1_ref, b1_ref,
               w2_ref, b2_ref,
               w3_ref, b3_ref,
               w4_ref, b4_ref,
               w5_ref, b5_ref,
               w6_ref, b6_ref,
               o_ref):
    """Fused forward pass for one (TILE_B, in_pad) batch tile.

    x and weights are bf16 (MXU inputs), every matmul accumulates in f32, bias add +
    ReLU happen in f32 vregs, and the activation is cast to bf16 once as the next
    layer's LHS.  Padded weight rows/cols and bias cols are zero, so padded lanes stay
    exactly zero down the ReLU chain and never leak into real output columns.
    """
    h = x_ref[...]  # bf16 (TILE_B, in_pad)

    def layer(h_bf16, w_ref, b_ref, relu):
        acc = jnp.dot(h_bf16, w_ref[...],
                      preferred_element_type=jnp.float32) + b_ref[...]
        if relu:
            return jnp.maximum(acc, 0.0).astype(jnp.bfloat16)
        return acc  # final layer: leave f32 for the output store

    h = layer(h, w1_ref, b1_ref, True)
    h = layer(h, w2_ref, b2_ref, True)
    h = layer(h, w3_ref, b3_ref, True)
    h = layer(h, w4_ref, b4_ref, True)
    h = layer(h, w5_ref, b5_ref, True)
    o_ref[...] = layer(h, w6_ref, b6_ref, False)


def init_params(key, input_size, num_classes, method="random_normal"):
    """Parameter init matching the PyTorch module's layer shapes.

    Weight init follows `method` ('random_normal' = N(0, 0.01), 'xavier', 'kaiming');
    biases follow PyTorch's default Linear bias init U(-1/sqrt(fan_in), 1/sqrt(fan_in)).
    Weights are returned transposed to (in, out); biases as (1, out) rows.  f32, unpadded.
    """
    dims = (input_size,) + HIDDEN_SIZES + (num_classes,)
    params = []
    for i in range(len(dims) - 1):
        fan_in, fan_out = dims[i], dims[i + 1]
        key, kw, kb = jax.random.split(key, 3)
        if method == "random_normal":
            w = 0.01 * jax.random.normal(kw, (fan_out, fan_in), dtype=jnp.float32)
        elif method == "xavier":
            bound = jnp.sqrt(6.0 / (fan_in + fan_out))
            w = jax.random.uniform(kw, (fan_out, fan_in), jnp.float32, -bound, bound)
        elif method == "kaiming":
            bound = jnp.sqrt(6.0 / fan_in)  # kaiming_uniform with relu gain
            w = jax.random.uniform(kw, (fan_out, fan_in), jnp.float32, -bound, bound)
        else:
            raise ValueError(method)
        b_bound = 1.0 / jnp.sqrt(jnp.float32(fan_in))
        b = jax.random.uniform(kb, (fan_out,), jnp.float32, -b_bound, b_bound)
        params.append((w.T, b.reshape(1, fan_out)))
    return params


def prepare_params(params, weight_dtype=jnp.bfloat16):
    """Zero-pad every feature dim up to a multiple of 128 and cast weights to bf16.

    Padded weight rows/cols and bias cols are exactly zero, so the padded lanes stay
    zero through the ReLU chain and never affect the real output columns.
    """
    padded = []
    for w_t, b_row in params:
        d_in, d_out = w_t.shape
        p_in, p_out = _round_up(d_in, LANE), _round_up(d_out, LANE)
        w_p = jnp.zeros((p_in, p_out), jnp.float32).at[:d_in, :d_out].set(w_t)
        b_p = jnp.zeros((1, p_out), jnp.float32).at[:, :d_out].set(b_row)
        padded.append((w_p.astype(weight_dtype), b_p))
    return padded


def _vmem_limit_bytes(padded_params, tile_b, in_pad, out_pad):
    """2x weights/biases (possible double-buffering of constant-index blocks) +
    double-buffered IO tiles + a few widest live activation tiles + margin."""
    wb = 0
    widest = in_pad
    for w, b in padded_params:
        wb += w.size * w.dtype.itemsize + b.size * b.dtype.itemsize
        widest = max(widest, w.shape[1])
    io = 2 * (tile_b * in_pad * 2 + tile_b * out_pad * 4)   # bf16 x in, f32 out, x2 bufs
    act = tile_b * widest * 4                               # one widest f32 live tile
    return int(2 * wb + io + 6 * act + (4 << 20))


def _cost_estimate(padded_params, b_pad, in_pad, out_pad):
    flops = 0
    bytes_accessed = b_pad * in_pad * 2 + b_pad * out_pad * 4   # x (bf16) + out (f32)
    for w, b in padded_params:
        flops += 2 * b_pad * w.shape[0] * w.shape[1]
        bytes_accessed += w.size * w.dtype.itemsize + b.size * b.dtype.itemsize
    return pl.CostEstimate(flops=flops, transcendentals=0,
                           bytes_accessed=bytes_accessed)


def neural_net_forward(x, padded_params, num_classes, tile_b=None):
    """x: (B, input_size) f32.  padded_params: output of prepare_params()."""
    B, d_in = x.shape
    in_pad = padded_params[0][0].shape[0]
    out_pad = padded_params[-1][0].shape[1]

    if tile_b is None:
        tile_b = _choose_tile_b(B)

    # Pad batch to a multiple of the batch tile, features to the padded input width,
    # and hand the kernel a bf16 x tile (numerics unchanged: the kernel fed bf16 to
    # the MXU anyway; this halves the per-row DMA bytes).
    b_pad = _round_up(max(B, tile_b), tile_b)
    x_p = (jnp.zeros((b_pad, in_pad), jnp.float32).at[:B, :d_in].set(x)
           ).astype(jnp.bfloat16)

    flat_inputs = [x_p]
    in_specs = [pl.BlockSpec((tile_b, in_pad), lambda i: (i, 0))]
    for w, b in padded_params:
        flat_inputs += [w, b]
        # Constant index maps -> weights/biases DMA'd once, resident across grid steps.
        in_specs.append(pl.BlockSpec(w.shape, lambda i: (0, 0)))
        in_specs.append(pl.BlockSpec(b.shape, lambda i: (0, 0)))

    grid = (pl.cdiv(b_pad, tile_b),)

    out = pl.pallas_call(
        mlp_kernel,
        out_shape=jax.ShapeDtypeStruct((b_pad, out_pad), jnp.float32),
        grid=grid,
        in_specs=in_specs,
        out_specs=pl.BlockSpec((tile_b, out_pad), lambda i: (i, 0)),
        compiler_params=pltpu.CompilerParams(
            dimension_semantics=("parallel",),
            vmem_limit_bytes=_vmem_limit_bytes(padded_params, tile_b, in_pad, out_pad),
        ),
        cost_estimate=_cost_estimate(padded_params, b_pad, in_pad, out_pad),
    )(*flat_inputs)

    return out[:B, :num_classes]


def reference_forward_bf16(x, padded_params, num_classes):
    """Pure-JAX reference mimicking the kernel's numerics
    (bf16 MXU inputs, f32 accum, f32 bias+ReLU, bf16 inter-layer activations)."""
    B, d_in = x.shape
    in_pad = padded_params[0][0].shape[0]
    h = (jnp.zeros((B, in_pad), jnp.float32).at[:, :d_in].set(x)).astype(jnp.bfloat16)
    for i, (w, b) in enumerate(padded_params):
        acc = jnp.dot(h, w, preferred_element_type=jnp.float32) + b
        if i < len(padded_params) - 1:
            h = jnp.maximum(acc, 0.0).astype(jnp.bfloat16)
        else:
            acc_out = acc
    return acc_out[:, :num_classes]


def reference_forward_f32(x, params):
    """Full-precision semantic reference (original unpadded f32 params)."""
    h = x
    for i, (w_t, b_row) in enumerate(params):
        h = h @ w_t + b_row
        if i < len(params) - 1:
            h = jnp.maximum(h, 0.0)
    return h


if __name__ == "__main__":
    key = jax.random.PRNGKey(0)
    input_size = 64
    num_classes = 10
    batch = 8

    key, kx, kp = jax.random.split(key, 3)
    x = jax.random.normal(kx, (batch, input_size), dtype=jnp.float32)
    params = init_params(kp, input_size, num_classes, method="random_normal")
    padded_params = prepare_params(params)

    out = neural_net_forward(x, padded_params, num_classes)
    out = jax.block_until_ready(out)

    assert out.shape == (batch, num_classes)

    ref_bf16 = reference_forward_bf16(x, padded_params, num_classes)
    assert jnp.allclose(out, ref_bf16, atol=2e-3, rtol=2e-3), "mismatch vs bf16 reference"

    ref_f32 = reference_forward_f32(x, params)
    assert jnp.allclose(out, ref_f32, atol=1e-2, rtol=5e-2), "mismatch vs f32 reference"

    print("KERNEL_OK")
</pallas_src>

<mosaic_0001>
module attributes {stable_mosaic.version = 11 : i64} {
  func.func @mlp_kernel(%arg0: i32, %arg1: memref<128x128xbf16, #tpu.memory_space<vmem>>, %arg2: memref<128x896xbf16, #tpu.memory_space<vmem>>, %arg3: memref<1x896xf32, #tpu.memory_space<vmem>>, %arg4: memref<896x512xbf16, #tpu.memory_space<vmem>>, %arg5: memref<1x512xf32, #tpu.memory_space<vmem>>, %arg6: memref<512x512xbf16, #tpu.memory_space<vmem>>, %arg7: memref<1x512xf32, #tpu.memory_space<vmem>>, %arg8: memref<512x256xbf16, #tpu.memory_space<vmem>>, %arg9: memref<1x256xf32, #tpu.memory_space<vmem>>, %arg10: memref<256x128xbf16, #tpu.memory_space<vmem>>, %arg11: memref<1x128xf32, #tpu.memory_space<vmem>>, %arg12: memref<128x128xbf16, #tpu.memory_space<vmem>>, %arg13: memref<1x128xf32, #tpu.memory_space<vmem>>, %arg14: memref<128x128xf32, #tpu.memory_space<vmem>>) attributes {dimension_semantics = [#tpu.dimension_semantics<parallel>], iteration_bounds = array<i64: 1>, scalar_prefetch = 0 : i64, scratch_operands = 0 : i64, tpu.core_type = #tpu.core_type<tc>, window_params = [{transform_indices = @transform_0, window_bounds = array<i64: 128, 128>}, {pipeline_mode = #tpu.pipeline_mode<synchronous>, transform_indices = @transform_1, window_bounds = array<i64: 128, 896>}, {pipeline_mode = #tpu.pipeline_mode<synchronous>, transform_indices = @transform_2, window_bounds = array<i64: 1, 896>}, {pipeline_mode = #tpu.pipeline_mode<synchronous>, transform_indices = @transform_3, window_bounds = array<i64: 896, 512>}, {pipeline_mode = #tpu.pipeline_mode<synchronous>, transform_indices = @transform_4, window_bounds = array<i64: 1, 512>}, {pipeline_mode = #tpu.pipeline_mode<synchronous>, transform_indices = @transform_5, window_bounds = array<i64: 512, 512>}, {pipeline_mode = #tpu.pipeline_mode<synchronous>, transform_indices = @transform_6, window_bounds = array<i64: 1, 512>}, {pipeline_mode = #tpu.pipeline_mode<synchronous>, transform_indices = @transform_7, window_bounds = array<i64: 512, 256>}, {pipeline_mode = #tpu.pipeline_mode<synchronous>, transform_indices = @transform_8, window_bounds = array<i64: 1, 256>}, {pipeline_mode = #tpu.pipeline_mode<synchronous>, transform_indices = @transform_9, window_bounds = array<i64: 256, 128>}, {pipeline_mode = #tpu.pipeline_mode<synchronous>, transform_indices = @transform_10, window_bounds = array<i64: 1, 128>}, {pipeline_mode = #tpu.pipeline_mode<synchronous>, transform_indices = @transform_11, window_bounds = array<i64: 128, 128>}, {pipeline_mode = #tpu.pipeline_mode<synchronous>, transform_indices = @transform_12, window_bounds = array<i64: 1, 128>}, {transform_indices = @transform_13, window_bounds = array<i64: 128, 128>}]} {
    %c0 = arith.constant 0 : index
    %c0_0 = arith.constant 0 : index
    %0 = vector.load %arg1[%c0, %c0_0] : memref<128x128xbf16, #tpu.memory_space<vmem>>, vector<128x128xbf16>
    %c0_1 = arith.constant 0 : index
    %c0_2 = arith.constant 0 : index
    %1 = vector.load %arg2[%c0_1, %c0_2] : memref<128x896xbf16, #tpu.memory_space<vmem>>, vector<128x896xbf16>
    %cst = arith.constant dense<0.000000e+00> : vector<128x896xf32>
    %2 = tpu.matmul %0, %1, %cst {dimension_numbers = #tpu.dot_dimension_numbers<[1], [0], [0], [1], [0, 0, 1, 1], [], []>} : vector<128x128xbf16>, vector<128x896xbf16>, vector<128x896xf32> -> vector<128x896xf32>
    %c0_3 = arith.constant 0 : index
    %c0_4 = arith.constant 0 : index
    %3 = vector.load %arg3[%c0_3, %c0_4] : memref<1x896xf32, #tpu.memory_space<vmem>>, vector<1x896xf32>
    %4 = vector.broadcast %3 : vector<1x896xf32> to vector<128x896xf32>
    %5 = arith.addf %2, %4 : vector<128x896xf32>
    %cst_5 = arith.constant 0.000000e+00 : f32
    %6 = vector.broadcast %cst_5 : f32 to vector<128x896xf32>
    %7 = arith.maximumf %5, %6 : vector<128x896xf32>
    %8 = arith.truncf %7 : vector<128x896xf32> to vector<128x896xbf16>
    %c0_6 = arith.constant 0 : index
    %c0_7 = arith.constant 0 : index
    %9 = vector.load %arg4[%c0_6, %c0_7] : memref<896x512xbf16, #tpu.memory_space<vmem>>, vector<896x512xbf16>
    %cst_8 = arith.constant dense<0.000000e+00> : vector<128x512xf32>
    %10 = tpu.matmul %8, %9, %cst_8 {dimension_numbers = #tpu.dot_dimension_numbers<[1], [0], [0], [1], [0, 0, 1, 1], [], []>} : vector<128x896xbf16>, vector<896x512xbf16>, vector<128x512xf32> -> vector<128x512xf32>
    %c0_9 = arith.constant 0 : index
    %c0_10 = arith.constant 0 : index
    %11 = vector.load %arg5[%c0_9, %c0_10] : memref<1x512xf32, #tpu.memory_space<vmem>>, vector<1x512xf32>
    %12 = vector.broadcast %11 : vector<1x512xf32> to vector<128x512xf32>
    %13 = arith.addf %10, %12 : vector<128x512xf32>
    %cst_11 = arith.constant 0.000000e+00 : f32
    %14 = vector.broadcast %cst_11 : f32 to vector<128x512xf32>
    %15 = arith.maximumf %13, %14 : vector<128x512xf32>
    %16 = arith.truncf %15 : vector<128x512xf32> to vector<128x512xbf16>
    %c0_12 = arith.constant 0 : index
    %c0_13 = arith.constant 0 : index
    %17 = vector.load %arg6[%c0_12, %c0_13] : memref<512x512xbf16, #tpu.memory_space<vmem>>, vector<512x512xbf16>
    %cst_14 = arith.constant dense<0.000000e+00> : vector<128x512xf32>
    %18 = tpu.matmul %16, %17, %cst_14 {dimension_numbers = #tpu.dot_dimension_numbers<[1], [0], [0], [1], [0, 0, 1, 1], [], []>} : vector<128x512xbf16>, vector<512x512xbf16>, vector<128x512xf32> -> vector<128x512xf32>
    %c0_15 = arith.constant 0 : index
    %c0_16 = arith.constant 0 : index
    %19 = vector.load %arg7[%c0_15, %c0_16] : memref<1x512xf32, #tpu.memory_space<vmem>>, vector<1x512xf32>
    %20 = vector.broadcast %19 : vector<1x512xf32> to vector<128x512xf32>
    %21 = arith.addf %18, %20 : vector<128x512xf32>
    %cst_17 = arith.constant 0.000000e+00 : f32
    %22 = vector.broadcast %cst_17 : f32 to vector<128x512xf32>
    %23 = arith.maximumf %21, %22 : vector<128x512xf32>
    %24 = arith.truncf %23 : vector<128x512xf32> to vector<128x512xbf16>
    %c0_18 = arith.constant 0 : index
    %c0_19 = arith.constant 0 : index
    %25 = vector.load %arg8[%c0_18, %c0_19] : memref<512x256xbf16, #tpu.memory_space<vmem>>, vector<512x256xbf16>
    %cst_20 = arith.constant dense<0.000000e+00> : vector<128x256xf32>
    %26 = tpu.matmul %24, %25, %cst_20 {dimension_numbers = #tpu.dot_dimension_numbers<[1], [0], [0], [1], [0, 0, 1, 1], [], []>} : vector<128x512xbf16>, vector<512x256xbf16>, vector<128x256xf32> -> vector<128x256xf32>
    %c0_21 = arith.constant 0 : index
    %c0_22 = arith.constant 0 : index
    %27 = vector.load %arg9[%c0_21, %c0_22] : memref<1x256xf32, #tpu.memory_space<vmem>>, vector<1x256xf32>
    %28 = vector.broadcast %27 : vector<1x256xf32> to vector<128x256xf32>
    %29 = arith.addf %26, %28 : vector<128x256xf32>
    %cst_23 = arith.constant 0.000000e+00 : f32
    %30 = vector.broadcast %cst_23 : f32 to vector<128x256xf32>
    %31 = arith.maximumf %29, %30 : vector<128x256xf32>
    %32 = arith.truncf %31 : vector<128x256xf32> to vector<128x256xbf16>
    %c0_24 = arith.constant 0 : index
    %c0_25 = arith.constant 0 : index
    %33 = vector.load %arg10[%c0_24, %c0_25] : memref<256x128xbf16, #tpu.memory_space<vmem>>, vector<256x128xbf16>
    %cst_26 = arith.constant dense<0.000000e+00> : vector<128x128xf32>
    %34 = tpu.matmul %32, %33, %cst_26 {dimension_numbers = #tpu.dot_dimension_numbers<[1], [0], [0], [1], [0, 0, 1, 1], [], []>} : vector<128x256xbf16>, vector<256x128xbf16>, vector<128x128xf32> -> vector<128x128xf32>
    %c0_27 = arith.constant 0 : index
    %c0_28 = arith.constant 0 : index
    %35 = vector.load %arg11[%c0_27, %c0_28] : memref<1x128xf32, #tpu.memory_space<vmem>>, vector<1x128xf32>
    %36 = vector.broadcast %35 : vector<1x128xf32> to vector<128x128xf32>
    %37 = arith.addf %34, %36 : vector<128x128xf32>
    %cst_29 = arith.constant 0.000000e+00 : f32
    %38 = vector.broadcast %cst_29 : f32 to vector<128x128xf32>
    %39 = arith.maximumf %37, %38 : vector<128x128xf32>
    %40 = arith.truncf %39 : vector<128x128xf32> to vector<128x128xbf16>
    %c0_30 = arith.constant 0 : index
    %c0_31 = arith.constant 0 : index
    %41 = vector.load %arg12[%c0_30, %c0_31] : memref<128x128xbf16, #tpu.memory_space<vmem>>, vector<128x128xbf16>
    %cst_32 = arith.constant dense<0.000000e+00> : vector<128x128xf32>
    %42 = tpu.matmul %40, %41, %cst_32 {dimension_numbers = #tpu.dot_dimension_numbers<[1], [0], [0], [1], [0, 0, 1, 1], [], []>} : vector<128x128xbf16>, vector<128x128xbf16>, vector<128x128xf32> -> vector<128x128xf32>
    %c0_33 = arith.constant 0 : index
    %c0_34 = arith.constant 0 : index
    %43 = vector.load %arg13[%c0_33, %c0_34] : memref<1x128xf32, #tpu.memory_space<vmem>>, vector<1x128xf32>
    %44 = vector.broadcast %43 : vector<1x128xf32> to vector<128x128xf32>
    %45 = arith.addf %42, %44 : vector<128x128xf32>
    %c0_35 = arith.constant 0 : index
    %c0_36 = arith.constant 0 : index
    %46 = vector.load %arg14[%c0_35, %c0_36] : memref<128x128xf32, #tpu.memory_space<vmem>>, vector<128x128xf32>
    tpu.vector_store %arg14[%c0_35, %c0_36], %45 {strides = array<i32>} : memref<128x128xf32, #tpu.memory_space<vmem>>, vector<128x128xf32>,
    return
  }
  func.func @transform_0(%arg0: i32) -> (i32, i32) {
    %c0_i32 = arith.constant 0 : i32
    %c0_i32_0 = arith.constant 0 : i32
    return %arg0, %c0_i32 : i32, i32
  }
  func.func @transform_1(%arg0: i32) -> (i32, i32) {
    %c0_i32 = arith.constant 0 : i32
    %c0_i32_0 = arith.constant 0 : i32
    %c0_i32_1 = arith.constant 0 : i32
    return %c0_i32, %c0_i32_0 : i32, i32
  }
  func.func @transform_2(%arg0: i32) -> (i32, i32) {
    %c0_i32 = arith.constant 0 : i32
    %c0_i32_0 = arith.constant 0 : i32
    %c0_i32_1 = arith.constant 0 : i32
    return %c0_i32, %c0_i32_0 : i32, i32
  }
  func.func @transform_3(%arg0: i32) -> (i32, i32) {
    %c0_i32 = arith.constant 0 : i32
    %c0_i32_0 = arith.constant 0 : i32
    %c0_i32_1 = arith.constant 0 : i32
    return %c0_i32, %c0_i32_0 : i32, i32
  }
  func.func @transform_4(%arg0: i32) -> (i32, i32) {
    %c0_i32 = arith.constant 0 : i32
    %c0_i32_0 = arith.constant 0 : i32
    %c0_i32_1 = arith.constant 0 : i32
    return %c0_i32, %c0_i32_0 : i32, i32
  }
  func.func @transform_5(%arg0: i32) -> (i32, i32) {
    %c0_i32 = arith.constant 0 : i32
    %c0_i32_0 = arith.constant 0 : i32
    %c0_i32_1 = arith.constant 0 : i32
    return %c0_i32, %c0_i32_0 : i32, i32
  }
  func.func @transform_6(%arg0: i32) -> (i32, i32) {
    %c0_i32 = arith.constant 0 : i32
    %c0_i32_0 = arith.constant 0 : i32
    %c0_i32_1 = arith.constant 0 : i32
    return %c0_i32, %c0_i32_0 : i32, i32
  }
  func.func @transform_7(%arg0: i32) -> (i32, i32) {
    %c0_i32 = arith.constant 0 : i32
    %c0_i32_0 = arith.constant 0 : i32
    %c0_i32_1 = arith.constant 0 : i32
    return %c0_i32, %c0_i32_0 : i32, i32
  }
  func.func @transform_8(%arg0: i32) -> (i32, i32) {
    %c0_i32 = arith.constant 0 : i32
    %c0_i32_0 = arith.constant 0 : i32
    %c0_i32_1 = arith.constant 0 : i32
    return %c0_i32, %c0_i32_0 : i32, i32
  }
  func.func @transform_9(%arg0: i32) -> (i32, i32) {
    %c0_i32 = arith.constant 0 : i32
    %c0_i32_0 = arith.constant 0 : i32
    %c0_i32_1 = arith.constant 0 : i32
    return %c0_i32, %c0_i32_0 : i32, i32
  }
  func.func @transform_10(%arg0: i32) -> (i32, i32) {
    %c0_i32 = arith.constant 0 : i32
    %c0_i32_0 = arith.constant 0 : i32
    %c0_i32_1 = arith.constant 0 : i32
    return %c0_i32, %c0_i32_0 : i32, i32
  }
  func.func @transform_11(%arg0: i32) -> (i32, i32) {
    %c0_i32 = arith.constant 0 : i32
    %c0_i32_0 = arith.constant 0 : i32
    %c0_i32_1 = arith.constant 0 : i32
    return %c0_i32, %c0_i32_0 : i32, i32
  }
  func.func @transform_12(%arg0: i32) -> (i32, i32) {
    %c0_i32 = arith.constant 0 : i32
    %c0_i32_0 = arith.constant 0 : i32
    %c0_i32_1 = arith.constant 0 : i32
    return %c0_i32, %c0_i32_0 : i32, i32
  }
  func.func @transform_13(%arg0: i32) -> (i32, i32) {
    %c0_i32 = arith.constant 0 : i32
    %c0_i32_0 = arith.constant 0 : i32
    return %arg0, %c0_i32 : i32, i32
  }
}

</mosaic_0001>

<bundles_post_ra>
// kernel: tpu_custom_call.1
= control target key start
LH: loop header
LB: loop body
LE: loop exit
PB: predicated region body
PF: predicated region fallthrough
CT: control target
= control target key end

     0   :  { %18 = vsyncpa [#allocation3], 0  ;;  %s9126_s0 = inlined_call_operand.hbm [shape: bf16[128,128], index: 0, kind: input, shape index: {}]   ;;  %s9127_s1 = inlined_call_operand.hbm [shape: bf16[128,896], index: 1, kind: input, shape index: {}]   ;;  %s9128_s2 = inlined_call_operand.hbm [shape: f32[1,896], index: 2, kind: input, shape index: {}]   ;;  %s9129_s3 = inlined_call_operand.hbm [shape: bf16[896,512], index: 3, kind: input, shape index: {}]   ;;  %s9130_s4 = inlined_call_operand.vmem [shape: f32[1,512], index: 4, kind: input, shape index: {}]   ;;  %s9131_s5 = inlined_call_operand.hbm [shape: bf16[512,512], index: 5, kind: input, shape index: {}]   ;;  %s9132_s6 = inlined_call_operand.vmem [shape: f32[1,512], index: 6, kind: input, shape index: {}]   ;;  %s9133_s7 = inlined_call_operand.hbm [shape: bf16[512,256], index: 7, kind: input, shape index: {}]   ;;  %s9134_s8 = inlined_call_operand.vmem [shape: f32[1,256], index: 8, kind: input, shape index: {}]   ;;  %s9135_s9 = inlined_call_operand.hbm [shape: bf16[256,128], index: 9, kind: input, shape index: {}]   ;;  %s9136_s10 = inlined_call_operand.vmem [shape: f32[1,128], index: 10, kind: input, shape index: {}]   ;;  %s9137_s11 = inlined_call_operand.hbm [shape: bf16[128,128], index: 11, kind: input, shape index: {}]   ;;  %s9138_s12 = inlined_call_operand.vmem [shape: f32[1,128], index: 12, kind: input, shape index: {}]   ;;  %s9139_s13 = inlined_call_operand.hbm [shape: f32[128,128], index: 13, kind: output, shape index: {}]  }
   0x1   :  { %19 = vsyncpa [#allocation6], 0 }
   0x2   :  { %20 = vsyncpa [#allocation9], 0 }
   0x3   :  { %21 = vsyncpa [#allocation12], 0 }
   0x4   :  { %22 = vsyncpa [#allocation15], 0 }
   0x5   :  { %23 = vsyncpa [#allocation4], 0  ;;  %s7658_s25 = smov [#allocation5]  }
   0x6   :  { %s41_s26 = sshll.u32 %s7658_s25, 4  ;;  %s42_s26 = int_to_ptr.vmem [resolvable:$true] %s41_s26 }
   0x7   :  { %s7474_s27 = scalar_lea.vmem %s42_s26, 7168  ;;  %p7479_p1 = scmp.lt.s32.totalorder %s42_s26, %s42_s26 }
   0x8   :  { %p7475_p0 = scmp.ne.s32.totalorder %s42_s26, %s7474_s27  ;;  %p7480_p2 = scmp.lt.s32.totalorder %s7474_s27, %s7474_s27 }
   0xa   :  { %p7481_p3 = por %p7480_p2, %p7479_p1 }
   0xc   :  { %p7482_p4 = pnand %p7481_p3, %p7475_p0 }
   0xe   :  { %7485 = shalt.err (!%p7482_p4)
}
   0xf   :  { %s7659_s28 = smov 448   ;;  %s7660_s29 = smov 28  }
  0x10   :  { %47 = dma.hbm_to_vmem [thread:$0]  %s9127_s1, 7168, %s42_s26, [#allocation6], %s7659_s28, %s7659_s28, %s7660_s29  }
  0x11   :  { %s7661_s15 = smov [#allocation8]  }
  0x12   :  { %s63_s16 = sshll.u32 %s7661_s15, 4  ;;  %s64_s16 = int_to_ptr.vmem [resolvable:$true] %s63_s16 }
  0x13   :  { %s7494_s17 = scalar_lea.vmem %s64_s16, 28672  ;;  %p7499_p6 = scmp.lt.s32.totalorder %s64_s16, %s64_s16 }
  0x14   :  { %p7495_p5 = scmp.ne.s32.totalorder %s64_s16, %s7494_s17  ;;  %p7500_p7 = scmp.lt.s32.totalorder %s7494_s17, %s7494_s17 }
  0x16   :  { %p7501_p8 = por %p7500_p7, %p7499_p6 }
  0x18   :  { %p7502_p9 = pnand %p7501_p8, %p7495_p5 }
  0x1a   :  { %7505 = shalt.err (!%p7502_p9)
}
  0x1b   :  { %s7662_s18 = smov 256   ;;  %s7663_s19 = smov 16  }
  0x1c   :  { %69 = dma.hbm_to_vmem [thread:$0]  %s9129_s3, 28672, %s64_s16, [#allocation9], %s7662_s18, %s7662_s18, %s7663_s19  }
  0x1d   :  { %s7664_s1 = smov [#allocation11]  }
  0x1e   :  { %s91_s22 = sshll.u32 %s7664_s1, 4  ;;  %s92_s22 = int_to_ptr.vmem [resolvable:$true] %s91_s22 }
  0x1f   :  { %s7514_s23 = scalar_lea.vmem %s92_s22, 8192  ;;  %p7519_p11 = scmp.lt.s32.totalorder %s92_s22, %s92_s22 }
  0x20   :  { %p7515_p10 = scmp.ne.s32.totalorder %s92_s22, %s7514_s23  ;;  %p7520_p12 = scmp.lt.s32.totalorder %s7514_s23, %s7514_s23 }
  0x22   :  { %p7521_p13 = por %p7520_p12, %p7519_p11 }
  0x24   :  { %p7522_p0 = pnand %p7521_p13, %p7515_p10 }
  0x26   :  { %7525 = shalt.err (!%p7522_p0)
}
  0x27   :  { %s7665_s24 = smov 128   ;;  %s7666_s25 = smov 8  }
  0x28   :  { %97 = dma.hbm_to_vmem [thread:$0]  %s9133_s7, 8192, %s92_s22, [#allocation12], %s7665_s24, %s7665_s24, %s7666_s25  }
  0x29   :  { %s7667_s3 = smov [#allocation2]  }
  0x2a   :  { %s29_s28 = sshll.u32 %s7667_s3, 4  ;;  %s30_s28 = int_to_ptr.vmem [resolvable:$true] %s29_s28 }
  0x2b   :  { %s7534_s29 = scalar_lea.vmem %s30_s28, 1024  ;;  %p7539_p2 = scmp.lt.s32.totalorder %s30_s28, %s30_s28 }
  0x2c   :  { %p7535_p1 = scmp.ne.s32.totalorder %s30_s28, %s7534_s29  ;;  %p7540_p3 = scmp.lt.s32.totalorder %s7534_s29, %s7534_s29 }
  0x2e   :  { %p7541_p4 = por %p7540_p3, %p7539_p2 }
  0x30   :  { %p7542_p5 = pnand %p7541_p4, %p7535_p1 }
  0x32   :  { %7545 = shalt.err (!%p7542_p5)
}
  0x33   :  { %s7668_s30 = smov 64   ;;  %s7669_s14 = smov 4  }
  0x34   :  { %35 = dma.hbm_to_vmem [thread:$0]  %s9126_s0, 1024, %s30_s28, [#allocation3], %s7668_s30, %s7668_s30, %s7669_s14  }
  0x35   :  { %s7670_s7 = smov [#allocation7]   ;;  %s7671_s20 = smov [#allocation10]  }
  0x36   :  { %s54_s17 = sshll.u32 %s7670_s7, 4  ;;  %s77_s21 = sshll.u32 %s7671_s20, 4  ;;  %s55_s17 = int_to_ptr.vmem [resolvable:$true] %s54_s17  ;;  %s78_s21 = int_to_ptr.vmem [resolvable:$true] %s77_s21 }
  0x37   :  { %s7554_s1 = scalar_lea.vmem %s55_s17, 112  ;;  %s7558_s22 = scalar_lea.vmem %s55_s17, 128 }
  0x38   :  { %p7555_p6 = scmp.ne.s32.totalorder %s55_s17, %s7554_s1  ;;  %p7559_p7 = scmp.lt.s32.totalorder %s55_s17, %s55_s17 }
  0x39   :  { %p7560_p8 = scmp.lt.s32.totalorder %s7558_s22, %s7554_s1 }
  0x3b   :  { %p7561_p9 = por %p7560_p8, %p7559_p7 }
  0x3d   :  { %p7562_p10 = pnand %p7561_p9, %p7555_p6 }
  0x3f   :  { %7565 = shalt.err (!%p7562_p10)
}
  0x40   :  { %57 = dma.hbm_to_vmem [thread:$0]  %s9128_s2, 112, %s55_s17, [#allocation6]  }
  0x41   :  { %s7574_s27 = scalar_lea.vmem %s78_s21, 16384  ;;  %p7579_p12 = scmp.lt.s32.totalorder %s78_s21, %s78_s21 }
  0x42   :  { %p7575_p11 = scmp.ne.s32.totalorder %s78_s21, %s7574_s27  ;;  %p7580_p13 = scmp.lt.s32.totalorder %s7574_s27, %s7574_s27 }
  0x44   :  { %p7581_p0 = por %p7580_p13, %p7579_p12 }
  0x46   :  { %p7582_p1 = pnand %p7581_p0, %p7575_p11 }
  0x48   :  { %7585 = shalt.err (!%p7582_p1)
}
  0x49   :  { %83 = dma.hbm_to_vmem [thread:$0]  %s9131_s5, 16384, %s78_s21, [#allocation9], %s7662_s18, %s7662_s18, %s7663_s19  }
  0x4a   :  { %s7672_s28 = smov [#allocation13]   ;;  %s7673_s15 = smov [#allocation14]  }
  0x4b   :  { %s105_s29 = sshll.u32 %s7672_s28, 4  ;;  %s119_s16 = sshll.u32 %s7673_s15, 4  ;;  %s106_s29 = int_to_ptr.vmem [resolvable:$true] %s105_s29  ;;  %s120_s16 = int_to_ptr.vmem [resolvable:$true] %s119_s16 }
  0x4c   :  { %s7594_s2 = scalar_lea.vmem %s106_s29, 2048  ;;  %p7599_p3 = scmp.lt.s32.totalorder %s106_s29, %s106_s29 }
  0x4d   :  { %p7595_p2 = scmp.ne.s32.totalorder %s106_s29, %s7594_s2  ;;  %p7600_p4 = scmp.lt.s32.totalorder %s7594_s2, %s7594_s2 }
  0x4f   :  { %p7601_p5 = por %p7600_p4, %p7599_p3 }
  0x51   :  { %p7602_p6 = pnand %p7601_p5, %p7595_p2 }
  0x53   :  { %7605 = shalt.err (!%p7602_p6)
}
  0x54   :  { %111 = dma.hbm_to_vmem [thread:$0]  %s9135_s9, 2048, %s106_s29, [#allocation12], %s7668_s30, %s7668_s30, %s7669_s14  }
  0x55   :  { %s7614_s5 = scalar_lea.vmem %s120_s16, 1024  ;;  %p7619_p8 = scmp.lt.s32.totalorder %s120_s16, %s120_s16 }
  0x56   :  { %p7615_p7 = scmp.ne.s32.totalorder %s120_s16, %s7614_s5  ;;  %p7620_p9 = scmp.lt.s32.totalorder %s7614_s5, %s7614_s5 }
  0x58   :  { %p7621_p10 = por %p7620_p9, %p7619_p8 }
  0x5a   :  { %p7622_p11 = pnand %p7621_p10, %p7615_p7 }
  0x5c   :  { %7625 = shalt.err (!%p7622_p11)
}
  0x5d   :  { %125 = dma.hbm_to_vmem [thread:$0]  %s9137_s11, 1024, %s120_s16, [#allocation15], %s7668_s30, %s7668_s30, %s7669_s14  }
  0x5e   :  { %7646 = dma.done.wait [#allocation3], 1024  }
  0x5f   :  { %7647 = vsyncadd [#allocation3], 4294966272 }
  0x60   :  { %7648 = dma.done.wait [#allocation6], 7280  }
  0x61   :  { %7649 = vsyncadd [#allocation6], 4294960016 }
  0x62   :  { %7650 = dma.done.wait [#allocation9], 45056  }
  0x63   :  { %7651 = vsyncadd [#allocation9], 4294922240 }
  0x64   :  { %7652 = dma.done.wait [#allocation12], 10240  }
  0x65   :  { %7653 = vsyncadd [#allocation12], 4294957056 }
  0x66   :  { %7654 = dma.done.wait [#allocation15], 1024  }
  0x67   :  { %7655 = vsyncadd [#allocation15], 4294966272  ;;  %v9140_v0 = vmov 0   ;;  %v6729_v1 = vld [vmem:[#allocation5 + $0x18c] ss:$28 sps:$4 sm:$0xff]   ;;  %v7790_v35 = vld [vmem:[#allocation2] sm:$0xff]  }
  0x68   :  { %638 = vmatprep.mubr.bf16.mxu0 %v9140_v0  ;;  %751 = vmatprep.mubr.bf16.mxu1 %v9140_v0  ;;  %v6731_v2 = vld [vmem:[#allocation5 + $0x194] ss:$28 sps:$4 sm:$0xff]   ;;  %v6733_v3 = vld [vmem:[#allocation5 + $0x188] ss:$28 sps:$4 sm:$0xff]   ;;  %v6737_v6 = vld [vmem:[#allocation5 + $0x15c] ss:$28 sps:$4 sm:$0xff]  }
  0x69   :  { %606 = vmatprep.subr.bf16.mxu0 %v6729_v1  ;;  %v6734_v4 = vld [vmem:[#allocation5 + $0x190] ss:$28 sps:$4 sm:$0xff]   ;;  %719 = vmatprep.subr.bf16.mxu1 %v6731_v2  ;;  %v6740_v8 = vld [vmem:[#allocation5 + $0x158] ss:$28 sps:$4 sm:$0xff]   ;;  %v6743_v10 = vld [vmem:[#allocation5 + $0x124] ss:$28 sps:$4 sm:$0xff]  }
  0x6a   :  { %v6735_v5 = vld [vmem:[#allocation5 + $0x154] ss:$28 sps:$4 sm:$0xff]   ;;  %607 = vmatpush1.bf16.msra.mxu0 %v6733_v3  ;;  %720 = vmatpush1.bf16.msra.mxu1 %v6734_v4  ;;  %v6741_v9 = vld [vmem:[#allocation5 + $0x11c] ss:$28 sps:$4 sm:$0xff]   ;;  %v6747_v13 = vld [vmem:[#allocation5 + $0xe4] ss:$28 sps:$4 sm:$0xff]  }
  0x6b   :  { %v6739_v7 = vld [vmem:[#allocation5 + $0x150] ss:$28 sps:$4 sm:$0xff]   ;;  %608 = vmatprep.subr.bf16.mxu0 %v6735_v5  ;;  %721 = vmatprep.subr.bf16.mxu1 %v6737_v6  ;;  %v6745_v11 = vld [vmem:[#allocation5 + $0x118] ss:$28 sps:$4 sm:$0xff]   ;;  %v6746_v12 = vld [vmem:[#allocation5 + $0x120] ss:$28 sps:$4 sm:$0xff]  }
  0x6c   :  { %v6749_v14 = vld [vmem:[#allocation5 + $0xec] ss:$28 sps:$4 sm:$0xff]   ;;  %v6751_v15 = vld [vmem:[#allocation5 + $0xe0] ss:$28 sps:$4 sm:$0xff]   ;;  %v6755_v18 = vld [vmem:[#allocation5 + $0xb4] ss:$28 sps:$4 sm:$0xff]  }
  0x6d   :  { %v6752_v16 = vld [vmem:[#allocation5 + $0xe8] ss:$28 sps:$4 sm:$0xff]   ;;  %v6758_v20 = vld [vmem:[#allocation5 + $0xb0] ss:$28 sps:$4 sm:$0xff]   ;;  %v6761_v22 = vld [vmem:[#allocation5 + $0x7c] ss:$28 sps:$4 sm:$0xff]  }
  0x6e   :  { %609 = vmatpush1.bf16.msra.mxu0 %v6739_v7  ;;  %722 = vmatpush1.bf16.msra.mxu1 %v6740_v8  ;;  %v6753_v17 = vld [vmem:[#allocation5 + $0xac] ss:$28 sps:$4 sm:$0xff]   ;;  %v6759_v21 = vld [vmem:[#allocation5 + $0x74] ss:$28 sps:$4 sm:$0xff]   ;;  %v6765_v25 = vld [vmem:[#allocation5 + $0x3c] ss:$28 sps:$4 sm:$0xff]  }
  0x6f   :  { %610 = vmatprep.subr.bf16.mxu0 %v6741_v9  ;;  %723 = vmatprep.subr.bf16.mxu1 %v6743_v10  ;;  %v6757_v19 = vld [vmem:[#allocation5 + $0xa8] ss:$28 sps:$4 sm:$0xff]   ;;  %v6763_v23 = vld [vmem:[#allocation5 + $0x70] ss:$28 sps:$4 sm:$0xff]   ;;  %v6764_v24 = vld [vmem:[#allocation5 + $0x78] ss:$28 sps:$4 sm:$0xff]  }
  0x70   :  { %v6767_v26 = vld [vmem:[#allocation5 + $0x44] ss:$28 sps:$4 sm:$0xff]   ;;  %v6769_v27 = vld [vmem:[#allocation5 + $0x38] ss:$28 sps:$4 sm:$0xff]   ;;  %v6773_v30 = vld [vmem:[#allocation5 + $0xc] ss:$28 sps:$4 sm:$0xff]  }
  0x71   :  { %v6770_v28 = vld [vmem:[#allocation5 + $0x40] ss:$28 sps:$4 sm:$0xff]   ;;  %v6776_v32 = vld [vmem:[#allocation5 + $0x8] ss:$28 sps:$4 sm:$0xff]   ;;  %v6778_v36 = vld [vmem:[#allocation5 + $0x198] ss:$28 sps:$4 sm:$0xff]  }
  0x72   :  { %611 = vmatpush1.bf16.msra.mxu0 %v6745_v11  ;;  %724 = vmatpush1.bf16.msra.mxu1 %v6746_v12  ;;  %v6771_v29 = vld [vmem:[#allocation5 + $0x4] ss:$28 sps:$4 sm:$0xff]   ;;  %v6780_v33 = vld [vmem:[#allocation5 + $0x19c] ss:$28 sps:$4 sm:$0xff]   ;;  %v6790_v40 = vld [vmem:[#allocation5 + $0x12c] ss:$28 sps:$4 sm:$0xff]  }
  0x73   :  { %612 = vmatprep.subr.bf16.mxu0 %v6747_v13  ;;  %725 = vmatprep.subr.bf16.mxu1 %v6749_v14  ;;  %v6775_v31 = vld [vmem:[#allocation5] ss:$28 sps:$4 sm:$0xff]   ;;  %v6786_v38 = vld [vmem:[#allocation5 + $0x168] ss:$28 sps:$4 sm:$0xff]   ;;  %v6791_v41 = vld [vmem:[#allocation5 + $0x130] ss:$28 sps:$4 sm:$0xff]  }
  0x74   :  { %v6781_v34 = vld [vmem:[#allocation5 + $0x1a0] ss:$28 sps:$4 sm:$0xff]   ;;  %v7796_v42 = vld [vmem:[#allocation2 + $0x8] sm:$0xff]   ;;  %v6795_v44 = vld [vmem:[#allocation5 + $0xf4] ss:$28 sps:$4 sm:$0xff]  }
  0x75   :  { %v6785_v37 = vld [vmem:[#allocation5 + $0x164] ss:$28 sps:$4 sm:$0xff]   ;;  %v6796_v45 = vld [vmem:[#allocation5 + $0xf8] ss:$28 sps:$4 sm:$0xff]   ;;  %v6793_v46 = vld [vmem:[#allocation5 + $0xf0] ss:$28 sps:$4 sm:$0xff]  }
  0x76   :  { %613 = vmatpush1.bf16.msra.mxu0 %v6751_v15  ;;  %726 = vmatpush1.bf16.msra.mxu1 %v6752_v16  ;;  %v6783_v39 = vld [vmem:[#allocation5 + $0x160] ss:$28 sps:$4 sm:$0xff]   ;;  %v6788_v43 = vld [vmem:[#allocation5 + $0x128] ss:$28 sps:$4 sm:$0xff]   ;;  %v7802_v49 = vld [vmem:[#allocation2 + $0x10] sm:$0xff]  }
  0x77   :  { %614 = vmatprep.subr.bf16.mxu0 %v6753_v17  ;;  %727 = vmatprep.subr.bf16.mxu1 %v6755_v18  ;;  %v6800_v47 = vld [vmem:[#allocation5 + $0xbc] ss:$28 sps:$4 sm:$0xff]   ;;  %v6805_v51 = vld [vmem:[#allocation5 + $0x84] ss:$28 sps:$4 sm:$0xff]   ;;  %v6810_v54 = vld [vmem:[#allocation5 + $0x4c] ss:$28 sps:$4 sm:$0xff]  }
  0x78   :  { %v6801_v48 = vld [vmem:[#allocation5 + $0xc0] ss:$28 sps:$4 sm:$0xff]   ;;  %v6798_v50 = vld [vmem:[#allocation5 + $0xb8] ss:$28 sps:$4 sm:$0xff]   ;;  %v6806_v52 = vld [vmem:[#allocation5 + $0x88] ss:$28 sps:$4 sm:$0xff]  }
  0x79   :  { %v6803_v53 = vld [vmem:[#allocation5 + $0x80] ss:$28 sps:$4 sm:$0xff]   ;;  %v6811_v55 = vld [vmem:[#allocation5 + $0x50] ss:$28 sps:$4 sm:$0xff]   ;;  %v6808_v57 = vld [vmem:[#allocation5 + $0x48] ss:$28 sps:$4 sm:$0xff]  }
  0x7a   :  { %615 = vmatpush1.bf16.msra.mxu0 %v6757_v19  ;;  %728 = vmatpush1.bf16.msra.mxu1 %v6758_v20  ;;  %v7808_v56 = vld [vmem:[#allocation2 + $0x18] sm:$0xff]   ;;  %v6815_v58 = vld [vmem:[#allocation5 + $0x14] ss:$28 sps:$4 sm:$0xff]   ;;  %v7814_v63 = vld [vmem:[#allocation2 + $0x20] sm:$0xff]  }
  0x7b   :  { %616 = vmatprep.subr.bf16.mxu0 %v6759_v21  ;;  %729 = vmatprep.subr.bf16.mxu1 %v6761_v22  ;;  %v6816_v59 = vld [vmem:[#allocation5 + $0x18] ss:$28 sps:$4 sm:$0xff]   ;;  %v6813_v60 = vld [vmem:[#allocation5 + $0x10] ss:$28 sps:$4 sm:$0xff]  }
  0x7c   :  { %v6819_v61 = vld [vmem:[#allocation8 + $0xe4] ss:$16 sps:$4 sm:$0xff]   ;;  %v7826_v2 = vld [vmem:[#allocation2 + $0x30] sm:$0xff]   ;;  %v6817_v4 = vld [vmem:[#allocation8 + $0xe0] ss:$16 sps:$4 sm:$0xff]  }
  0x7d   :  { %v6822_v62 = vld [vmem:[#allocation8 + $0x2e4] ss:$16 sps:$4 sm:$0xff]   ;;  %v6820_v5 = vld [vmem:[#allocation8 + $0x2e0] ss:$16 sps:$4 sm:$0xff]  }
  0x7e   :  { %617 = vmatpush1.bf16.msra.mxu0 %v6763_v23  ;;  %730 = vmatpush1.bf16.msra.mxu1 %v6764_v24  ;;  %v7820_v1 = vld [vmem:[#allocation2 + $0x28] sm:$0xff]   ;;  %v7832_v3 = vld [vmem:[#allocation2 + $0x38] sm:$0xff]  }
  0x7f   :  { %618 = vmatprep.subr.bf16.mxu0 %v6765_v25  ;;  %731 = vmatprep.subr.bf16.mxu1 %v6767_v26  ;;  %v6825_v6 = vld [vmem:[#allocation8 + $0xc4] ss:$16 sps:$4 sm:$0xff]   ;;  %v6823_v8 = vld [vmem:[#allocation8 + $0xc0] ss:$16 sps:$4 sm:$0xff]  }
  0x80   :  { %v6828_v7 = vld [vmem:[#allocation8 + $0x2c4] ss:$16 sps:$4 sm:$0xff]   ;;  %v6826_v9 = vld [vmem:[#allocation8 + $0x2c0] ss:$16 sps:$4 sm:$0xff]  }
  0x81   :  { %v6831_v10 = vld [vmem:[#allocation8 + $0xa4] ss:$16 sps:$4 sm:$0xff]   ;;  %v6829_v12 = vld [vmem:[#allocation8 + $0xa0] ss:$16 sps:$4 sm:$0xff]  }
  0x82   :  { %619 = vmatpush1.bf16.msra.mxu0 %v6769_v27  ;;  %732 = vmatpush1.bf16.msra.mxu1 %v6770_v28  ;;  %v6834_v11 = vld [vmem:[#allocation8 + $0x2a4] ss:$16 sps:$4 sm:$0xff]   ;;  %v6832_v13 = vld [vmem:[#allocation8 + $0x2a0] ss:$16 sps:$4 sm:$0xff]  }
  0x83   :  { %620 = vmatprep.subr.bf16.mxu0 %v6771_v29  ;;  %733 = vmatprep.subr.bf16.mxu1 %v6773_v30  ;;  %v6837_v14 = vld [vmem:[#allocation8 + $0x84] ss:$16 sps:$4 sm:$0xff]   ;;  %v6835_v16 = vld [vmem:[#allocation8 + $0x80] ss:$16 sps:$4 sm:$0xff]  }
  0x84   :  { %v6840_v15 = vld [vmem:[#allocation8 + $0x284] ss:$16 sps:$4 sm:$0xff]   ;;  %v6838_v17 = vld [vmem:[#allocation8 + $0x280] ss:$16 sps:$4 sm:$0xff]  }
  0x85   :  { %v6843_v18 = vld [vmem:[#allocation8 + $0x64] ss:$16 sps:$4 sm:$0xff]   ;;  %v6841_v20 = vld [vmem:[#allocation8 + $0x60] ss:$16 sps:$4 sm:$0xff]  }
  0x86   :  { %621 = vmatpush1.bf16.msra.mxu0 %v6775_v31  ;;  %734 = vmatpush1.bf16.msra.mxu1 %v6776_v32  ;;  %v6846_v19 = vld [vmem:[#allocation8 + $0x264] ss:$16 sps:$4 sm:$0xff]   ;;  %v6844_v21 = vld [vmem:[#allocation8 + $0x260] ss:$16 sps:$4 sm:$0xff]  }
  0x87   :  { %832 = vmatprep.subr.bf16.mxu0 %v6780_v33  ;;  %6647 = vmatprep.subr.bf16.mxu1 %v6781_v34  ;;  %v6849_v22 = vld [vmem:[#allocation8 + $0x44] ss:$16 sps:$4 sm:$0xff]   ;;  %v6847_v24 = vld [vmem:[#allocation8 + $0x40] ss:$16 sps:$4 sm:$0xff]  }
  0x88   :  { %v6852_v23 = vld [vmem:[#allocation8 + $0x244] ss:$16 sps:$4 sm:$0xff]   ;;  %v6850_v25 = vld [vmem:[#allocation8 + $0x240] ss:$16 sps:$4 sm:$0xff]  }
  0x89   :  { %639 = vmatmul.mubr.bf16.vlgmr.msra.gmra.mxu0 %v7790_v35  ;;  %752 = vmatmul.mubr.bf16.vlgmr.msra.gmra.mxu1 %v7790_v35  ;;  %v6855_v26 = vld [vmem:[#allocation8 + $0x24] ss:$16 sps:$4 sm:$0xff]   ;;  %v6853_v28 = vld [vmem:[#allocation8 + $0x20] ss:$16 sps:$4 sm:$0xff]  }
  0x8a   :  { %833 = vmatpush1.bf16.msra.mxu0 %v6778_v36  ;;  %6648 = vmatpush3.bf16.msra.mxu1 %v6781_v34  ;;  %v6858_v27 = vld [vmem:[#allocation8 + $0x224] ss:$16 sps:$4 sm:$0xff]   ;;  %v6856_v29 = vld [vmem:[#allocation8 + $0x220] ss:$16 sps:$4 sm:$0xff]  }
  0x8b   :  { %648 = vmatprep.mubr.bf16.mxu0 %v9140_v0  ;;  %761 = vmatprep.mubr.bf16.mxu1 %v9140_v0  ;;  %v6861_v30 = vld [vmem:[#allocation8 + $0x4] ss:$16 sps:$4 sm:$0xff]   ;;  %v6859_v32 = vld [vmem:[#allocation8] ss:$16 sps:$4 sm:$0xff]  }
  0x8c   :  { %834 = vmatprep.subr.bf16.mxu0 %v6785_v37  ;;  %6649 = vmatprep.subr.bf16.mxu1 %v6786_v38  ;;  %v6864_v31 = vld [vmem:[#allocation8 + $0x204] ss:$16 sps:$4 sm:$0xff]   ;;  %v6862_v33 = vld [vmem:[#allocation8 + $0x200] ss:$16 sps:$4 sm:$0xff]  }
  0x8d   :  { %v6867_v34 = vld [vmem:[#allocation8 + $0x1e4] ss:$16 sps:$4 sm:$0xff]   ;;  %v6865_v36 = vld [vmem:[#allocation8 + $0x1e0] ss:$16 sps:$4 sm:$0xff]  }
  0x8e   :  { %835 = vmatpush1.bf16.msra.mxu0 %v6783_v39  ;;  %6650 = vmatpush3.bf16.msra.mxu1 %v6786_v38  ;;  %v6868_v37 = vld [vmem:[#allocation8 + $0x3e0] ss:$16 sps:$4 sm:$0xff]   ;;  %v6873_v38 = vld [vmem:[#allocation8 + $0x1c4] ss:$16 sps:$4 sm:$0xff]  }
  0x8f   :  { %836 = vmatprep.subr.bf16.mxu0 %v6790_v40  ;;  %6651 = vmatprep.subr.bf16.mxu1 %v6791_v41  ;;  %v6876_v39 = vld [vmem:[#allocation8 + $0x3c4] ss:$16 sps:$4 sm:$0xff]   ;;  %v6871_v40 = vld [vmem:[#allocation8 + $0x1c0] ss:$16 sps:$4 sm:$0xff]  }
  0x91   :  { %649 = vmatmul.mubr.bf16.gmra.mxu0 %v7796_v42  ;;  %762 = vmatmul.mubr.bf16.gmra.mxu1 %v7796_v42 }
  0x92   :  { %658 = vmatprep.mubr.bf16.mxu0 %v9140_v0  ;;  %771 = vmatprep.mubr.bf16.mxu1 %v9140_v0 }
  0x93   :  { %837 = vmatpush1.bf16.msra.mxu0 %v6788_v43  ;;  %6652 = vmatpush3.bf16.msra.mxu1 %v6791_v41  ;;  %v6874_v41 = vld [vmem:[#allocation8 + $0x3c0] ss:$16 sps:$4 sm:$0xff]   ;;  %v6882_v43 = vld [vmem:[#allocation8 + $0x3a4] ss:$16 sps:$4 sm:$0xff]  }
  0x94   :  { %838 = vmatprep.subr.bf16.mxu0 %v6795_v44  ;;  %6653 = vmatprep.subr.bf16.mxu1 %v6796_v45  ;;  %v6877_v44 = vld [vmem:[#allocation8 + $0x1a0] ss:$16 sps:$4 sm:$0xff]  }
  0x97   :  { %839 = vmatpush1.bf16.msra.mxu0 %v6793_v46  ;;  %6654 = vmatpush3.bf16.msra.mxu1 %v6796_v45  ;;  %v6880_v45 = vld [vmem:[#allocation8 + $0x3a0] ss:$16 sps:$4 sm:$0xff]   ;;  %v6885_v46 = vld [vmem:[#allocation8 + $0x184] ss:$16 sps:$4 sm:$0xff]  }
  0x98   :  { %840 = vmatprep.subr.bf16.mxu0 %v6800_v47  ;;  %6655 = vmatprep.subr.bf16.mxu1 %v6801_v48  ;;  %v6888_v47 = vld [vmem:[#allocation8 + $0x384] ss:$16 sps:$4 sm:$0xff]  }
  0x99   :  { %659 = vmatmul.mubr.bf16.gmra.mxu0 %v7802_v49  ;;  %772 = vmatmul.mubr.bf16.gmra.mxu1 %v7802_v49 }
  0x9a   :  { %668 = vmatprep.mubr.bf16.mxu0 %v9140_v0  ;;  %781 = vmatprep.mubr.bf16.mxu1 %v9140_v0 }
  0x9b   :  { %841 = vmatpush1.bf16.msra.mxu0 %v6798_v50  ;;  %6656 = vmatpush3.bf16.msra.mxu1 %v6801_v48  ;;  %v6883_v48 = vld [vmem:[#allocation8 + $0x180] ss:$16 sps:$4 sm:$0xff]   ;;  %v6891_v50 = vld [vmem:[#allocation8 + $0x164] ss:$16 sps:$4 sm:$0xff]  }
  0x9c   :  { %842 = vmatprep.subr.bf16.mxu0 %v6805_v51  ;;  %6657 = vmatprep.subr.bf16.mxu1 %v6806_v52  ;;  %v6894_v51 = vld [vmem:[#allocation8 + $0x364] ss:$16 sps:$4 sm:$0xff]  }
  0x9f   :  { %843 = vmatpush1.bf16.msra.mxu0 %v6803_v53  ;;  %6658 = vmatpush3.bf16.msra.mxu1 %v6806_v52  ;;  %v6889_v52 = vld [vmem:[#allocation8 + $0x160] ss:$16 sps:$4 sm:$0xff]  }
  0xa0   :  { %844 = vmatprep.subr.bf16.mxu0 %v6810_v54  ;;  %6659 = vmatprep.subr.bf16.mxu1 %v6811_v55  ;;  %v6892_v53 = vld [vmem:[#allocation8 + $0x360] ss:$16 sps:$4 sm:$0xff]   ;;  %v6897_v54 = vld [vmem:[#allocation8 + $0x144] ss:$16 sps:$4 sm:$0xff]  }
  0xa1   :  { %669 = vmatmul.mubr.bf16.gmra.mxu0 %v7808_v56  ;;  %782 = vmatmul.mubr.bf16.gmra.mxu1 %v7808_v56 }
  0xa2   :  { %678 = vmatprep.mubr.bf16.mxu0 %v9140_v0  ;;  %791 = vmatprep.mubr.bf16.mxu1 %v9140_v0 }
  0xa3   :  { %845 = vmatpush1.bf16.msra.mxu0 %v6808_v57  ;;  %6660 = vmatpush3.bf16.msra.mxu1 %v6811_v55  ;;  %v6900_v55 = vld [vmem:[#allocation8 + $0x344] ss:$16 sps:$4 sm:$0xff]   ;;  %v6898_v57 = vld [vmem:[#allocation8 + $0x340] ss:$16 sps:$4 sm:$0xff]  }
  0xa4   :  { %846 = vmatprep.subr.bf16.mxu0 %v6815_v58  ;;  %6661 = vmatprep.subr.bf16.mxu1 %v6816_v59  ;;  %v6903_v58 = vld [vmem:[#allocation8 + $0x124] ss:$16 sps:$4 sm:$0xff]  }
  0xa7   :  { %847 = vmatpush1.bf16.msra.mxu0 %v6813_v60  ;;  %6662 = vmatpush3.bf16.msra.mxu1 %v6816_v59  ;;  %v6906_v59 = vld [vmem:[#allocation8 + $0x324] ss:$16 sps:$4 sm:$0xff]   ;;  %v6901_v60 = vld [vmem:[#allocation8 + $0x120] ss:$16 sps:$4 sm:$0xff]  }
  0xa8   :  { %2576 = vmatprep.subr.bf16.mxu0 %v6819_v61  ;;  %2689 = vmatprep.subr.bf16.mxu1 %v6822_v62  ;;  %v6904_v61 = vld [vmem:[#allocation8 + $0x320] ss:$16 sps:$4 sm:$0xff]   ;;  %v6909_v62 = vld [vmem:[#allocation8 + $0x104] ss:$16 sps:$4 sm:$0xff]  }
  0xa9   :  { %679 = vmatmul.mubr.bf16.gmra.mxu0 %v7814_v63  ;;  %792 = vmatmul.mubr.bf16.gmra.mxu1 %v7814_v63 }
  0xaa   :  { %688 = vmatprep.mubr.bf16.mxu0 %v9140_v0  ;;  %801 = vmatprep.mubr.bf16.mxu1 %v9140_v0 }
  0xb1   :  { %689 = vmatmul.mubr.bf16.gmra.mxu0 %v7820_v1  ;;  %802 = vmatmul.mubr.bf16.gmra.mxu1 %v7820_v1 }
  0xb2   :  { %698 = vmatprep.mubr.bf16.mxu0 %v9140_v0  ;;  %811 = vmatprep.mubr.bf16.mxu1 %v9140_v0 }
  0xb9   :  { %699 = vmatmul.mubr.bf16.gmra.mxu0 %v7826_v2  ;;  %812 = vmatmul.mubr.bf16.gmra.mxu1 %v7826_v2 }
  0xba   :  { %708 = vmatprep.mubr.bf16.mxu0 %v9140_v0  ;;  %821 = vmatprep.mubr.bf16.mxu1 %v9140_v0 }
  0xc1   :  { %709 = vmatmul.mubr.bf16.gmra.mxu0 %v7832_v3  ;;  %822 = vmatmul.mubr.bf16.gmra.mxu1 %v7832_v3 }
  0xc2   :  { %864 = vmatprep.mubr.bf16.mxu0 %v9140_v0  ;;  %6663 = vmatprep.mubr.bf16.mxu1 %v7790_v35 }
  0xc9   :  { %865 = vmatmul.mubr.bf16.vlgmr.msra.gmra.mxu0 %v7790_v35  ;;  %6664 = vmatmul.mubr.bf16.vlgmr.msra.gmra.mxu1 %v7796_v42  ;;  %v6870_v35 = vld [vmem:[#allocation8 + $0x3e4] ss:$16 sps:$4 sm:$0xff]  }
  0xca   :  { %874 = vmatprep.mubr.bf16.mxu0 %v9140_v0  ;;  %6667 = vmatprep.mubr.bf16.mxu1 %v7802_v49 }
  0xcb   :  { %2577 = vmatpush1.bf16.msra.mxu0 %v6817_v4  ;;  %2690 = vmatpush1.bf16.msra.mxu1 %v6820_v5  ;;  %v6915_v4 = vld [vmem:[#allocation8 + $0x4e4] ss:$16 sps:$4 sm:$0xff]  }
  0xcc   :  { %2578 = vmatprep.subr.bf16.mxu0 %v6825_v6  ;;  %2691 = vmatprep.subr.bf16.mxu1 %v6828_v7  ;;  %v6918_v5 = vld [vmem:[#allocation8 + $0x6e4] ss:$16 sps:$4 sm:$0xff]   ;;  %v235_v6 = vlaneseq }
  0xce   :  { %v7860_v7 = vshrl.u32 %v235_v6, 7 }
  0xcf   :  { %2579 = vmatpush1.bf16.msra.mxu0 %v6823_v8  ;;  %2692 = vmatpush1.bf16.msra.mxu1 %v6826_v9  ;;  %v7865_v9 = vld [vmem:[#allocation7] sm:$0xff] }
  0xd0   :  { %2580 = vmatprep.subr.bf16.mxu0 %v6831_v10  ;;  %2693 = vmatprep.subr.bf16.mxu1 %v6834_v11  ;;  %v7863_v8 = vsub.s32 0, %v7860_v7  ;;  %v7871_v10 = vsub.s32 3, %v7860_v7  ;;  %v7874_v11 = vsub.s32 2, %v7860_v7 }
  0xd1   :  { %875 = vmatmul.mubr.bf16.gmra.mxu0 %v7796_v42  ;;  %6668 = vmatmul.mubr.bf16.gmra.mxu1 %v7808_v56  ;;  %v6879_v42 = vld [vmem:[#allocation8 + $0x1a4] ss:$16 sps:$4 sm:$0xff]  }
  0xd2   :  { %884 = vmatprep.mubr.bf16.mxu0 %v9140_v0  ;;  %6671 = vmatprep.mubr.bf16.mxu1 %v7814_v63  ;;  %9165 = vst [vmem:[#allocation23_spill] sm:$0xff] %v7863_v8  ;;  %9167 = vst [vmem:[#allocation25_spill] sm:$0xff] %v7871_v10 }
  0xd3   :  { %2581 = vmatpush1.bf16.msra.mxu0 %v6829_v12  ;;  %2694 = vmatpush1.bf16.msra.mxu1 %v6832_v13  ;;  %9168 = vst [vmem:[#allocation26_spill] sm:$0xff] %v7874_v11  ;;  %v7878_v12 = vrot.slane %v7865_v9, %v7863_v8 }
  0xd4   :  { %2582 = vmatprep.subr.bf16.mxu0 %v6837_v14  ;;  %2695 = vmatprep.subr.bf16.mxu1 %v6840_v15 }
  0xd7   :  { %2583 = vmatpush1.bf16.msra.mxu0 %v6835_v16  ;;  %2696 = vmatpush1.bf16.msra.mxu1 %v6838_v17  ;;  %v7886_v16 = vrot.slane %v7865_v9, %v7871_v10  ;;  %v7890_v17 = vrot.slane %v7865_v9, %v7874_v11 }
  0xd8   :  { %2584 = vmatprep.subr.bf16.mxu0 %v6843_v18  ;;  %2697 = vmatprep.subr.bf16.mxu1 %v6846_v19 }
  0xd9   :  { %885 = vmatmul.mubr.bf16.gmra.mxu0 %v7802_v49  ;;  %6672 = vmatmul.mubr.bf16.gmra.mxu1 %v7820_v1  ;;  %v6886_v49 = vld [vmem:[#allocation8 + $0x380] ss:$16 sps:$4 sm:$0xff]  }
  0xda   :  { %894 = vmatprep.mubr.bf16.mxu0 %v9140_v0  ;;  %6675 = vmatprep.mubr.bf16.mxu1 %v7826_v2 }
  0xdb   :  { %2585 = vmatpush1.bf16.msra.mxu0 %v6841_v20  ;;  %2698 = vmatpush1.bf16.msra.mxu1 %v6844_v21 }
  0xdc   :  { %2586 = vmatprep.subr.bf16.mxu0 %v6849_v22  ;;  %2699 = vmatprep.subr.bf16.mxu1 %v6852_v23 }
  0xdf   :  { %2587 = vmatpush1.bf16.msra.mxu0 %v6847_v24  ;;  %2700 = vmatpush1.bf16.msra.mxu1 %v6850_v25 }
  0xe0   :  { %2588 = vmatprep.subr.bf16.mxu0 %v6855_v26  ;;  %2701 = vmatprep.subr.bf16.mxu1 %v6858_v27 }
  0xe1   :  { %895 = vmatmul.mubr.bf16.gmra.mxu0 %v7808_v56  ;;  %6676 = vmatmul.mubr.bf16.gmra.mxu1 %v7832_v3  ;;  %v6895_v56 = vld [vmem:[#allocation8 + $0x140] ss:$16 sps:$4 sm:$0xff]  }
  0xe2   :  { %904 = vmatprep.mubr.bf16.mxu0 %v9140_v0 }
  0xe3   :  { %2589 = vmatpush1.bf16.msra.mxu0 %v6853_v28  ;;  %2702 = vmatpush1.bf16.msra.mxu1 %v6856_v29 }
  0xe4   :  { %2590 = vmatprep.subr.bf16.mxu0 %v6861_v30  ;;  %2703 = vmatprep.subr.bf16.mxu1 %v6864_v31 }
  0xe7   :  { %2591 = vmatpush1.bf16.msra.mxu0 %v6859_v32  ;;  %2704 = vmatpush1.bf16.msra.mxu1 %v6862_v33 }
  0xe8   :  { %2592 = vmatprep.subr.bf16.mxu0 %v6867_v34  ;;  %2705 = vmatprep.subr.bf16.mxu1 %v6870_v35 }
  0xe9   :  { %905 = vmatmul.mubr.bf16.gmra.mxu0 %v7814_v63  ;;  %v6912_v63 = vld [vmem:[#allocation8 + $0x304] ss:$16 sps:$4 sm:$0xff]  }
  0xea   :  { %914 = vmatprep.mubr.bf16.mxu0 %v9140_v0 }
  0xeb   :  { %2593 = vmatpush2.bf16.msra.mxu0 %v6865_v36  ;;  %2706 = vmatpush2.bf16.msra.mxu1 %v6868_v37 }
  0xec   :  { %2594 = vmatprep.subr.bf16.mxu0 %v6873_v38  ;;  %2707 = vmatprep.subr.bf16.mxu1 %v6876_v39 }
  0xef   :  { %2595 = vmatpush2.bf16.msra.mxu0 %v6871_v40  ;;  %2708 = vmatpush2.bf16.msra.mxu1 %v6874_v41  ;;  %v6913_v41 = vld [vmem:[#allocation8 + $0x4e0] ss:$16 sps:$4 sm:$0xff]  }
  0xf0   :  { %2596 = vmatprep.subr.bf16.mxu0 %v6879_v42  ;;  %2709 = vmatprep.subr.bf16.mxu1 %v6882_v43  ;;  %v6916_v42 = vld [vmem:[#allocation8 + $0x6e0] ss:$16 sps:$4 sm:$0xff]  }
  0xf1   :  { %915 = vmatmul.mubr.bf16.gmra.mxu0 %v7820_v1  ;;  %v6907_v1 = vld [vmem:[#allocation8 + $0x100] ss:$16 sps:$4 sm:$0xff]  }
  0xf2   :  { %924 = vmatprep.mubr.bf16.mxu0 %v9140_v0 }
  0xf3   :  { %2597 = vmatpush2.bf16.msra.mxu0 %v6877_v44  ;;  %2710 = vmatpush2.bf16.msra.mxu1 %v6880_v45 }
  0xf4   :  { %2598 = vmatprep.subr.bf16.mxu0 %v6885_v46  ;;  %2711 = vmatprep.subr.bf16.mxu1 %v6888_v47  ;;  %v6921_v46 = vld [vmem:[#allocation8 + $0x4c4] ss:$16 sps:$4 sm:$0xff]  }
  0xf5   :  { %v6927_v47 = vld [vmem:[#allocation8 + $0x6c4] ss:$16 sps:$4 sm:$0xff]  }
  0xf7   :  { %2599 = vmatpush2.bf16.msra.mxu0 %v6883_v48  ;;  %2712 = vmatpush2.bf16.msra.mxu1 %v6886_v49 }
  0xf8   :  { %2600 = vmatprep.subr.bf16.mxu0 %v6891_v50  ;;  %2713 = vmatprep.subr.bf16.mxu1 %v6894_v51 }
  0xf9   :  { %925 = vmatmul.mubr.bf16.gmra.mxu0 %v7826_v2  ;;  %v6910_v2 = vld [vmem:[#allocation8 + $0x300] ss:$16 sps:$4 sm:$0xff]  }
  0xfa   :  { %934 = vmatprep.mubr.bf16.mxu0 %v9140_v0 }
  0xfb   :  { %2601 = vmatpush2.bf16.msra.mxu0 %v6889_v52  ;;  %2714 = vmatpush2.bf16.msra.mxu1 %v6892_v53 }
  0xfc   :  { %2602 = vmatprep.subr.bf16.mxu0 %v6897_v54  ;;  %2715 = vmatprep.subr.bf16.mxu1 %v6900_v55 }
  0xff   :  { %2603 = vmatpush2.bf16.msra.mxu0 %v6895_v56  ;;  %2716 = vmatpush2.bf16.msra.mxu1 %v6898_v57 }
 0x100   :  { %2604 = vmatprep.subr.bf16.mxu0 %v6903_v58  ;;  %2717 = vmatprep.subr.bf16.mxu1 %v6906_v59 }
 0x101   :  { %935 = vmatmul.mubr.bf16.gmra.mxu0 %v7832_v3  ;;  %v7868_v3 = vsub.s32 1, %v7860_v7 }
 0x103   :  { %2605 = vmatpush2.bf16.msra.mxu0 %v6901_v60  ;;  %2718 = vmatpush2.bf16.msra.mxu1 %v6904_v61  ;;  %9166 = vst [vmem:[#allocation24_spill] sm:$0xff] %v7868_v3  ;;  %v7882_v15 = vrot.slane %v7865_v9, %v7868_v3  ;;  %v6919_v60 = vld [vmem:[#allocation8 + $0x4c0] ss:$16 sps:$4 sm:$0xff]  }
 0x104   :  { %2606 = vmatprep.subr.bf16.mxu0 %v6909_v62  ;;  %2719 = vmatprep.subr.bf16.mxu1 %v6912_v63  ;;  %v6924_v63 = vld [vmem:[#allocation8 + $0x4a4] ss:$16 sps:$4 sm:$0xff]  }
 0x107   :  { %2607 = vmatpush2.bf16.msra.mxu0 %v6907_v1  ;;  %2720 = vmatpush2.bf16.msra.mxu1 %v6910_v2 }
 0x108   :  { %2802 = vmatprep.subr.bf16.mxu0 %v6915_v4  ;;  %2915 = vmatprep.subr.bf16.mxu1 %v6918_v5 }
 0x149   :  { %v640_v13 = vpop.f32.mrf.mxu0  ;;  %v753_v14 = vpop.f32.mrf.mxu1 }
 0x14a   :  { %v641_v20 = vadd.f32 %v640_v13, %v7878_v12  ;;  %v754_v27 = vadd.f32 %v753_v14, %v7890_v17 }
 0x14b   :  { %v642_v18 = vpop.f32.mrf.mxu0  ;;  %v755_v19 = vpop.f32.mrf.mxu1 }
 0x14c   :  { %v643_v23 = vadd.f32 %v642_v18, %v7882_v15  ;;  %v756_v24 = vadd.f32 %v755_v19, %v7886_v16  ;;  %v1042_v33 = vmax.f32 %v641_v20, 0.0  ;;  %v1044_v43 = vmax.f32 %v754_v27, 0.0  ;;  %v6925_v19 = vld [vmem:[#allocation8 + $0x6c0] ss:$16 sps:$4 sm:$0xff]  }
 0x14d   :  { %v644_v21 = vpop.f32.mrf.mxu0  ;;  %v757_v22 = vpop.f32.mrf.mxu1 }
 0x14e   :  { %v645_v25 = vadd.f32 %v644_v21, %v7878_v12  ;;  %v758_v26 = vadd.f32 %v757_v22, %v7890_v17  ;;  %v1043_v37 = vmax.f32 %v643_v23, 0.0  ;;  %v1045_v38 = vmax.f32 %v756_v24, 0.0  ;;  %v6922_v24 = vld [vmem:[#allocation8 + $0x4a0] ss:$16 sps:$4 sm:$0xff]  }
 0x14f   :  { %v646_v28 = vpop.f32.mrf.mxu0  ;;  %v759_v29 = vpop.f32.mrf.mxu1 }
 0x150   :  { %v1049_v30 = vmax.f32 %v645_v25, 0.0  ;;  %v647_v31 = vadd.f32 %v646_v28, %v7882_v15  ;;  %v760_v32 = vadd.f32 %v759_v29, %v7886_v16  ;;  %v1051_v34 = vmax.f32 %v758_v26, 0.0  ;;  %v6936_v25 = vld [vmem:[#allocation8 + $0x6a4] ss:$16 sps:$4 sm:$0xff]   ;;  %v6934_v29 = vld [vmem:[#allocation8 + $0x6a0] ss:$16 sps:$4 sm:$0xff]  }
 0x151   :  { %v650_v35 = vpop.f32.mrf.mxu0  ;;  %v763_v36 = vpop.f32.mrf.mxu1  ;;  %v6930_v28 = vld [vmem:[#allocation8 + $0x484] ss:$16 sps:$4 sm:$0xff]  }
 0x152   :  { %v1050_v39 = vmax.f32 %v647_v31, 0.0  ;;  %v1052_v40 = vmax.f32 %v760_v32, 0.0  ;;  %v7900_v48 = vpack.c.bf16 %v1049_v30, %v1042_v33  ;;  %v7906_v51 = vpack.c.bf16 %v1051_v34, %v1044_v43 }
 0x153   :  { %v652_v44 = vpop.f32.mrf.mxu0  ;;  %v765_v45 = vpop.f32.mrf.mxu1  ;;  %v651_v52 = vadd.f32 %v650_v35, %v7878_v12  ;;  %v764_v53 = vadd.f32 %v763_v36, %v7890_v17 }
 0x154   :  { %v7902_v49 = vpack.c.bf16 %v1050_v39, %v1043_v37  ;;  %v7904_v50 = vpack.c.bf16 %v1052_v40, %v1045_v38  ;;  %v653_v54 = vadd.f32 %v652_v44, %v7882_v15  ;;  %v766_v57 = vadd.f32 %v765_v45, %v7886_v16  ;;  %v6928_v45 = vld [vmem:[#allocation8 + $0x480] ss:$16 sps:$4 sm:$0xff]  }
 0x155   :  { %v654_v55 = vpop.f32.mrf.mxu0  ;;  %v767_v56 = vpop.f32.mrf.mxu1  ;;  %v1056_v6 = vmax.f32 %v651_v52, 0.0  ;;  %v1058_v13 = vmax.f32 %v764_v53, 0.0 }
 0x156   :  { %v655_v58 = vadd.f32 %v654_v55, %v7878_v12  ;;  %v768_v59 = vadd.f32 %v767_v56, %v7890_v17  ;;  %2608 = vmatprep.mubr.bf16.mxu0 %v7902_v49  ;;  %2721 = vmatprep.mubr.bf16.mxu1 %v7904_v50  ;;  %v1057_v20 = vmax.f32 %v653_v54, 0.0  ;;  %v1059_v21 = vmax.f32 %v766_v57, 0.0 }
 0x157   :  { %v656_v61 = vpop.f32.mrf.mxu0  ;;  %v769_v62 = vpop.f32.mrf.mxu1  ;;  %2609 = vmatmul.mubr.bf16.vlgmr.msra.gmra.mxu0 %v7900_v48  ;;  %2722 = vmatmul.mubr.bf16.vlgmr.msra.gmra.mxu1 %v7906_v51 }
 0x158   :  { %v1063_v1 = vmax.f32 %v655_v58, 0.0  ;;  %v1065_v2 = vmax.f32 %v768_v59, 0.0  ;;  %v657_v4 = vadd.f32 %v656_v61, %v7882_v15  ;;  %v770_v5 = vadd.f32 %v769_v62, %v7886_v16  ;;  %2803 = vmatpush1.bf16.msra.mxu0 %v6913_v41  ;;  %2916 = vmatpush1.bf16.msra.mxu1 %v6916_v42  ;;  %v6945_v42 = vld [vmem:[#allocation8 + $0x684] ss:$16 sps:$4 sm:$0xff]   ;;  %v6943_v59 = vld [vmem:[#allocation8 + $0x680] ss:$16 sps:$4 sm:$0xff]  }
 0x159   :  { %v660_v14 = vpop.f32.mrf.mxu0  ;;  %v773_v18 = vpop.f32.mrf.mxu1  ;;  %2804 = vmatprep.subr.bf16.mxu0 %v6921_v46  ;;  %2917 = vmatprep.subr.bf16.mxu1 %v6927_v47  ;;  %v6933_v58 = vld [vmem:[#allocation8 + $0x464] ss:$16 sps:$4 sm:$0xff]  }
 0x15a   :  { %v1064_v22 = vmax.f32 %v657_v4, 0.0  ;;  %v1066_v23 = vmax.f32 %v770_v5, 0.0  ;;  %v7920_v30 = vpack.c.bf16 %v1063_v1, %v1056_v6  ;;  %v7922_v31 = vpack.c.bf16 %v1065_v2, %v1058_v13  ;;  %v6931_v1 = vld [vmem:[#allocation8 + $0x460] ss:$16 sps:$4 sm:$0xff]   ;;  %v6954_v2 = vld [vmem:[#allocation8 + $0x664] ss:$16 sps:$4 sm:$0xff]  }
 0x15b   :  { %v662_v26 = vpop.f32.mrf.mxu0  ;;  %v775_v27 = vpop.f32.mrf.mxu1  ;;  %v661_v34 = vadd.f32 %v660_v14, %v7878_v12  ;;  %v774_v35 = vadd.f32 %v773_v18, %v7890_v17  ;;  %v6939_v6 = vld [vmem:[#allocation8 + $0x444] ss:$16 sps:$4 sm:$0xff]  }
 0x15c   :  { %2805 = vmatpush1.bf16.msra.mxu0 %v6919_v60  ;;  %v7924_v32 = vpack.c.bf16 %v1064_v22, %v1057_v20  ;;  %v7926_v33 = vpack.c.bf16 %v1066_v23, %v1059_v21  ;;  %v663_v36 = vadd.f32 %v662_v26, %v7882_v15  ;;  %2918 = vmatpush1.bf16.msra.mxu1 %v6925_v19 }
 0x15d   :  { %v664_v37 = vpop.f32.mrf.mxu0  ;;  %v777_v38 = vpop.f32.mrf.mxu1  ;;  %2806 = vmatprep.subr.bf16.mxu0 %v6924_v63  ;;  %v776_v39 = vadd.f32 %v775_v27, %v7886_v16  ;;  %2919 = vmatprep.subr.bf16.mxu1 %v6936_v25  ;;  %v1070_v54 = vmax.f32 %v661_v34, 0.0  ;;  %v1072_v55 = vmax.f32 %v774_v35, 0.0  ;;  %v6952_v25 = vld [vmem:[#allocation8 + $0x660] ss:$16 sps:$4 sm:$0xff]  }
 0x15e   :  { %v665_v40 = vadd.f32 %v664_v37, %v7878_v12  ;;  %v778_v41 = vadd.f32 %v777_v38, %v7890_v17  ;;  %2618 = vmatprep.mubr.bf16.mxu0 %v7924_v32  ;;  %2731 = vmatprep.mubr.bf16.mxu1 %v7926_v33  ;;  %v1071_v60 = vmax.f32 %v663_v36, 0.0  ;;  %v6937_v36 = vld [vmem:[#allocation8 + $0x440] ss:$16 sps:$4 sm:$0xff]  }
 0x15f   :  { %v666_v43 = vpop.f32.mrf.mxu0  ;;  %v779_v44 = vpop.f32.mrf.mxu1  ;;  %2619 = vmatmul.mubr.bf16.gmra.mxu0 %v7920_v30  ;;  %2732 = vmatmul.mubr.bf16.gmra.mxu1 %v7922_v31  ;;  %v1073_v61 = vmax.f32 %v776_v39, 0.0 }
 0x160   :  { %v1077_v46 = vmax.f32 %v665_v40, 0.0  ;;  %v1079_v47 = vmax.f32 %v778_v41, 0.0  ;;  %v667_v52 = vadd.f32 %v666_v43, %v7882_v15  ;;  %v780_v53 = vadd.f32 %v779_v44, %v7886_v16  ;;  %2807 = vmatpush1.bf16.msra.mxu0 %v6922_v24  ;;  %2920 = vmatpush1.bf16.msra.mxu1 %v6934_v29  ;;  %v6963_v29 = vld [vmem:[#allocation8 + $0x644] ss:$16 sps:$4 sm:$0xff]  }
 0x161   :  { %v670_v56 = vpop.f32.mrf.mxu0  ;;  %v783_v57 = vpop.f32.mrf.mxu1  ;;  %2808 = vmatprep.subr.bf16.mxu0 %v6930_v28  ;;  %2921 = vmatprep.subr.bf16.mxu1 %v6945_v42 }
 0x162   :  { %v1078_v62 = vmax.f32 %v667_v52, 0.0  ;;  %v1080_v63 = vmax.f32 %v780_v53, 0.0  ;;  %v7940_v13 = vpack.c.bf16 %v1077_v46, %v1070_v54  ;;  %v7942_v14 = vpack.c.bf16 %v1079_v47, %v1072_v55  ;;  %v6961_v46 = vld [vmem:[#allocation8 + $0x640] ss:$16 sps:$4 sm:$0xff]  }
 0x163   :  { %v672_v4 = vpop.f32.mrf.mxu0  ;;  %v785_v5 = vpop.f32.mrf.mxu1  ;;  %v671_v20 = vadd.f32 %v670_v56, %v7878_v12  ;;  %v784_v21 = vadd.f32 %v783_v57, %v7890_v17  ;;  %v6940_v55 = vld [vmem:[#allocation8 + $0x420] ss:$16 sps:$4 sm:$0xff]   ;;  %v6972_v56 = vld [vmem:[#allocation8 + $0x624] ss:$16 sps:$4 sm:$0xff]  }
 0x164   :  { %2809 = vmatpush1.bf16.msra.mxu0 %v6928_v45  ;;  %v7944_v18 = vpack.c.bf16 %v1078_v62, %v1071_v60  ;;  %v7946_v19 = vpack.c.bf16 %v1080_v63, %v1073_v61  ;;  %v673_v22 = vadd.f32 %v672_v4, %v7882_v15  ;;  %2922 = vmatpush1.bf16.msra.mxu1 %v6943_v59  ;;  %v6942_v45 = vld [vmem:[#allocation8 + $0x424] ss:$16 sps:$4 sm:$0xff]  }
 0x165   :  { %v674_v23 = vpop.f32.mrf.mxu0  ;;  %v787_v24 = vpop.f32.mrf.mxu1  ;;  %2810 = vmatprep.subr.bf16.mxu0 %v6933_v58  ;;  %v786_v26 = vadd.f32 %v785_v5, %v7886_v16  ;;  %2923 = vmatprep.subr.bf16.mxu1 %v6954_v2  ;;  %v1084_v41 = vmax.f32 %v671_v20, 0.0  ;;  %v1086_v42 = vmax.f32 %v784_v21, 0.0  ;;  %v6948_v59 = vld [vmem:[#allocation8 + $0x404] ss:$16 sps:$4 sm:$0xff]   ;;  %v6970_v20 = vld [vmem:[#allocation8 + $0x620] ss:$16 sps:$4 sm:$0xff]  }
 0x166   :  { %v675_v27 = vadd.f32 %v674_v23, %v7878_v12  ;;  %v788_v28 = vadd.f32 %v787_v24, %v7890_v17  ;;  %2628 = vmatprep.mubr.bf16.mxu0 %v7944_v18  ;;  %2741 = vmatprep.mubr.bf16.mxu1 %v7946_v19  ;;  %v1085_v47 = vmax.f32 %v673_v22, 0.0  ;;  %v6981_v24 = vld [vmem:[#allocation8 + $0x604] ss:$16 sps:$4 sm:$0xff]  }
 0x167   :  { %v676_v34 = vpop.f32.mrf.mxu0  ;;  %v789_v35 = vpop.f32.mrf.mxu1  ;;  %2629 = vmatmul.mubr.bf16.gmra.mxu0 %v7940_v13  ;;  %2742 = vmatmul.mubr.bf16.gmra.mxu1 %v7942_v14  ;;  %v1087_v52 = vmax.f32 %v786_v26, 0.0 }
 0x168   :  { %v1091_v37 = vmax.f32 %v675_v27, 0.0  ;;  %v1093_v38 = vmax.f32 %v788_v28, 0.0  ;;  %v677_v39 = vadd.f32 %v676_v34, %v7882_v15  ;;  %v790_v40 = vadd.f32 %v789_v35, %v7886_v16  ;;  %2811 = vmatpush1.bf16.msra.mxu0 %v6931_v1  ;;  %2924 = vmatpush1.bf16.msra.mxu1 %v6952_v25  ;;  %v6946_v27 = vld [vmem:[#allocation8 + $0x400] ss:$16 sps:$4 sm:$0xff]   ;;  %v6951_v34 = vld [vmem:[#allocation8 + $0x5e4] ss:$16 sps:$4 sm:$0xff]  }
 0x169   :  { %v680_v43 = vpop.f32.mrf.mxu0  ;;  %v793_v44 = vpop.f32.mrf.mxu1  ;;  %2812 = vmatprep.subr.bf16.mxu0 %v6939_v6  ;;  %2925 = vmatprep.subr.bf16.mxu1 %v6963_v29 }
 0x16a   :  { %v1092_v53 = vmax.f32 %v677_v39, 0.0  ;;  %v1094_v54 = vmax.f32 %v790_v40, 0.0  ;;  %v7960_v60 = vpack.c.bf16 %v1091_v37, %v1084_v41  ;;  %v7962_v61 = vpack.c.bf16 %v1093_v38, %v1086_v42  ;;  %v6979_v41 = vld [vmem:[#allocation8 + $0x600] ss:$16 sps:$4 sm:$0xff]  }
 0x16b   :  { %v682_v57 = vpop.f32.mrf.mxu0  ;;  %v795_v58 = vpop.f32.mrf.mxu1  ;;  %v681_v1 = vadd.f32 %v680_v43, %v7878_v12  ;;  %v794_v2 = vadd.f32 %v793_v44, %v7890_v17 }
 0x16c   :  { %2813 = vmatpush1.bf16.msra.mxu0 %v6937_v36  ;;  %v7964_v62 = vpack.c.bf16 %v1092_v53, %v1085_v47  ;;  %v7966_v63 = vpack.c.bf16 %v1094_v54, %v1087_v52  ;;  %v683_v4 = vadd.f32 %v682_v57, %v7882_v15  ;;  %2926 = vmatpush1.bf16.msra.mxu1 %v6961_v46  ;;  %v6949_v46 = vld [vmem:[#allocation8 + $0x5e0] ss:$16 sps:$4 sm:$0xff]   ;;  %v6990_v47 = vld [vmem:[#allocation8 + $0x2ec] ss:$16 sps:$4 sm:$0xff]  }
 0x16d   :  { %v684_v5 = vpop.f32.mrf.mxu0  ;;  %v797_v6 = vpop.f32.mrf.mxu1  ;;  %2814 = vmatprep.subr.bf16.mxu0 %v6942_v45  ;;  %v796_v21 = vadd.f32 %v795_v58, %v7886_v16  ;;  %2927 = vmatprep.subr.bf16.mxu1 %v6972_v56  ;;  %v1098_v35 = vmax.f32 %v681_v1, 0.0  ;;  %v1100_v36 = vmax.f32 %v794_v2, 0.0  ;;  %v6957_v2 = vld [vmem:[#allocation8 + $0x5c4] ss:$16 sps:$4 sm:$0xff]  }
 0x16e   :  { %v685_v22 = vadd.f32 %v684_v5, %v7878_v12  ;;  %v798_v23 = vadd.f32 %v797_v6, %v7890_v17  ;;  %2638 = vmatprep.mubr.bf16.mxu0 %v7964_v62  ;;  %2751 = vmatprep.mubr.bf16.mxu1 %v7966_v63  ;;  %v1099_v42 = vmax.f32 %v683_v4, 0.0 }
 0x16f   :  { %v686_v25 = vpop.f32.mrf.mxu0  ;;  %v799_v26 = vpop.f32.mrf.mxu1  ;;  %2639 = vmatmul.mubr.bf16.gmra.mxu0 %v7960_v60  ;;  %2752 = vmatmul.mubr.bf16.gmra.mxu1 %v7962_v61  ;;  %v1101_v43 = vmax.f32 %v796_v21, 0.0 }
 0x170   :  { %v687_v28 = vadd.f32 %v686_v25, %v7882_v15  ;;  %v800_v29 = vadd.f32 %v799_v26, %v7886_v16  ;;  %2815 = vmatpush1.bf16.msra.mxu0 %v6940_v55  ;;  %v1105_v37 = vmax.f32 %v685_v22, 0.0  ;;  %v1107_v38 = vmax.f32 %v798_v23, 0.0  ;;  %2928 = vmatpush1.bf16.msra.mxu1 %v6970_v20  ;;  %v6955_v26 = vld [vmem:[#allocation8 + $0x5c0] ss:$16 sps:$4 sm:$0xff]  }
 0x171   :  { %v690_v39 = vpop.f32.mrf.mxu0  ;;  %v803_v40 = vpop.f32.mrf.mxu1  ;;  %2816 = vmatprep.subr.bf16.mxu0 %v6948_v59  ;;  %2929 = vmatprep.subr.bf16.mxu1 %v6981_v24 }
 0x172   :  { %v1106_v44 = vmax.f32 %v687_v28, 0.0  ;;  %v1108_v45 = vmax.f32 %v800_v29, 0.0  ;;  %v7984_v56 = vpack.c.bf16 %v1105_v37, %v1098_v35  ;;  %v7986_v57 = vpack.c.bf16 %v1107_v38, %v1100_v36  ;;  %v6960_v35 = vld [vmem:[#allocation8 + $0x5a4] ss:$16 sps:$4 sm:$0xff]  }
 0x173   :  { %v692_v52 = vpop.f32.mrf.mxu0  ;;  %v805_v53 = vpop.f32.mrf.mxu1  ;;  %v691_v20 = vadd.f32 %v690_v39, %v7878_v12  ;;  %v804_v21 = vadd.f32 %v803_v40, %v7890_v17 }
 0x174   :  { %2817 = vmatpush1.bf16.msra.mxu0 %v6946_v27  ;;  %v7980_v54 = vpack.c.bf16 %v1106_v44, %v1099_v42  ;;  %v7982_v55 = vpack.c.bf16 %v1108_v45, %v1101_v43  ;;  %v693_v58 = vadd.f32 %v692_v52, %v7882_v15  ;;  %2930 = vmatpush1.bf16.msra.mxu1 %v6979_v41 }
 0x175   :  { %v694_v59 = vpop.f32.mrf.mxu0  ;;  %v807_v1 = vpop.f32.mrf.mxu1  ;;  %2818 = vmatprep.subr.bf16.mxu0 %v6951_v34  ;;  %v806_v4 = vadd.f32 %v805_v53, %v7886_v16  ;;  %3141 = vmatprep.subr.bf16.mxu1 %v6990_v47  ;;  %v1112_v40 = vmax.f32 %v691_v20, 0.0  ;;  %v1114_v41 = vmax.f32 %v804_v21, 0.0 }
 0x176   :  { %v695_v5 = vadd.f32 %v694_v59, %v7878_v12  ;;  %v808_v6 = vadd.f32 %v807_v1, %v7890_v17  ;;  %2648 = vmatprep.mubr.bf16.mxu0 %v7980_v54  ;;  %2761 = vmatprep.mubr.bf16.mxu1 %v7982_v55  ;;  %v1113_v36 = vmax.f32 %v693_v58, 0.0  ;;  %v6966_v1 = vld [vmem:[#allocation8 + $0x584] ss:$16 sps:$4 sm:$0xff]  }
 0x177   :  { %v696_v22 = vpop.f32.mrf.mxu0  ;;  %v809_v23 = vpop.f32.mrf.mxu1  ;;  %2649 = vmatmul.mubr.bf16.gmra.mxu0 %v7984_v56  ;;  %2762 = vmatmul.mubr.bf16.gmra.mxu1 %v7986_v57  ;;  %v1115_v37 = vmax.f32 %v806_v4, 0.0 }
 0x178   :  { %v697_v24 = vadd.f32 %v696_v22, %v7882_v15  ;;  %v810_v25 = vadd.f32 %v809_v23, %v7886_v16  ;;  %2819 = vmatpush2.bf16.msra.mxu0 %v6949_v46  ;;  %v1119_v27 = vmax.f32 %v695_v5, 0.0  ;;  %v1121_v28 = vmax.f32 %v808_v6, 0.0  ;;  %v6958_v46 = vld [vmem:[#allocation8 + $0x5a0] ss:$16 sps:$4 sm:$0xff]  }
 0x179   :  { %v700_v29 = vpop.f32.mrf.mxu0  ;;  %v813_v34 = vpop.f32.mrf.mxu1  ;;  %2820 = vmatprep.subr.bf16.mxu0 %v6957_v2 }
 0x17a   :  { %v1120_v38 = vmax.f32 %v697_v24, 0.0  ;;  %v1122_v39 = vmax.f32 %v810_v25, 0.0  ;;  %v8004_v47 = vpack.c.bf16 %v1119_v27, %v1112_v40  ;;  %v8006_v52 = vpack.c.bf16 %v1121_v28, %v1114_v41  ;;  %v6964_v25 = vld [vmem:[#allocation8 + $0x580] ss:$16 sps:$4 sm:$0xff]  }
 0x17b   :  { %v702_v42 = vpop.f32.mrf.mxu0  ;;  %v815_v43 = vpop.f32.mrf.mxu1  ;;  %v701_v6 = vadd.f32 %v700_v29, %v7878_v12  ;;  %v814_v20 = vadd.f32 %v813_v34, %v7890_v17  ;;  %v6969_v29 = vld [vmem:[#allocation8 + $0x564] ss:$16 sps:$4 sm:$0xff]  }
 0x17c   :  { %2821 = vmatpush2.bf16.msra.mxu0 %v6955_v26  ;;  %v8000_v44 = vpack.c.bf16 %v1120_v38, %v1113_v36  ;;  %v8002_v45 = vpack.c.bf16 %v1122_v39, %v1115_v37  ;;  %v703_v53 = vadd.f32 %v702_v42, %v7882_v15  ;;  %v816_v2 = vadd.f32 %v815_v43, %v7886_v16 }
 0x17d   :  { %v704_v58 = vpop.f32.mrf.mxu0  ;;  %v817_v59 = vpop.f32.mrf.mxu1  ;;  %2822 = vmatprep.subr.bf16.mxu0 %v6960_v35  ;;  %v1126_v39 = vmax.f32 %v701_v6, 0.0  ;;  %v1128_v40 = vmax.f32 %v814_v20, 0.0  ;;  %v261_v6 = vsub.s32 6, %v7860_v7  ;;  %v6975_v20 = vld [vmem:[#allocation8 + $0x544] ss:$16 sps:$4 sm:$0xff]  }
 0x17e   :  { %v705_v4 = vadd.f32 %v704_v58, %v7878_v12  ;;  %v818_v5 = vadd.f32 %v817_v59, %v7890_v17  ;;  %2658 = vmatprep.mubr.bf16.mxu0 %v8000_v44  ;;  %2771 = vmatprep.mubr.bf16.mxu1 %v8002_v45  ;;  %v1127_v36 = vmax.f32 %v703_v53, 0.0  ;;  %v1129_v34 = vmax.f32 %v816_v2, 0.0 }
 0x17f   :  { %v706_v21 = vpop.f32.mrf.mxu0  ;;  %v819_v22 = vpop.f32.mrf.mxu1  ;;  %2659 = vmatmul.mubr.bf16.gmra.mxu0 %v8004_v47  ;;  %2772 = vmatmul.mubr.bf16.gmra.mxu1 %v8006_v52  ;;  %v257_v59 = vsub.s32 5, %v7860_v7 }
 0x180   :  { %v707_v23 = vadd.f32 %v706_v21, %v7882_v15  ;;  %v820_v24 = vadd.f32 %v819_v22, %v7886_v16  ;;  %2823 = vmatpush2.bf16.msra.mxu0 %v6958_v46  ;;  %v1133_v26 = vmax.f32 %v705_v4, 0.0  ;;  %v1135_v27 = vmax.f32 %v818_v5, 0.0  ;;  %v6967_v46 = vld [vmem:[#allocation8 + $0x560] ss:$16 sps:$4 sm:$0xff]  }
 0x181   :  { %v710_v28 = vpop.f32.mrf.mxu0  ;;  %v823_v35 = vpop.f32.mrf.mxu1  ;;  %2824 = vmatprep.subr.bf16.mxu0 %v6966_v1 }
 0x182   :  { %v1134_v37 = vmax.f32 %v707_v23, 0.0  ;;  %v1136_v38 = vmax.f32 %v820_v24, 0.0  ;;  %v8025_v4 = vpack.c.bf16 %v1133_v26, %v1126_v39  ;;  %v8027_v1 = vpack.c.bf16 %v1135_v27, %v1128_v40 }
 0x183   :  { %v712_v41 = vpop.f32.mrf.mxu0  ;;  %v825_v42 = vpop.f32.mrf.mxu1  ;;  %v711_v24 = vadd.f32 %v710_v28, %v7878_v12  ;;  %v8047_v28 = vrot.slane %v7865_v9, %v257_v59  ;;  %v6976_v59 = vld [vmem:[#allocation8 + $0x520] ss:$16 sps:$4 sm:$0xff]  }
 0x184   :  { %2825 = vmatpush2.bf16.msra.mxu0 %v6964_v25  ;;  %v8020_v43 = vpack.c.bf16 %v1134_v37, %v1127_v36  ;;  %v8022_v58 = vpack.c.bf16 %v1136_v38, %v1129_v34  ;;  %v713_v53 = vadd.f32 %v712_v41, %v7882_v15  ;;  %v826_v21 = vadd.f32 %v825_v42, %v7886_v16  ;;  %v6973_v37 = vld [vmem:[#allocation8 + $0x540] ss:$16 sps:$4 sm:$0xff]  }
 0x185   :  { %v714_v2 = vpop.f32.mrf.mxu0  ;;  %v827_v5 = vpop.f32.mrf.mxu1  ;;  %2826 = vmatprep.subr.bf16.mxu0 %v6969_v29  ;;  %v824_v25 = vadd.f32 %v823_v35, %v7890_v17  ;;  %v253_v29 = vsub.s32 4, %v7860_v7  ;;  %v6978_v35 = vld [vmem:[#allocation8 + $0x524] ss:$16 sps:$4 sm:$0xff]  }
 0x186   :  { %v715_v22 = vadd.f32 %v714_v2, %v7878_v12  ;;  %v828_v23 = vadd.f32 %v827_v5, %v7890_v17  ;;  %2668 = vmatprep.mubr.bf16.mxu0 %v8020_v43  ;;  %2781 = vmatprep.mubr.bf16.mxu1 %v8022_v58  ;;  %v8044_v12 = vrot.slane %v7865_v9, %v261_v6  ;;  %v1141_v41 = vmax.f32 %v713_v53, 0.0 }
 0x187   :  { %v716_v26 = vpop.f32.mrf.mxu0  ;;  %v829_v27 = vpop.f32.mrf.mxu1  ;;  %2669 = vmatmul.mubr.bf16.gmra.mxu0 %v8025_v4  ;;  %2782 = vmatmul.mubr.bf16.gmra.mxu1 %v8027_v1  ;;  %v1143_v7 = vmax.f32 %v826_v21, 0.0  ;;  %v1140_v2 = vmax.f32 %v711_v24, 0.0  ;;  %v6984_v24 = vld [vmem:[#allocation8 + $0x504] ss:$16 sps:$4 sm:$0xff]  }
 0x188   :  { %v717_v36 = vadd.f32 %v716_v26, %v7882_v15  ;;  %v830_v34 = vadd.f32 %v829_v27, %v7886_v16  ;;  %2827 = vmatpush2.bf16.msra.mxu0 %v6967_v46  ;;  %v1147_v38 = vmax.f32 %v715_v22, 0.0  ;;  %v1149_v39 = vmax.f32 %v828_v23, 0.0 }
 0x189   :  { %v866_v40 = vpop.f32.mrf.mxu0  ;;  %v6665_v17 = vpop.f32.mrf.mxu1  ;;  %2828 = vmatprep.subr.bf16.mxu0 %v6975_v20  ;;  %v1142_v16 = vmax.f32 %v824_v25, 0.0  ;;  %v8050_v46 = vrot.slane %v7865_v9, %v253_v29 }
 0x18a   :  { %v1148_v42 = vmax.f32 %v717_v36, 0.0  ;;  %v1150_v15 = vmax.f32 %v830_v34, 0.0  ;;  %v8056_v26 = vpack.c.bf16 %v1147_v38, %v1140_v2 }
 0x18b   :  { %v868_v5 = vpop.f32.mrf.mxu0  ;;  %v979_v22 = vpop.f32.mrf.mxu1  ;;  %v8058_v20 = vpack.c.bf16 %v1149_v39, %v1142_v16  ;;  %v867_v29 = vadd.f32 %v866_v40, %v8050_v46  ;;  %v6982_v39 = vld [vmem:[#allocation8 + $0x500] ss:$16 sps:$4 sm:$0xff]   ;;  %v6987_v40 = vld [vmem:[#allocation8 + $0xec] ss:$16 sps:$4 sm:$0xff]  }
 0x18c   :  { %2829 = vmatpush2.bf16.msra.mxu0 %v6973_v37  ;;  %v8052_v6 = vpack.c.bf16 %v1148_v42, %v1141_v41  ;;  %v8054_v23 = vpack.c.bf16 %v1150_v15, %v1143_v7  ;;  %v869_v25 = vadd.f32 %v868_v5, %v8047_v28  ;;  %v980_v9 = vadd.f32 %v979_v22, %v8044_v12 }
 0x18d   :  { %v870_v53 = vpop.f32.mrf.mxu0  ;;  %v6666_v21 = vpop.f32.mrf.mxu1  ;;  %2830 = vmatprep.subr.bf16.mxu0 %v6978_v35  ;;  %v1046_v5 = vmax.f32 %v867_v29, 0.0 }
 0x18e   :  { %v871_v27 = vadd.f32 %v870_v53, %v8050_v46  ;;  %2678 = vmatprep.mubr.bf16.mxu0 %v8052_v6  ;;  %2791 = vmatprep.mubr.bf16.mxu1 %v8054_v23  ;;  %v1047_v42 = vmax.f32 %v869_v25, 0.0  ;;  %v1048_v15 = vmax.f32 %v980_v9, 0.0  ;;  %v6993_v9 = vld [vmem:[#allocation8 + $0xcc] ss:$16 sps:$4 sm:$0xff]  }
 0x18f   :  { %v872_v36 = vpop.f32.mrf.mxu0  ;;  %v982_v34 = vpop.f32.mrf.mxu1  ;;  %2679 = vmatmul.mubr.bf16.gmra.mxu0 %v8056_v26  ;;  %2792 = vmatmul.mubr.bf16.gmra.mxu1 %v8058_v20 }
 0x190   :  { %v873_v37 = vadd.f32 %v872_v36, %v8047_v28  ;;  %v983_v38 = vadd.f32 %v982_v34, %v8044_v12  ;;  %2831 = vmatpush2.bf16.msra.mxu0 %v6976_v59  ;;  %2947 = vmatprep.mubr.bf16.mxu1 %v9140_v0  ;;  %v1053_v35 = vmax.f32 %v871_v27, 0.0  ;;  %v988_v36 = vadd.f32 %v6665_v17, %v8044_v12  ;;  %v6988_v0 = vld [vmem:[#allocation8 + $0x2e8] ss:$16 sps:$4 sm:$0xff]  }
 0x191   :  { %v876_v41 = vpop.f32.mrf.mxu0  ;;  %2832 = vmatprep.subr.bf16.mxu0 %v6984_v24  ;;  %v8071_v7 = vpop.f32.mrf.mxu1  ;;  %v991_v59 = vadd.f32 %v6666_v21, %v8044_v12  ;;  %v6985_v24 = vld [vmem:[#allocation8 + $0xe8] ss:$16 sps:$4 sm:$0xff]  }
 0x192   :  { %v1054_v2 = vmax.f32 %v873_v37, 0.0  ;;  %v1055_v16 = vmax.f32 %v983_v38, 0.0  ;;  %v8079_v10 = vpack.c.bf16 %v1053_v35, %v1046_v5  ;;  %v6996_v37 = vld [vmem:[#allocation8 + $0x2cc] ss:$16 sps:$4 sm:$0xff]   ;;  %v877_v21 = vadd.f32 %v876_v41, %v8050_v46 }
 0x193   :  { %v878_v22 = vpop.f32.mrf.mxu0  ;;  %v995_v53 = vpop.f32.mrf.mxu1  ;;  %v1062_v35 = vmax.f32 %v988_v36, 0.0 }
 0x194   :  { %v8075_v34 = vpack.c.bf16 %v1055_v16, %v1048_v15  ;;  %2833 = vmatpush2.bf16.msra.mxu0 %v6982_v39  ;;  %v8077_v27 = vpack.c.bf16 %v1054_v2, %v1047_v42  ;;  %9170 = vst [vmem:[#allocation28_spill] sm:$0xff] %v8079_v10  ;;  %v879_v29 = vadd.f32 %v878_v22, %v8047_v28  ;;  %v1069_v42 = vmax.f32 %v991_v59, 0.0  ;;  %v6991_v15 = vld [vmem:[#allocation8 + $0xc8] ss:$16 sps:$4 sm:$0xff]   ;;  %v6999_v22 = vld [vmem:[#allocation8 + $0xac] ss:$16 sps:$4 sm:$0xff]  }
 0x195   :  { %v880_v25 = vpop.f32.mrf.mxu0  ;;  %3028 = vmatprep.subr.bf16.mxu0 %v6987_v40  ;;  %v8084_v17 = vpop.f32.mrf.mxu1  ;;  %v6994_v2 = vld [vmem:[#allocation8 + $0x2c8] ss:$16 sps:$4 sm:$0xff]  }
 0x196   :  { %9169 = vst [vmem:[#allocation27_spill] sm:$0xff] %v8075_v34  ;;  %v881_v38 = vadd.f32 %v880_v25, %v8050_v46  ;;  %2834 = vmatprep.mubr.bf16.mxu0 %v8077_v27  ;;  %v7002_v25 = vld [vmem:[#allocation8 + $0x2ac] ss:$16 sps:$4 sm:$0xff]   ;;  %v1061_v41 = vmax.f32 %v879_v29, 0.0  ;;  %v8091_v59 = vpack.c.bf16 %v1069_v42, %v1062_v35 }
 0x197   :  { %v882_v39 = vpop.f32.mrf.mxu0  ;;  %2835 = vmatmul.mubr.bf16.vlgmr.msra.gmra.mxu0 %v8079_v10  ;;  %2948 = vmatmul.mubr.bf16.vlgmr.msra.gmra.mxu1 %v8075_v34  ;;  %v998_v3 = vpop.f32.mrf.mxu1  ;;  %v9171_v10 = vmov 0   ;;  %v1060_v34 = vmax.f32 %v877_v21, 0.0  ;;  %v7008_v21 = vld [vmem:[#allocation8 + $0x28c] ss:$16 sps:$4 sm:$0xff]  }
 0x198   :  { %v883_v40 = vadd.f32 %v882_v39, %v8047_v28  ;;  %3029 = vmatpush1.bf16.msra.mxu0 %v6985_v24  ;;  %3142 = vmatpush1.bf16.msra.mxu1 %v6988_v0  ;;  %v1067_v16 = vmax.f32 %v881_v38, 0.0  ;;  %9172 = vst [vmem:[#allocation29_spill] sm:$0xff] %v8091_v59  ;;  %v6997_v24 = vld [vmem:[#allocation8 + $0xa8] ss:$16 sps:$4 sm:$0xff]   ;;  %v999_v29 = vadd.f32 %v998_v3, %v8044_v12 }
 0x199   :  { %v886_v5 = vpop.f32.mrf.mxu0  ;;  %3030 = vmatprep.subr.bf16.mxu0 %v6993_v9  ;;  %3143 = vmatprep.subr.bf16.mxu1 %v6996_v37  ;;  %v7000_v38 = vld [vmem:[#allocation8 + $0x2a8] ss:$16 sps:$4 sm:$0xff]   ;;  %v996_v9 = vadd.f32 %v995_v53, %v8044_v12 }
 0x19a   :  { %v1068_v11 = vmax.f32 %v883_v40, 0.0  ;;  %2957 = vmatprep.mubr.bf16.mxu1 %v9171_v10  ;;  %v8095_v39 = vpack.c.bf16 %v1067_v16, %v1060_v34  ;;  %v7005_v40 = vld [vmem:[#allocation8 + $0x8c] ss:$16 sps:$4 sm:$0xff]   ;;  %v887_v34 = vadd.f32 %v886_v5, %v8050_v46  ;;  %v7003_v53 = vld [vmem:[#allocation8 + $0x88] ss:$16 sps:$4 sm:$0xff]  }
 0x19b   :  { %v888_v36 = vpop.f32.mrf.mxu0  ;;  %v7011_v16 = vld [vmem:[#allocation8 + $0x6c] ss:$16 sps:$4 sm:$0xff]  }
 0x19c   :  { %3031 = vmatpush1.bf16.msra.mxu0 %v6991_v15  ;;  %3144 = vmatpush1.bf16.msra.mxu1 %v6994_v2  ;;  %v8093_v0 = vpack.c.bf16 %v1068_v11, %v1061_v41  ;;  %9174 = vst [vmem:[#allocation31_spill] sm:$0xff] %v8095_v39  ;;  %v889_v35 = vadd.f32 %v888_v36, %v8047_v28  ;;  %v8102_v11 = vpop.f32.mrf.mxu1  ;;  %v7006_v2 = vld [vmem:[#allocation8 + $0x288] ss:$16 sps:$4 sm:$0xff]   ;;  %v1083_v41 = vmax.f32 %v999_v29, 0.0 }
 0x19d   :  { %v890_v37 = vpop.f32.mrf.mxu0  ;;  %3032 = vmatprep.subr.bf16.mxu0 %v6999_v22  ;;  %3145 = vmatprep.subr.bf16.mxu1 %v7002_v25  ;;  %v1076_v22 = vmax.f32 %v996_v9, 0.0  ;;  %v7009_v29 = vld [vmem:[#allocation8 + $0x68] ss:$16 sps:$4 sm:$0xff]  }
 0x19e   :  { %9173 = vst [vmem:[#allocation30_spill] sm:$0xff] %v8093_v0  ;;  %v891_v42 = vadd.f32 %v890_v37, %v8050_v46  ;;  %2844 = vmatprep.mubr.bf16.mxu0 %v8093_v0  ;;  %v7014_v37 = vld [vmem:[#allocation8 + $0x26c] ss:$16 sps:$4 sm:$0xff]   ;;  %v1075_v5 = vmax.f32 %v889_v35, 0.0 }
 0x19f   :  { %v892_v15 = vpop.f32.mrf.mxu0  ;;  %2845 = vmatmul.mubr.bf16.gmra.mxu0 %v8095_v39  ;;  %2958 = vmatmul.mubr.bf16.gmra.mxu1 %v8091_v59  ;;  %v1011_v39 = vpop.f32.mrf.mxu1  ;;  %v1074_v59 = vmax.f32 %v887_v34, 0.0  ;;  %v7017_v34 = vld [vmem:[#allocation8 + $0x4c] ss:$16 sps:$4 sm:$0xff]  }
 0x1a0   :  { %v893_v3 = vadd.f32 %v892_v15, %v8047_v28  ;;  %3033 = vmatpush1.bf16.msra.mxu0 %v6997_v24  ;;  %3146 = vmatpush1.bf16.msra.mxu1 %v7000_v38  ;;  %v1081_v25 = vmax.f32 %v891_v42, 0.0  ;;  %v1004_v24 = vadd.f32 %v8071_v7, %v8044_v12  ;;  %v1007_v38 = vadd.f32 %v8084_v17, %v8044_v12  ;;  %v7020_v15 = vld [vmem:[#allocation8 + $0x24c] ss:$16 sps:$4 sm:$0xff]  }
 0x1a1   :  { %v896_v36 = vpop.f32.mrf.mxu0  ;;  %3034 = vmatprep.subr.bf16.mxu0 %v7005_v40  ;;  %3147 = vmatprep.subr.bf16.mxu1 %v7008_v21  ;;  %v7012_v40 = vld [vmem:[#allocation8 + $0x268] ss:$16 sps:$4 sm:$0xff]   ;;  %v8117_v42 = vpack.c.bf16 %v1083_v41, %v1076_v22  ;;  %v8122_v17 = vpop.f32.mrf.mxu1 }
 0x1a2   :  { %v1082_v0 = vmax.f32 %v893_v3, 0.0  ;;  %2967 = vmatprep.mubr.bf16.mxu1 %v9171_v10  ;;  %v8115_v21 = vpack.c.bf16 %v1081_v25, %v1074_v59  ;;  %v1090_v59 = vmax.f32 %v1004_v24, 0.0  ;;  %v7018_v22 = vld [vmem:[#allocation8 + $0x248] ss:$16 sps:$4 sm:$0xff]  }
 0x1a3   :  { %v898_v8 = vpop.f32.mrf.mxu0  ;;  %9177 = vst [vmem:[#allocation34_spill] sm:$0xff] %v8117_v42 }
 0x1a4   :  { %3035 = vmatpush1.bf16.msra.mxu0 %v7003_v53  ;;  %3148 = vmatpush1.bf16.msra.mxu1 %v7006_v2  ;;  %v8113_v9 = vpack.c.bf16 %v1082_v0, %v1075_v5  ;;  %9176 = vst [vmem:[#allocation33_spill] sm:$0xff] %v8115_v21  ;;  %v899_v7 = vadd.f32 %v898_v8, %v8047_v28  ;;  %v1097_v2 = vmax.f32 %v1007_v38, 0.0  ;;  %v7015_v8 = vld [vmem:[#allocation8 + $0x48] ss:$16 sps:$4 sm:$0xff]   ;;  %v7026_v5 = vld [vmem:[#allocation8 + $0x22c] ss:$16 sps:$4 sm:$0xff]  }
 0x1a5   :  { %v900_v35 = vpop.f32.mrf.mxu0  ;;  %3036 = vmatprep.subr.bf16.mxu0 %v7011_v16  ;;  %3149 = vmatprep.subr.bf16.mxu1 %v7014_v37  ;;  %v897_v0 = vadd.f32 %v896_v36, %v8050_v46  ;;  %v7023_v37 = vld [vmem:[#allocation8 + $0x2c] ss:$16 sps:$4 sm:$0xff]  }
 0x1a6   :  { %9175 = vst [vmem:[#allocation32_spill] sm:$0xff] %v8113_v9  ;;  %v901_v3 = vadd.f32 %v900_v35, %v8050_v46  ;;  %2854 = vmatprep.mubr.bf16.mxu0 %v8113_v9  ;;  %v1089_v36 = vmax.f32 %v899_v7, 0.0  ;;  %v1014_v9 = vpop.f32.mrf.mxu1  ;;  %v8129_v38 = vpack.c.bf16 %v1097_v2, %v1090_v59 }
 0x1a7   :  { %v902_v53 = vpop.f32.mrf.mxu0  ;;  %2855 = vmatmul.mubr.bf16.gmra.mxu0 %v8115_v21  ;;  %2968 = vmatmul.mubr.bf16.gmra.mxu1 %v8117_v42  ;;  %v1088_v42 = vmax.f32 %v897_v0, 0.0  ;;  %v1015_v7 = vadd.f32 %v1014_v9, %v8044_v12  ;;  %v7032_v0 = vld [vmem:[#allocation8 + $0x20c] ss:$16 sps:$4 sm:$0xff]   ;;  %v7027_v9 = vld [vmem:[#allocation8 + $0x8] ss:$16 sps:$4 sm:$0xff]  }
 0x1a8   :  { %v903_v16 = vadd.f32 %v902_v53, %v8047_v28  ;;  %3037 = vmatpush1.bf16.msra.mxu0 %v7009_v29  ;;  %3150 = vmatpush1.bf16.msra.mxu1 %v7012_v40  ;;  %v1095_v25 = vmax.f32 %v901_v3, 0.0  ;;  %9178 = vst [vmem:[#allocation35_spill] sm:$0xff] %v8129_v38  ;;  %v7021_v40 = vld [vmem:[#allocation8 + $0x28] ss:$16 sps:$4 sm:$0xff]  }
 0x1a9   :  { %v906_v41 = vpop.f32.mrf.mxu0  ;;  %3038 = vmatprep.subr.bf16.mxu0 %v7017_v34  ;;  %3151 = vmatprep.subr.bf16.mxu1 %v7020_v15  ;;  %v7024_v3 = vld [vmem:[#allocation8 + $0x228] ss:$16 sps:$4 sm:$0xff]   ;;  %v1012_v34 = vadd.f32 %v1011_v39, %v8044_v12 }
 0x1aa   :  { %v1096_v35 = vmax.f32 %v903_v16, 0.0  ;;  %2977 = vmatprep.mubr.bf16.mxu1 %v9171_v10  ;;  %v8133_v53 = vpack.c.bf16 %v1095_v25, %v1088_v42  ;;  %v7029_v16 = vld [vmem:[#allocation8 + $0xc] ss:$16 sps:$4 sm:$0xff]   ;;  %v907_v42 = vadd.f32 %v906_v41, %v8050_v46  ;;  %v7030_v25 = vld [vmem:[#allocation8 + $0x208] ss:$16 sps:$4 sm:$0xff]  }
 0x1ab   :  { %v908_v24 = vpop.f32.mrf.mxu0 }
 0x1ac   :  { %3039 = vmatpush1.bf16.msra.mxu0 %v7015_v8  ;;  %3152 = vmatpush1.bf16.msra.mxu1 %v7018_v22  ;;  %v8131_v29 = vpack.c.bf16 %v1096_v35, %v1089_v36  ;;  %9180 = vst [vmem:[#allocation37_spill] sm:$0xff] %v8133_v53  ;;  %v909_v59 = vadd.f32 %v908_v24, %v8047_v28  ;;  %v8140_v8 = vpop.f32.mrf.mxu1  ;;  %v1111_v35 = vmax.f32 %v1015_v7, 0.0  ;;  %v7033_v7 = vld [vmem:[#allocation8 + $0x1e8] ss:$16 sps:$4 sm:$0xff]  }
 0x1ad   :  { %v910_v15 = vpop.f32.mrf.mxu0  ;;  %3040 = vmatprep.subr.bf16.mxu0 %v7023_v37  ;;  %3153 = vmatprep.subr.bf16.mxu1 %v7026_v5  ;;  %v7035_v37 = vld [vmem:[#allocation8 + $0x1ec] ss:$16 sps:$4 sm:$0xff]   ;;  %v1104_v5 = vmax.f32 %v1012_v34, 0.0 }
 0x1ae   :  { %9179 = vst [vmem:[#allocation36_spill] sm:$0xff] %v8131_v29  ;;  %v911_v2 = vadd.f32 %v910_v15, %v8050_v46  ;;  %2864 = vmatprep.mubr.bf16.mxu0 %v8131_v29  ;;  %v7038_v15 = vld [vmem:[#allocation8 + $0x3ec] ss:$16 sps:$4 sm:$0xff]   ;;  %v1103_v41 = vmax.f32 %v909_v59, 0.0 }
 0x1af   :  { %v912_v22 = vpop.f32.mrf.mxu0  ;;  %2865 = vmatmul.mubr.bf16.gmra.mxu0 %v8133_v53  ;;  %2978 = vmatmul.mubr.bf16.gmra.mxu1 %v8129_v38  ;;  %v1027_v53 = vpop.f32.mrf.mxu1  ;;  %v1102_v38 = vmax.f32 %v907_v42, 0.0  ;;  %v7041_v42 = vld [vmem:[#allocation8 + $0x1cc] ss:$16 sps:$4 sm:$0xff]  }
 0x1b0   :  { %v913_v39 = vadd.f32 %v912_v22, %v8047_v28  ;;  %3041 = vmatpush1.bf16.msra.mxu0 %v7021_v40  ;;  %3154 = vmatpush1.bf16.msra.mxu1 %v7024_v3  ;;  %v1109_v36 = vmax.f32 %v911_v2, 0.0  ;;  %v1020_v40 = vadd.f32 %v8102_v11, %v8044_v12  ;;  %v1023_v3 = vadd.f32 %v8122_v17, %v8044_v12  ;;  %v7044_v22 = vld [vmem:[#allocation8 + $0x3cc] ss:$16 sps:$4 sm:$0xff]  }
 0x1b1   :  { %v916_v24 = vpop.f32.mrf.mxu0  ;;  %3042 = vmatprep.subr.bf16.mxu0 %v7029_v16  ;;  %3155 = vmatprep.subr.bf16.mxu1 %v7032_v0  ;;  %v7036_v16 = vld [vmem:[#allocation8 + $0x3e8] ss:$16 sps:$4 sm:$0xff]   ;;  %v8155_v2 = vpack.c.bf16 %v1111_v35, %v1104_v5  ;;  %v8160_v17 = vpop.f32.mrf.mxu1 }
 0x1b2   :  { %v1110_v29 = vmax.f32 %v913_v39, 0.0  ;;  %2987 = vmatprep.mubr.bf16.mxu1 %v9171_v10  ;;  %v8153_v0 = vpack.c.bf16 %v1109_v36, %v1102_v38  ;;  %v1118_v38 = vmax.f32 %v1020_v40, 0.0  ;;  %v7042_v5 = vld [vmem:[#allocation8 + $0x3c8] ss:$16 sps:$4 sm:$0xff]  }
 0x1b3   :  { %v918_v21 = vpop.f32.mrf.mxu0  ;;  %9182 = vst [vmem:[#allocation39_spill] sm:$0xff] %v8155_v2 }
 0x1b4   :  { %3043 = vmatpush1.bf16.msra.mxu0 %v7027_v9  ;;  %3156 = vmatpush1.bf16.msra.mxu1 %v7030_v25  ;;  %v8151_v34 = vpack.c.bf16 %v1110_v29, %v1103_v41  ;;  %v919_v11 = vadd.f32 %v918_v21, %v8047_v28  ;;  %v917_v29 = vadd.f32 %v916_v24, %v8050_v46  ;;  %v1125_v25 = vmax.f32 %v1023_v3, 0.0  ;;  %v7039_v21 = vld [vmem:[#allocation8 + $0x1c8] ss:$16 sps:$4 sm:$0xff]   ;;  %v7050_v41 = vld [vmem:[#allocation8 + $0x3ac] ss:$16 sps:$4 sm:$0xff]  }
 0x1b5   :  { %v920_v59 = vpop.f32.mrf.mxu0  ;;  %3044 = vmatprep.subr.bf16.mxu0 %v7035_v37  ;;  %3157 = vmatprep.subr.bf16.mxu1 %v7038_v15  ;;  %v7047_v15 = vld [vmem:[#allocation8 + $0x1ac] ss:$16 sps:$4 sm:$0xff]  }
 0x1b6   :  { %9181 = vst [vmem:[#allocation38_spill] sm:$0xff] %v8151_v34  ;;  %v921_v39 = vadd.f32 %v920_v59, %v8050_v46  ;;  %2874 = vmatprep.mubr.bf16.mxu0 %v8151_v34  ;;  %v1117_v24 = vmax.f32 %v919_v11, 0.0  ;;  %v1030_v34 = vpop.f32.mrf.mxu1  ;;  %v8167_v3 = vpack.c.bf16 %v1125_v25, %v1118_v38 }
 0x1b7   :  { %v922_v9 = vpop.f32.mrf.mxu0  ;;  %2875 = vmatmul.mubr.bf16.gmra.mxu0 %v8153_v0  ;;  %2988 = vmatmul.mubr.bf16.gmra.mxu1 %v8155_v2  ;;  %v1116_v2 = vmax.f32 %v917_v29, 0.0  ;;  %v1031_v11 = vadd.f32 %v1030_v34, %v8044_v12  ;;  %v7056_v29 = vld [vmem:[#allocation8 + $0x38c] ss:$16 sps:$4 sm:$0xff]   ;;  %v7051_v34 = vld [vmem:[#allocation8 + $0x188] ss:$16 sps:$4 sm:$0xff]  }
 0x1b8   :  { %v923_v37 = vadd.f32 %v922_v9, %v8047_v28  ;;  %3045 = vmatpush2.bf16.msra.mxu0 %v7033_v7  ;;  %3158 = vmatpush2.bf16.msra.mxu1 %v7036_v16  ;;  %v1123_v36 = vmax.f32 %v921_v39, 0.0  ;;  %9183 = vst [vmem:[#allocation40_spill] sm:$0xff] %v8167_v3  ;;  %v7045_v16 = vld [vmem:[#allocation8 + $0x1a8] ss:$16 sps:$4 sm:$0xff]  }
 0x1b9   :  { %v926_v35 = vpop.f32.mrf.mxu0  ;;  %3046 = vmatprep.subr.bf16.mxu0 %v7041_v42  ;;  %3159 = vmatprep.subr.bf16.mxu1 %v7044_v22  ;;  %v7048_v39 = vld [vmem:[#allocation8 + $0x3a8] ss:$16 sps:$4 sm:$0xff]   ;;  %v1028_v42 = vadd.f32 %v1027_v53, %v8044_v12 }
 0x1ba   :  { %v1124_v59 = vmax.f32 %v923_v37, 0.0  ;;  %2997 = vmatprep.mubr.bf16.mxu1 %v9171_v10  ;;  %v8171_v9 = vpack.c.bf16 %v1123_v36, %v1116_v2  ;;  %v7053_v37 = vld [vmem:[#allocation8 + $0x18c] ss:$16 sps:$4 sm:$0xff]   ;;  %v7054_v2 = vld [vmem:[#allocation8 + $0x388] ss:$16 sps:$4 sm:$0xff]  }
 0x1bb   :  { %v928_v40 = vpop.f32.mrf.mxu0  ;;  %v7059_v36 = vld [vmem:[#allocation8 + $0x16c] ss:$16 sps:$4 sm:$0xff]  }
 0x1bc   :  { %3047 = vmatpush2.bf16.msra.mxu0 %v7039_v21  ;;  %3160 = vmatpush2.bf16.msra.mxu1 %v7042_v5  ;;  %v8169_v7 = vpack.c.bf16 %v1124_v59, %v1117_v24  ;;  %9184 = vst [vmem:[#allocation41_spill] sm:$0xff] %v8171_v9  ;;  %v929_v38 = vadd.f32 %v928_v40, %v8047_v28  ;;  %v1139_v24 = vmax.f32 %v1031_v11, 0.0  ;;  %v7062_v40 = vld [vmem:[#allocation8 + $0x36c] ss:$16 sps:$4 sm:$0xff]  }
 0x1bd   :  { %v930_v22 = vpop.f32.mrf.mxu0  ;;  %3048 = vmatprep.subr.bf16.mxu0 %v7047_v15  ;;  %3161 = vmatprep.subr.bf16.mxu1 %v7050_v41  ;;  %v927_v21 = vadd.f32 %v926_v35, %v8050_v46  ;;  %v1132_v15 = vmax.f32 %v1028_v42, 0.0  ;;  %v7057_v42 = vld [vmem:[#allocation8 + $0x168] ss:$16 sps:$4 sm:$0xff]   ;;  %v1039_v11 = vadd.f32 %v8160_v17, %v8044_v12 }
 0x1be   :  { %v931_v25 = vadd.f32 %v930_v22, %v8050_v46  ;;  %2884 = vmatprep.mubr.bf16.mxu0 %v8169_v7  ;;  %v1131_v35 = vmax.f32 %v929_v38, 0.0  ;;  %v7063_v17 = vld [vmem:[#allocation8 + $0x148] ss:$16 sps:$4 sm:$0xff]  }
 0x1bf   :  { %v932_v5 = vpop.f32.mrf.mxu0  ;;  %2885 = vmatmul.mubr.bf16.gmra.mxu0 %v8171_v9  ;;  %2998 = vmatmul.mubr.bf16.gmra.mxu1 %v8167_v3  ;;  %v1130_v9 = vmax.f32 %v927_v21, 0.0  ;;  %v8191_v38 = vpack.c.bf16 %v1139_v24, %v1132_v15  ;;  %v7065_v21 = vld [vmem:[#allocation8 + $0x14c] ss:$16 sps:$4 sm:$0xff]  }
 0x1c0   :  { %v933_v53 = vadd.f32 %v932_v5, %v8047_v28  ;;  %3049 = vmatpush2.bf16.msra.mxu0 %v7045_v16  ;;  %3162 = vmatpush2.bf16.msra.mxu1 %v7048_v39  ;;  %v1137_v41 = vmax.f32 %v931_v25, 0.0  ;;  %v1036_v16 = vadd.f32 %v8140_v8, %v8044_v12  ;;  %v7060_v25 = vld [vmem:[#allocation8 + $0x368] ss:$16 sps:$4 sm:$0xff]   ;;  %v7068_v5 = vld [vmem:[#allocation8 + $0x34c] ss:$16 sps:$4 sm:$0xff]  }
 0x1c1   :  { %v936_v59 = vpop.f32.mrf.mxu0  ;;  %3050 = vmatprep.subr.bf16.mxu0 %v7053_v37  ;;  %3163 = vmatprep.subr.bf16.mxu1 %v7056_v29  ;;  %v7074_v24 = vld [vmem:[#allocation8 + $0x32c] ss:$16 sps:$4 sm:$0xff]  }
 0x1c2   :  { %v1138_v22 = vmax.f32 %v933_v53, 0.0  ;;  %3007 = vmatprep.mubr.bf16.mxu1 %v9171_v10  ;;  %v8189_v37 = vpack.c.bf16 %v1137_v41, %v1130_v9  ;;  %v7066_v9 = vld [vmem:[#allocation8 + $0x348] ss:$16 sps:$4 sm:$0xff]   ;;  %v1146_v15 = vmax.f32 %v1036_v16, 0.0 }
 0x1c3   :  { %v938_v3 = vpop.f32.mrf.mxu0  ;;  %v7072_v16 = vld [vmem:[#allocation8 + $0x328] ss:$16 sps:$4 sm:$0xff]  }
 0x1c4   :  { %3051 = vmatpush2.bf16.msra.mxu0 %v7051_v34  ;;  %3164 = vmatpush2.bf16.msra.mxu1 %v7054_v2  ;;  %v8185_v39 = vpack.c.bf16 %v1138_v22, %v1131_v35  ;;  %v939_v8 = vadd.f32 %v938_v3, %v8047_v28  ;;  %v937_v34 = vadd.f32 %v936_v59, %v8050_v46  ;;  %v1153_v3 = vmax.f32 %v1039_v11, 0.0  ;;  %v7080_v11 = vld [vmem:[#allocation8 + $0x30c] ss:$16 sps:$4 sm:$0xff]  }
 0x1c5   :  { %v940_v29 = vpop.f32.mrf.mxu0  ;;  %3052 = vmatprep.subr.bf16.mxu0 %v7059_v36  ;;  %3165 = vmatprep.subr.bf16.mxu1 %v7062_v40  ;;  %v7071_v36 = vld [vmem:[#allocation8 + $0x12c] ss:$16 sps:$4 sm:$0xff]  }
 0x1c6   :  { %v941_v53 = vadd.f32 %v940_v29, %v8050_v46  ;;  %2894 = vmatprep.mubr.bf16.mxu0 %v8185_v39  ;;  %v1145_v40 = vmax.f32 %v939_v8, 0.0  ;;  %v1144_v59 = vmax.f32 %v937_v34, 0.0  ;;  %v8203_v22 = vpack.c.bf16 %v1153_v3, %v1146_v15  ;;  %v7075_v29 = vld [vmem:[#allocation8 + $0x108] ss:$16 sps:$4 sm:$0xff]   ;;  %v7086_v8 = vld [vmem:[#allocation8 + $0x6ec] ss:$16 sps:$4 sm:$0xff]  }
 0x1c7   :  { %v942_v2 = vpop.f32.mrf.mxu0  ;;  %2895 = vmatmul.mubr.bf16.gmra.mxu0 %v8189_v37  ;;  %3008 = vmatmul.mubr.bf16.gmra.mxu1 %v8191_v38  ;;  %v7084_v34 = vld [vmem:[#allocation8 + $0x6e8] ss:$16 sps:$4 sm:$0xff]  }
 0x1c8   :  { %v943_v12 = vadd.f32 %v942_v2, %v8047_v28  ;;  %3053 = vmatpush2.bf16.msra.mxu0 %v7057_v42  ;;  %3166 = vmatpush2.bf16.msra.mxu1 %v7060_v25  ;;  %v1151_v41 = vmax.f32 %v941_v53, 0.0  ;;  %v7069_v28 = vld [vmem:[#allocation8 + $0x128] ss:$16 sps:$4 sm:$0xff]   ;;  %v7077_v25 = vld [vmem:[#allocation8 + $0x10c] ss:$16 sps:$4 sm:$0xff]  }
 0x1c9   :  { %3054 = vmatprep.subr.bf16.mxu0 %v7065_v21  ;;  %3167 = vmatprep.subr.bf16.mxu1 %v7068_v5  ;;  %v7078_v21 = vld [vmem:[#allocation8 + $0x308] ss:$16 sps:$4 sm:$0xff]   ;;  %v7083_v5 = vld [vmem:[#allocation8 + $0x4ec] ss:$16 sps:$4 sm:$0xff]  }
 0x1ca   :  { %v1152_v46 = vmax.f32 %v943_v12, 0.0  ;;  %3017 = vmatprep.mubr.bf16.mxu1 %v9171_v10  ;;  %v8205_v42 = vpack.c.bf16 %v1151_v41, %v1144_v59  ;;  %v7081_v53 = vld [vmem:[#allocation8 + $0x4e8] ss:$16 sps:$4 sm:$0xff]   ;;  %v7089_v2 = vld [vmem:[#allocation8 + $0x4cc] ss:$16 sps:$4 sm:$0xff]  }
 0x1cb   :  { %v7095_v12 = vld [vmem:[#allocation8 + $0x6cc] ss:$16 sps:$4 sm:$0xff]   ;;  %v7102_v15 = vld [vmem:[#allocation8 + $0x6a8] ss:$16 sps:$4 sm:$0xff]  }
 0x1cc   :  { %3055 = vmatpush2.bf16.msra.mxu0 %v7063_v17  ;;  %3168 = vmatpush2.bf16.msra.mxu1 %v7066_v9  ;;  %v8201_v35 = vpack.c.bf16 %v1152_v46, %v1145_v40  ;;  %v7093_v17 = vld [vmem:[#allocation8 + $0x6c8] ss:$16 sps:$4 sm:$0xff]   ;;  %v7104_v9 = vld [vmem:[#allocation8 + $0x6ac] ss:$16 sps:$4 sm:$0xff]  }
 0x1cd   :  { %3056 = vmatprep.subr.bf16.mxu0 %v7071_v36  ;;  %3169 = vmatprep.subr.bf16.mxu1 %v7074_v24  ;;  %v7090_v36 = vld [vmem:[#allocation8 + $0x4a8] ss:$16 sps:$4 sm:$0xff]   ;;  %v7122_v41 = vld [vmem:[#allocation8 + $0x66c] ss:$16 sps:$4 sm:$0xff]  }
 0x1ce   :  { %2904 = vmatprep.mubr.bf16.mxu0 %v8201_v35  ;;  %v7111_v3 = vld [vmem:[#allocation8 + $0x688] ss:$16 sps:$4 sm:$0xff]   ;;  %v7140_v59 = vld [vmem:[#allocation8 + $0x62c] ss:$16 sps:$4 sm:$0xff]  }
 0x1cf   :  { %2905 = vmatmul.mubr.bf16.gmra.mxu0 %v8205_v42  ;;  %3018 = vmatmul.mubr.bf16.gmra.mxu1 %v8203_v22  ;;  %v7099_v24 = vld [vmem:[#allocation8 + $0x468] ss:$16 sps:$4 sm:$0xff]  }
 0x1d0   :  { %3057 = vmatpush2.bf16.msra.mxu0 %v7069_v28  ;;  %3060 = vmatprep.mubr.bf16.mxu0 %v7902_v49  ;;  %v7087_v49 = vld [vmem:[#allocation8 + $0x4c8] ss:$16 sps:$4 sm:$0xff]  }
 0x1d1   :  { %3170 = vmatpush2.bf16.msra.mxu1 %v7072_v16  ;;  %3173 = vmatprep.mubr.bf16.mxu1 %v7904_v50  ;;  %v7092_v50 = vld [vmem:[#allocation8 + $0x4ac] ss:$16 sps:$4 sm:$0xff]   ;;  %v7120_v40 = vld [vmem:[#allocation8 + $0x668] ss:$16 sps:$4 sm:$0xff]  }
 0x1d2   :  { %3058 = vmatprep.subr.bf16.mxu0 %v7077_v25  ;;  %3171 = vmatprep.subr.bf16.mxu1 %v7080_v11  ;;  %v7129_v46 = vld [vmem:[#allocation8 + $0x648] ss:$16 sps:$4 sm:$0xff]  }
 0x1d3   :  { %v7108_v28 = vld [vmem:[#allocation8 + $0x428] ss:$16 sps:$4 sm:$0xff]  }
 0x1d4   :  { %3059 = vmatpush2.bf16.msra.mxu0 %v7075_v29  ;;  %v7138_v16 = vld [vmem:[#allocation8 + $0x628] ss:$16 sps:$4 sm:$0xff]   ;;  %v7125_v29 = vld [vmem:[#allocation8 + $0x5cc] ss:$16 sps:$4 sm:$0xff]  }
 0x1d5   :  { %3172 = vmatpush2.bf16.msra.mxu1 %v7078_v21  ;;  %3254 = vmatprep.subr.bf16.mxu0 %v7083_v5  ;;  %v7147_v25 = vld [vmem:[#allocation8 + $0x608] ss:$16 sps:$4 sm:$0xff]  }
 0x1d6   :  { %3367 = vmatprep.subr.bf16.mxu1 %v7086_v8  ;;  %v7117_v11 = vld [vmem:[#allocation8 + $0x5e8] ss:$16 sps:$4 sm:$0xff]  }
 0x1d7   :  { %3061 = vmatmul.mubr.bf16.vlgmr.msra.gmra.mxu0 %v7900_v48  ;;  %v7098_v48 = vld [vmem:[#allocation8 + $0x48c] ss:$16 sps:$4 sm:$0xff]  }
 0x1d8   :  { %3174 = vmatmul.mubr.bf16.vlgmr.msra.gmra.mxu1 %v7906_v51  ;;  %3070 = vmatprep.mubr.bf16.mxu0 %v7924_v32  ;;  %v7113_v51 = vld [vmem:[#allocation8 + $0x68c] ss:$16 sps:$4 sm:$0xff]   ;;  %v7096_v32 = vld [vmem:[#allocation8 + $0x488] ss:$16 sps:$4 sm:$0xff]  }
 0x1d9   :  { %3183 = vmatprep.mubr.bf16.mxu1 %v7926_v33  ;;  %3255 = vmatpush1.bf16.msra.mxu0 %v7081_v53  ;;  %v7101_v33 = vld [vmem:[#allocation8 + $0x46c] ss:$16 sps:$4 sm:$0xff]   ;;  %v7158_v53 = vld [vmem:[#allocation10 + $0xc4] ss:$16 sps:$4 sm:$0xff]  }
 0x1da   :  { %3368 = vmatpush1.bf16.msra.mxu1 %v7084_v34  ;;  %3256 = vmatprep.subr.bf16.mxu0 %v7089_v2  ;;  %v9186_v5 = vld [vmem:[#allocation24_spill] sm:$0xff] }
 0x1db   :  { %3369 = vmatprep.subr.bf16.mxu1 %v7095_v12  ;;  %v9187_v2 = vld [vmem:[#allocation28_spill] sm:$0xff]  ;;  %v9188_v12 = vld [vmem:[#allocation27_spill] sm:$0xff] }
 0x1dd   :  { %3257 = vmatpush1.bf16.msra.mxu0 %v7087_v49  ;;  %v9189_v49 = vld [vmem:[#allocation30_spill] sm:$0xff] }
 0x1de   :  { %3258 = vmatprep.subr.bf16.mxu0 %v7092_v50  ;;  %3370 = vmatpush1.bf16.msra.mxu1 %v7093_v17 }
 0x1df   :  { %3071 = vmatmul.mubr.bf16.gmra.mxu0 %v7920_v30  ;;  %3371 = vmatprep.subr.bf16.mxu1 %v7104_v9  ;;  %v7107_v30 = vld [vmem:[#allocation8 + $0x44c] ss:$16 sps:$4 sm:$0xff]  }
 0x1e0   :  { %3184 = vmatmul.mubr.bf16.gmra.mxu1 %v7922_v31  ;;  %3080 = vmatprep.mubr.bf16.mxu0 %v7944_v18  ;;  %v7131_v31 = vld [vmem:[#allocation8 + $0x64c] ss:$16 sps:$4 sm:$0xff]   ;;  %v7105_v18 = vld [vmem:[#allocation8 + $0x448] ss:$16 sps:$4 sm:$0xff]  }
 0x1e1   :  { %3193 = vmatprep.mubr.bf16.mxu1 %v7946_v19  ;;  %3259 = vmatpush1.bf16.msra.mxu0 %v7090_v36  ;;  %v7110_v19 = vld [vmem:[#allocation8 + $0x42c] ss:$16 sps:$4 sm:$0xff]  }
 0x1e2   :  { %3260 = vmatprep.subr.bf16.mxu0 %v7098_v48  ;;  %3372 = vmatpush1.bf16.msra.mxu1 %v7102_v15  ;;  %v7156_v48 = vld [vmem:[#allocation10 + $0xc0] ss:$16 sps:$4 sm:$0xff]  }
 0x1e3   :  { %3373 = vmatprep.subr.bf16.mxu1 %v7113_v51 }
 0x1e5   :  { %3261 = vmatpush1.bf16.msra.mxu0 %v7096_v32  ;;  %v7161_v32 = vld [vmem:[#allocation10 + $0xa4] ss:$16 sps:$4 sm:$0xff]  }
 0x1e6   :  { %3262 = vmatprep.subr.bf16.mxu0 %v7101_v33  ;;  %3374 = vmatpush1.bf16.msra.mxu1 %v7111_v3 }
 0x1e7   :  { %3081 = vmatmul.mubr.bf16.gmra.mxu0 %v7940_v13  ;;  %3375 = vmatprep.subr.bf16.mxu1 %v7122_v41  ;;  %v7116_v13 = vld [vmem:[#allocation8 + $0x40c] ss:$16 sps:$4 sm:$0xff]  }
 0x1e8   :  { %3194 = vmatmul.mubr.bf16.gmra.mxu1 %v7942_v14  ;;  %3090 = vmatprep.mubr.bf16.mxu0 %v7964_v62  ;;  %v7149_v14 = vld [vmem:[#allocation8 + $0x60c] ss:$16 sps:$4 sm:$0xff]   ;;  %v7114_v62 = vld [vmem:[#allocation8 + $0x408] ss:$16 sps:$4 sm:$0xff]  }
 0x1e9   :  { %3203 = vmatprep.mubr.bf16.mxu1 %v7966_v63  ;;  %3263 = vmatpush1.bf16.msra.mxu0 %v7099_v24  ;;  %v7119_v63 = vld [vmem:[#allocation8 + $0x5ec] ss:$16 sps:$4 sm:$0xff]   ;;  %v7159_v24 = vld [vmem:[#allocation10 + $0xa0] ss:$16 sps:$4 sm:$0xff]  }
 0x1ea   :  { %3264 = vmatprep.subr.bf16.mxu0 %v7107_v30  ;;  %3376 = vmatpush1.bf16.msra.mxu1 %v7120_v40 }
 0x1eb   :  { %3377 = vmatprep.subr.bf16.mxu1 %v7131_v31  ;;  %v7164_v31 = vld [vmem:[#allocation10 + $0x84] ss:$16 sps:$4 sm:$0xff]  }
 0x1ed   :  { %3265 = vmatpush1.bf16.msra.mxu0 %v7105_v18 }
 0x1ee   :  { %3266 = vmatprep.subr.bf16.mxu0 %v7110_v19  ;;  %3378 = vmatpush1.bf16.msra.mxu1 %v7129_v46  ;;  %v9190_v19 = vld [vmem:[#allocation31_spill] sm:$0xff]  ;;  %v9191_v46 = vld [vmem:[#allocation29_spill] sm:$0xff] }
 0x1ef   :  { %3091 = vmatmul.mubr.bf16.gmra.mxu0 %v7960_v60  ;;  %3379 = vmatprep.subr.bf16.mxu1 %v7140_v59  ;;  %v7123_v60 = vld [vmem:[#allocation8 + $0x5c8] ss:$16 sps:$4 sm:$0xff]  }
 0x1f0   :  { %3204 = vmatmul.mubr.bf16.gmra.mxu1 %v7962_v61  ;;  %3100 = vmatprep.mubr.bf16.mxu0 %v7980_v54  ;;  %v7128_v61 = vld [vmem:[#allocation8 + $0x5ac] ss:$16 sps:$4 sm:$0xff]   ;;  %v7126_v54 = vld [vmem:[#allocation8 + $0x5a8] ss:$16 sps:$4 sm:$0xff]  }
 0x1f1   :  { %3213 = vmatprep.mubr.bf16.mxu1 %v7982_v55  ;;  %3267 = vmatpush1.bf16.msra.mxu0 %v7108_v28  ;;  %v7134_v55 = vld [vmem:[#allocation8 + $0x58c] ss:$16 sps:$4 sm:$0xff]  }
 0x1f2   :  { %3268 = vmatprep.subr.bf16.mxu0 %v7116_v13  ;;  %3380 = vmatpush1.bf16.msra.mxu1 %v7138_v16  ;;  %v9192_v59 = vld [vmem:[#allocation32_spill] sm:$0xff] }
 0x1f3   :  { %3381 = vmatprep.subr.bf16.mxu1 %v7149_v14 }
 0x1f5   :  { %3269 = vmatpush1.bf16.msra.mxu0 %v7114_v62  ;;  %v7162_v62 = vld [vmem:[#allocation10 + $0x80] ss:$16 sps:$4 sm:$0xff]  }
 0x1f6   :  { %3270 = vmatprep.subr.bf16.mxu0 %v7119_v63  ;;  %3382 = vmatpush1.bf16.msra.mxu1 %v7147_v25 }
 0x1f7   :  { %3101 = vmatmul.mubr.bf16.gmra.mxu0 %v7984_v56  ;;  %v7132_v56 = vld [vmem:[#allocation8 + $0x588] ss:$16 sps:$4 sm:$0xff]  }
 0x1f8   :  { %3214 = vmatmul.mubr.bf16.gmra.mxu1 %v7986_v57  ;;  %3110 = vmatprep.mubr.bf16.mxu0 %v8000_v44  ;;  %v7137_v57 = vld [vmem:[#allocation8 + $0x56c] ss:$16 sps:$4 sm:$0xff]   ;;  %v7135_v44 = vld [vmem:[#allocation8 + $0x568] ss:$16 sps:$4 sm:$0xff]  }
 0x1f9   :  { %3223 = vmatprep.mubr.bf16.mxu1 %v8002_v45  ;;  %3271 = vmatpush2.bf16.msra.mxu0 %v7117_v11  ;;  %v7143_v45 = vld [vmem:[#allocation8 + $0x54c] ss:$16 sps:$4 sm:$0xff]   ;;  %v7167_v11 = vld [vmem:[#allocation10 + $0x64] ss:$16 sps:$4 sm:$0xff]  }
 0x1fa   :  { %3272 = vmatprep.subr.bf16.mxu0 %v7125_v29 }
 0x1fd   :  { %3273 = vmatpush2.bf16.msra.mxu0 %v7123_v60 }
 0x1fe   :  { %3274 = vmatprep.subr.bf16.mxu0 %v7128_v61 }
 0x1ff   :  { %3111 = vmatmul.mubr.bf16.gmra.mxu0 %v8004_v47  ;;  %v7141_v47 = vld [vmem:[#allocation8 + $0x548] ss:$16 sps:$4 sm:$0xff]  }
 0x200   :  { %3224 = vmatmul.mubr.bf16.gmra.mxu1 %v8006_v52  ;;  %3120 = vmatprep.mubr.bf16.mxu0 %v8020_v43  ;;  %v7146_v52 = vld [vmem:[#allocation8 + $0x52c] ss:$16 sps:$4 sm:$0xff]   ;;  %v7144_v43 = vld [vmem:[#allocation8 + $0x528] ss:$16 sps:$4 sm:$0xff]  }
 0x201   :  { %3233 = vmatprep.mubr.bf16.mxu1 %v8022_v58  ;;  %3275 = vmatpush2.bf16.msra.mxu0 %v7126_v54  ;;  %v7152_v58 = vld [vmem:[#allocation8 + $0x50c] ss:$16 sps:$4 sm:$0xff]   ;;  %v7165_v54 = vld [vmem:[#allocation10 + $0x60] ss:$16 sps:$4 sm:$0xff]  }
 0x202   :  { %3276 = vmatprep.subr.bf16.mxu0 %v7134_v55  ;;  %v7251_v55 = vld [vmem:[#allocation10 + $0x2e4] ss:$16 sps:$4 sm:$0xff]  }
 0x203   :  { %4479 = vmatprep.subr.bf16.mxu1 %v7251_v55 }
 0x205   :  { %3277 = vmatpush2.bf16.msra.mxu0 %v7132_v56 }
 0x206   :  { %3278 = vmatprep.subr.bf16.mxu0 %v7137_v57 }
 0x207   :  { %3121 = vmatmul.mubr.bf16.gmra.mxu0 %v8025_v4  ;;  %v7150_v4 = vld [vmem:[#allocation8 + $0x508] ss:$16 sps:$4 sm:$0xff]  }
 0x208   :  { %3234 = vmatmul.mubr.bf16.gmra.mxu1 %v8027_v1  ;;  %3130 = vmatprep.mubr.bf16.mxu0 %v8052_v6  ;;  %v1434_v1 = vld [vmem:[%s9130_s4] sm:$0xf]  ;;  %v7155_v6 = vld [vmem:[#allocation10 + $0xe4] ss:$16 sps:$4 sm:$0xff]  }
 0x209   :  { %3243 = vmatprep.mubr.bf16.mxu1 %v8054_v23  ;;  %3279 = vmatpush2.bf16.msra.mxu0 %v7135_v44  ;;  %v9185_v23 = vld [vmem:[#allocation23_spill] sm:$0xff] }
 0x20a   :  { %3280 = vmatprep.subr.bf16.mxu0 %v7143_v45  ;;  %v8248_v21 = vrot.slane %v1434_v1, %v9185_v23  ;;  %v7170_v44 = vld [vmem:[#allocation10 + $0x44] ss:$16 sps:$4 sm:$0xff]   ;;  %v7249_v45 = vld [vmem:[#allocation10 + $0x2e0] ss:$16 sps:$4 sm:$0xff]  }
 0x20d   :  { %3281 = vmatpush2.bf16.msra.mxu0 %v7141_v47 }
 0x20e   :  { %3282 = vmatprep.subr.bf16.mxu0 %v7146_v52  ;;  %v9193_v52 = vld [vmem:[#allocation33_spill] sm:$0xff] }
 0x20f   :  { %3131 = vmatmul.mubr.bf16.gmra.mxu0 %v8056_v26  ;;  %v8251_v26 = vrot.slane %v1434_v1, %v9186_v5  ;;  %v7290_v5 = vld [vmem:[#allocation10 + $0x344] ss:$16 sps:$4 sm:$0xff]  }
 0x210   :  { %3244 = vmatmul.mubr.bf16.gmra.mxu1 %v8058_v20  ;;  %3286 = vmatprep.mubr.bf16.mxu0 %v8077_v27  ;;  %v7153_v20 = vld [vmem:[#allocation10 + $0xe0] ss:$16 sps:$4 sm:$0xff]  }
 0x211   :  { %3283 = vmatpush2.bf16.msra.mxu0 %v7144_v43  ;;  %3399 = vmatprep.mubr.bf16.mxu1 %v9171_v10  ;;  %v9194_v43 = vld [vmem:[#allocation34_spill] sm:$0xff] }
 0x212   :  { %3284 = vmatprep.subr.bf16.mxu0 %v7152_v58  ;;  %v9195_v58 = vld [vmem:[#allocation36_spill] sm:$0xff] }
 0x215   :  { %3285 = vmatpush2.bf16.msra.mxu0 %v7150_v4 }
 0x216   :  { %4366 = vmatprep.subr.bf16.mxu0 %v7155_v6 }
 0x217   :  { %v2610_v27 = vpop.f32.mrf.mxu0  ;;  %v2723_v8 = vpop.f32.mrf.mxu1 }
 0x218   :  { %v2611_v34 = vadd.f32 %v2610_v27, %v8248_v21  ;;  %3287 = vmatmul.mubr.bf16.vlgmr.msra.gmra.mxu0 %v9187_v2  ;;  %3400 = vmatmul.mubr.bf16.vlgmr.msra.gmra.mxu1 %v9188_v12  ;;  %v7168_v27 = vld [vmem:[#allocation10 + $0x40] ss:$16 sps:$4 sm:$0xff]   ;;  %v7173_v2 = vld [vmem:[#allocation10 + $0x24] ss:$16 sps:$4 sm:$0xff]  }
 0x219   :  { %3296 = vmatprep.mubr.bf16.mxu0 %v9189_v49  ;;  %v2612_v50 = vpop.f32.mrf.mxu0  ;;  %v2725_v17 = vpop.f32.mrf.mxu1  ;;  %3409 = vmatprep.mubr.bf16.mxu1 %v9171_v10  ;;  %v7252_v12 = vld [vmem:[#allocation10 + $0x2c0] ss:$16 sps:$4 sm:$0xff]  }
 0x21a   :  { %v8258_v9 = vadd.f32 %v2723_v8, %v2611_v34  ;;  %v2613_v36 = vadd.f32 %v2612_v50, %v8251_v26  ;;  %4367 = vmatpush1.bf16.msra.mxu0 %v7153_v20  ;;  %v7254_v8 = vld [vmem:[#allocation10 + $0x2c4] ss:$16 sps:$4 sm:$0xff]   ;;  %4480 = vmatpush1.bf16.msra.mxu1 %v7249_v45 }
 0x21b   :  { %v8261_v15 = vpop.f32.mrf.mxu0  ;;  %v8263_v51 = vpop.f32.mrf.mxu1  ;;  %4368 = vmatprep.subr.bf16.mxu0 %v7158_v53  ;;  %4481 = vmatprep.subr.bf16.mxu1 %v7254_v8  ;;  %v9199_v8 = vld [vmem:[#allocation39_spill] sm:$0xff] }
 0x21c   :  { %v8265_v33 = vadd.f32 %v2725_v17, %v2613_v36  ;;  %v7171_v36 = vld [vmem:[#allocation10 + $0x20] ss:$16 sps:$4 sm:$0xff]  }
 0x21d   :  { %v8267_v3 = vpop.f32.mrf.mxu0  ;;  %v8269_v41 = vpop.f32.mrf.mxu1 }
 0x21e   :  { %4369 = vmatpush1.bf16.msra.mxu0 %v7156_v48  ;;  %v7257_v48 = vld [vmem:[#allocation10 + $0x2a4] ss:$16 sps:$4 sm:$0xff]   ;;  %4482 = vmatpush1.bf16.msra.mxu1 %v7252_v12 }
 0x21f   :  { %v2620_v30 = vpop.f32.mrf.mxu0  ;;  %v2733_v40 = vpop.f32.mrf.mxu1  ;;  %4370 = vmatprep.subr.bf16.mxu0 %v7161_v32  ;;  %4483 = vmatprep.subr.bf16.mxu1 %v7257_v48 }
 0x220   :  { %v2621_v18 = vadd.f32 %v2620_v30, %v8248_v21  ;;  %3297 = vmatmul.mubr.bf16.gmra.mxu0 %v9190_v19  ;;  %3410 = vmatmul.mubr.bf16.gmra.mxu1 %v9191_v46  ;;  %v7176_v30 = vld [vmem:[#allocation10 + $0x4] ss:$16 sps:$4 sm:$0xff]   ;;  %v9198_v46 = vld [vmem:[#allocation38_spill] sm:$0xff] }
 0x221   :  { %3306 = vmatprep.mubr.bf16.mxu0 %v9192_v59  ;;  %v2622_v28 = vpop.f32.mrf.mxu0  ;;  %v2735_v13 = vpop.f32.mrf.mxu1  ;;  %3419 = vmatprep.mubr.bf16.mxu1 %v9171_v10  ;;  %v9197_v19 = vld [vmem:[#allocation35_spill] sm:$0xff] }
 0x222   :  { %v8276_v16 = vadd.f32 %v2733_v40, %v2621_v18  ;;  %v2623_v14 = vadd.f32 %v2622_v28, %v8251_v26  ;;  %4371 = vmatpush1.bf16.msra.mxu0 %v7159_v24  ;;  %v7255_v40 = vld [vmem:[#allocation10 + $0x2a0] ss:$16 sps:$4 sm:$0xff]  }
 0x223   :  { %v8279_v63 = vpop.f32.mrf.mxu0  ;;  %v8281_v25 = vpop.f32.mrf.mxu1  ;;  %4372 = vmatprep.subr.bf16.mxu0 %v7164_v31  ;;  %v9196_v18 = vld [vmem:[#allocation37_spill] sm:$0xff]  ;;  %4484 = vmatpush1.bf16.msra.mxu1 %v7255_v40 }
 0x224   :  { %v8283_v29 = vadd.f32 %v2735_v13, %v2623_v14 }
 0x225   :  { %v8285_v60 = vpop.f32.mrf.mxu0  ;;  %v8287_v61 = vpop.f32.mrf.mxu1 }
 0x226   :  { %4373 = vmatpush1.bf16.msra.mxu0 %v7162_v62  ;;  %v7174_v62 = vld [vmem:[#allocation10] ss:$16 sps:$4 sm:$0xff]  }
 0x227   :  { %v2630_v56 = vpop.f32.mrf.mxu0  ;;  %v2743_v57 = vpop.f32.mrf.mxu1  ;;  %4374 = vmatprep.subr.bf16.mxu0 %v7167_v11  ;;  %v7260_v11 = vld [vmem:[#allocation10 + $0x284] ss:$16 sps:$4 sm:$0xff]  }
 0x228   :  { %v2631_v47 = vadd.f32 %v2630_v56, %v8248_v21  ;;  %3307 = vmatmul.mubr.bf16.gmra.mxu0 %v9193_v52  ;;  %3420 = vmatmul.mubr.bf16.gmra.mxu1 %v9194_v43  ;;  %v7179_v56 = vld [vmem:[#allocation10 + $0x1e4] ss:$16 sps:$4 sm:$0xff]   ;;  %v7177_v52 = vld [vmem:[#allocation10 + $0x1e0] ss:$16 sps:$4 sm:$0xff]  }
 0x229   :  { %3316 = vmatprep.mubr.bf16.mxu0 %v9195_v58  ;;  %v2632_v4 = vpop.f32.mrf.mxu0  ;;  %v2745_v1 = vpop.f32.mrf.mxu1  ;;  %3429 = vmatprep.mubr.bf16.mxu1 %v9171_v10  ;;  %v7263_v43 = vld [vmem:[#allocation10 + $0x264] ss:$16 sps:$4 sm:$0xff]  }
 0x22a   :  { %v8294_v6 = vadd.f32 %v2743_v57, %v2631_v47  ;;  %v2633_v20 = vadd.f32 %v2632_v4, %v8251_v26  ;;  %4375 = vmatpush1.bf16.msra.mxu0 %v7165_v54  ;;  %v7258_v57 = vld [vmem:[#allocation10 + $0x280] ss:$16 sps:$4 sm:$0xff]   ;;  %4485 = vmatprep.subr.bf16.mxu1 %v7260_v11 }
 0x22b   :  { %v8297_v53 = vpop.f32.mrf.mxu0  ;;  %v8299_v34 = vpop.f32.mrf.mxu1  ;;  %4376 = vmatprep.subr.bf16.mxu0 %v7170_v44  ;;  %4486 = vmatpush1.bf16.msra.mxu1 %v7258_v57  ;;  %v7267_v11 = vld [vmem:[#allocation10 + $0x220] ss:$16 sps:$4 sm:$0xff]  }
 0x22c   :  { %v8301_v49 = vadd.f32 %v2745_v1, %v2633_v20  ;;  %v7182_v1 = vld [vmem:[#allocation10 + $0x1c4] ss:$16 sps:$4 sm:$0xff]   ;;  %v7261_v20 = vld [vmem:[#allocation10 + $0x260] ss:$16 sps:$4 sm:$0xff]   ;;  %4487 = vmatprep.subr.bf16.mxu1 %v7263_v43 }
 0x22d   :  { %v8303_v50 = vpop.f32.mrf.mxu0  ;;  %v8305_v17 = vpop.f32.mrf.mxu1  ;;  %v9200_v57 = vld [vmem:[#allocation41_spill] sm:$0xff] }
 0x22e   :  { %4377 = vmatpush1.bf16.msra.mxu0 %v7168_v27 }
 0x22f   :  { %v2640_v32 = vpop.f32.mrf.mxu0  ;;  %v2753_v24 = vpop.f32.mrf.mxu1  ;;  %4378 = vmatprep.subr.bf16.mxu0 %v7173_v2  ;;  %4488 = vmatpush1.bf16.msra.mxu1 %v7261_v20  ;;  %v7186_v20 = vld [vmem:[#allocation10 + $0x180] ss:$16 sps:$4 sm:$0xff]  }
 0x230   :  { %v2641_v31 = vadd.f32 %v2640_v32, %v8248_v21  ;;  %3317 = vmatmul.mubr.bf16.gmra.mxu0 %v9196_v18  ;;  %3430 = vmatmul.mubr.bf16.gmra.mxu1 %v9197_v19  ;;  %v7180_v32 = vld [vmem:[#allocation10 + $0x1c0] ss:$16 sps:$4 sm:$0xff]  }
 0x231   :  { %3326 = vmatprep.mubr.bf16.mxu0 %v9198_v46  ;;  %v2642_v59 = vpop.f32.mrf.mxu0  ;;  %v2755_v28 = vpop.f32.mrf.mxu1  ;;  %3439 = vmatprep.mubr.bf16.mxu1 %v9171_v10  ;;  %v7183_v46 = vld [vmem:[#allocation10 + $0x1a0] ss:$16 sps:$4 sm:$0xff]  }
 0x232   :  { %v8312_v13 = vadd.f32 %v2753_v24, %v2641_v31  ;;  %v2643_v14 = vadd.f32 %v2642_v59, %v8251_v26  ;;  %4379 = vmatpush1.bf16.msra.mxu0 %v7171_v36  ;;  %v7266_v24 = vld [vmem:[#allocation10 + $0x244] ss:$16 sps:$4 sm:$0xff]  }
 0x233   :  { %v8315_v54 = vpop.f32.mrf.mxu0  ;;  %v8317_v55 = vpop.f32.mrf.mxu1  ;;  %4380 = vmatprep.subr.bf16.mxu0 %v7176_v30  ;;  %4489 = vmatprep.subr.bf16.mxu1 %v7266_v24  ;;  %v7269_v59 = vld [vmem:[#allocation10 + $0x224] ss:$16 sps:$4 sm:$0xff]  }
 0x234   :  { %v8319_v44 = vadd.f32 %v2755_v28, %v2643_v14 }
 0x235   :  { %v8321_v45 = vpop.f32.mrf.mxu0  ;;  %v8323_v47 = vpop.f32.mrf.mxu1 }
 0x236   :  { %4381 = vmatpush1.bf16.msra.mxu0 %v7174_v62  ;;  %v7188_v62 = vld [vmem:[#allocation10 + $0x184] ss:$16 sps:$4 sm:$0xff]  }
 0x237   :  { %v2650_v58 = vpop.f32.mrf.mxu0  ;;  %v2763_v4 = vpop.f32.mrf.mxu1  ;;  %4382 = vmatprep.subr.bf16.mxu0 %v7179_v56 }
 0x238   :  { %v2651_v27 = vadd.f32 %v2650_v58, %v8248_v21  ;;  %3327 = vmatmul.mubr.bf16.gmra.mxu0 %v8153_v0  ;;  %3440 = vmatmul.mubr.bf16.gmra.mxu1 %v9199_v8  ;;  %v7185_v0 = vld [vmem:[#allocation10 + $0x1a4] ss:$16 sps:$4 sm:$0xff]  }
 0x239   :  { %3336 = vmatprep.mubr.bf16.mxu0 %v8169_v7  ;;  %v2652_v2 = vpop.f32.mrf.mxu0  ;;  %v2765_v12 = vpop.f32.mrf.mxu1  ;;  %3449 = vmatprep.mubr.bf16.mxu1 %v9171_v10  ;;  %v7264_v7 = vld [vmem:[#allocation10 + $0x240] ss:$16 sps:$4 sm:$0xff]  }
 0x23a   :  { %v8330_v36 = vadd.f32 %v2763_v4, %v2651_v27  ;;  %v2653_v48 = vadd.f32 %v2652_v2, %v8251_v26  ;;  %4383 = vmatpush2.bf16.msra.mxu0 %v7177_v52  ;;  %4490 = vmatpush1.bf16.msra.mxu1 %v7264_v7  ;;  %v9201_v52 = vld [vmem:[#allocation40_spill] sm:$0xff]  ;;  %v7272_v27 = vld [vmem:[#allocation10 + $0x204] ss:$16 sps:$4 sm:$0xff]  }
 0x23b   :  { %v8333_v30 = vpop.f32.mrf.mxu0  ;;  %v8335_v40 = vpop.f32.mrf.mxu1  ;;  %4384 = vmatprep.subr.bf16.mxu0 %v7182_v1  ;;  %4491 = vmatprep.subr.bf16.mxu1 %v7269_v59  ;;  %v7275_v7 = vld [vmem:[#allocation10 + $0x3e4] ss:$16 sps:$4 sm:$0xff]  }
 0x23c   :  { %v8337_v31 = vadd.f32 %v2765_v12, %v2653_v48  ;;  %v7191_v12 = vld [vmem:[#allocation10 + $0x164] ss:$16 sps:$4 sm:$0xff]  }
 0x23d   :  { %v8339_v18 = vpop.f32.mrf.mxu0  ;;  %v8341_v19 = vpop.f32.mrf.mxu1 }
 0x23e   :  { %4385 = vmatpush2.bf16.msra.mxu0 %v7180_v32  ;;  %4492 = vmatpush1.bf16.msra.mxu1 %v7267_v11 }
 0x23f   :  { %v2660_v28 = vpop.f32.mrf.mxu0  ;;  %v2773_v14 = vpop.f32.mrf.mxu1  ;;  %4386 = vmatprep.subr.bf16.mxu0 %v7185_v0  ;;  %4493 = vmatprep.subr.bf16.mxu1 %v7272_v27  ;;  %v7189_v0 = vld [vmem:[#allocation10 + $0x160] ss:$16 sps:$4 sm:$0xff]  }
 0x240   :  { %v2661_v56 = vadd.f32 %v2660_v28, %v8248_v21  ;;  %3337 = vmatmul.mubr.bf16.gmra.mxu0 %v9200_v57  ;;  %3450 = vmatmul.mubr.bf16.gmra.mxu1 %v9201_v52  ;;  %v7194_v28 = vld [vmem:[#allocation10 + $0x144] ss:$16 sps:$4 sm:$0xff]  }
 0x241   :  { %3346 = vmatprep.mubr.bf16.mxu0 %v8185_v39  ;;  %v2662_v43 = vpop.f32.mrf.mxu0  ;;  %v2775_v58 = vpop.f32.mrf.mxu1  ;;  %3459 = vmatprep.mubr.bf16.mxu1 %v9171_v10  ;;  %v7270_v39 = vld [vmem:[#allocation10 + $0x200] ss:$16 sps:$4 sm:$0xff]  }
 0x242   :  { %v8348_v4 = vadd.f32 %v2773_v14, %v2661_v56  ;;  %v2663_v1 = vadd.f32 %v2662_v43, %v8251_v26  ;;  %4387 = vmatpush2.bf16.msra.mxu0 %v7183_v46  ;;  %4494 = vmatpush1.bf16.msra.mxu1 %v7270_v39  ;;  %v7273_v14 = vld [vmem:[#allocation10 + $0x3e0] ss:$16 sps:$4 sm:$0xff]   ;;  %v7281_v39 = vld [vmem:[#allocation10 + $0x3a4] ss:$16 sps:$4 sm:$0xff]  }
 0x243   :  { %v8351_v8 = vpop.f32.mrf.mxu0  ;;  %v8353_v2 = vpop.f32.mrf.mxu1  ;;  %4388 = vmatprep.subr.bf16.mxu0 %v7188_v62  ;;  %v7192_v43 = vld [vmem:[#allocation10 + $0x140] ss:$16 sps:$4 sm:$0xff]   ;;  %4495 = vmatprep.subr.bf16.mxu1 %v7275_v7 }
 0x244   :  { %v8355_v48 = vadd.f32 %v2775_v58, %v2663_v1  ;;  %v7278_v58 = vld [vmem:[#allocation10 + $0x3c4] ss:$16 sps:$4 sm:$0xff]  }
 0x245   :  { %v8357_v32 = vpop.f32.mrf.mxu0  ;;  %v8359_v24 = vpop.f32.mrf.mxu1 }
 0x246   :  { %4389 = vmatpush2.bf16.msra.mxu0 %v7186_v20  ;;  %4496 = vmatpush2.bf16.msra.mxu1 %v7273_v14 }
 0x247   :  { %v2670_v46 = vpop.f32.mrf.mxu0  ;;  %v2783_v59 = vpop.f32.mrf.mxu1  ;;  %4390 = vmatprep.subr.bf16.mxu0 %v7191_v12  ;;  %4497 = vmatprep.subr.bf16.mxu1 %v7278_v58  ;;  %v7195_v12 = vld [vmem:[#allocation10 + $0x120] ss:$16 sps:$4 sm:$0xff]  }
 0x248   :  { %v2671_v62 = vadd.f32 %v2670_v46, %v8248_v21  ;;  %3347 = vmatmul.mubr.bf16.gmra.mxu0 %v8189_v37  ;;  %3460 = vmatmul.mubr.bf16.gmra.mxu1 %v8191_v38  ;;  %v7197_v37 = vld [vmem:[#allocation10 + $0x124] ss:$16 sps:$4 sm:$0xff]   ;;  %v7276_v38 = vld [vmem:[#allocation10 + $0x3c0] ss:$16 sps:$4 sm:$0xff]  }
 0x249   :  { %3356 = vmatprep.mubr.bf16.mxu0 %v8201_v35  ;;  %v2672_v11 = vpop.f32.mrf.mxu0  ;;  %v2785_v56 = vpop.f32.mrf.mxu1  ;;  %3469 = vmatprep.mubr.bf16.mxu1 %v9171_v10  ;;  %v7200_v46 = vld [vmem:[#allocation10 + $0x104] ss:$16 sps:$4 sm:$0xff]  }
 0x24a   :  { %v8366_v57 = vadd.f32 %v2783_v59, %v2671_v62  ;;  %v2673_v52 = vadd.f32 %v2672_v11, %v8251_v26  ;;  %4391 = vmatpush2.bf16.msra.mxu0 %v7189_v0  ;;  %4498 = vmatpush2.bf16.msra.mxu1 %v7276_v38  ;;  %v7279_v59 = vld [vmem:[#allocation10 + $0x3a0] ss:$16 sps:$4 sm:$0xff]   ;;  %v7203_v38 = vld [vmem:[#allocation10 + $0xec] ss:$16 sps:$4 sm:$0xff]  }
 0x24b   :  { %v8369_v1 = vpop.f32.mrf.mxu0  ;;  %v8371_v20 = vpop.f32.mrf.mxu1  ;;  %4392 = vmatprep.subr.bf16.mxu0 %v7194_v28  ;;  %4499 = vmatprep.subr.bf16.mxu1 %v7281_v39 }
 0x24c   :  { %v8373_v35 = vadd.f32 %v2785_v56, %v2673_v52  ;;  %v7198_v52 = vld [vmem:[#allocation10 + $0x100] ss:$16 sps:$4 sm:$0xff]  }
 0x24d   :  { %v8375_v10 = vpop.f32.mrf.mxu0  ;;  %v8377_v27 = vpop.f32.mrf.mxu1 }
 0x24e   :  { %4393 = vmatpush2.bf16.msra.mxu0 %v7192_v43  ;;  %v7284_v43 = vld [vmem:[#allocation10 + $0x384] ss:$16 sps:$4 sm:$0xff]   ;;  %4500 = vmatpush2.bf16.msra.mxu1 %v7279_v59  ;;  %v2617_v59 = vadd.f32 %v8267_v3, %v8251_v26 }
 0x24f   :  { %v2680_v0 = vpop.f32.mrf.mxu0  ;;  %v2793_v7 = vpop.f32.mrf.mxu1  ;;  %4394 = vmatprep.subr.bf16.mxu0 %v7197_v37  ;;  %4501 = vmatprep.subr.bf16.mxu1 %v7284_v43 }
 0x250   :  { %v2681_v28 = vadd.f32 %v2680_v0, %v8248_v21  ;;  %3357 = vmatmul.mubr.bf16.gmra.mxu0 %v8205_v42  ;;  %3470 = vmatmul.mubr.bf16.gmra.mxu1 %v8203_v22  ;;  %v7282_v42 = vld [vmem:[#allocation10 + $0x380] ss:$16 sps:$4 sm:$0xff]  }
 0x251   :  { %v2682_v14 = vpop.f32.mrf.mxu0  ;;  %v2795_v62 = vpop.f32.mrf.mxu1 }
 0x252   :  { %v8382_v11 = vadd.f32 %v2793_v7, %v2681_v28  ;;  %v2683_v56 = vadd.f32 %v2682_v14, %v8251_v26  ;;  %4395 = vmatpush2.bf16.msra.mxu0 %v7195_v12  ;;  %v2615_v12 = vadd.f32 %v8261_v15, %v8248_v21  ;;  %v7287_v7 = vld [vmem:[#allocation10 + $0x364] ss:$16 sps:$4 sm:$0xff]   ;;  %4502 = vmatpush2.bf16.msra.mxu1 %v7282_v42 }
 0x253   :  { %v8385_v58 = vpop.f32.mrf.mxu0  ;;  %v8387_v37 = vpop.f32.mrf.mxu1  ;;  %4396 = vmatprep.subr.bf16.mxu0 %v7200_v46  ;;  %v7285_v46 = vld [vmem:[#allocation10 + $0x360] ss:$16 sps:$4 sm:$0xff]   ;;  %4503 = vmatprep.subr.bf16.mxu1 %v7287_v7  ;;  %v2625_v7 = vadd.f32 %v8279_v63, %v8248_v21 }
 0x254   :  { %9202 = vst [vmem:[#allocation28_spill] sm:$0xff] %v8382_v11  ;;  %9203 = vst [vmem:[#allocation27_spill] sm:$0xff] %v8387_v37  ;;  %v8389_v0 = vadd.f32 %v2795_v62, %v2683_v56  ;;  %v2728_v43 = vadd.f32 %v8263_v51, %v2615_v12  ;;  %v7288_v11 = vld [vmem:[#allocation10 + $0x340] ss:$16 sps:$4 sm:$0xff]  }
 0x255   :  { %v8391_v22 = vpop.f32.mrf.mxu0  ;;  %v8393_v39 = vpop.f32.mrf.mxu1 }
 0x256   :  { %9204 = vst [vmem:[#allocation30_spill] sm:$0xff] %v8389_v0  ;;  %9205 = vst [vmem:[#allocation31_spill] sm:$0xff] %v8391_v22  ;;  %4397 = vmatpush2.bf16.msra.mxu0 %v7198_v52  ;;  %4504 = vmatpush2.bf16.msra.mxu1 %v7285_v46  ;;  %v2627_v46 = vadd.f32 %v8285_v60, %v8251_v26 }
 0x257   :  { %9206 = vst [vmem:[#allocation29_spill] sm:$0xff] %v8393_v39  ;;  %v2836_v28 = vpop.f32.mrf.mxu0  ;;  %v2949_v14 = vpop.f32.mrf.mxu1  ;;  %4592 = vmatprep.subr.bf16.mxu0 %v7203_v38  ;;  %v2730_v38 = vadd.f32 %v8269_v41, %v2617_v59  ;;  %4505 = vmatprep.subr.bf16.mxu1 %v7290_v5 }
 0x258   :  { %v2837_v15 = vadd.f32 %v2836_v28, %v8258_v9  ;;  %v7291_v28 = vld [vmem:[#allocation10 + $0x320] ss:$16 sps:$4 sm:$0xff]   ;;  %v2740_v60 = vadd.f32 %v8287_v61, %v2627_v46 }
 0x259   :  { %v2838_v62 = vpop.f32.mrf.mxu0  ;;  %v2951_v56 = vpop.f32.mrf.mxu1 }
 0x25a   :  { %v2839_v23 = vadd.f32 %v2838_v62, %v8265_v33  ;;  %v7293_v33 = vld [vmem:[#allocation10 + $0x324] ss:$16 sps:$4 sm:$0xff]   ;;  %v2950_v62 = vadd.f32 %v2949_v14, %v2837_v15  ;;  %4506 = vmatpush2.bf16.msra.mxu1 %v7288_v11 }
 0x25b   :  { %v2840_v52 = vpop.f32.mrf.mxu0  ;;  %v2953_v39 = vpop.f32.mrf.mxu1  ;;  %4507 = vmatprep.subr.bf16.mxu1 %v7293_v33 }
 0x25c   :  { %v2841_v42 = vadd.f32 %v2840_v52, %v2728_v43  ;;  %v2952_v37 = vadd.f32 %v2951_v56, %v2839_v23  ;;  %v2738_v52 = vadd.f32 %v8281_v25, %v2625_v7  ;;  %v3480_v14 = vmax.f32 %v2950_v62, 0.0  ;;  %v7299_v62 = vld [vmem:[#allocation10 + $0x2ec] ss:$16 sps:$4 sm:$0xff]  }
 0x25d   :  { %v2842_v0 = vpop.f32.mrf.mxu0  ;;  %v2955_v3 = vpop.f32.mrf.mxu1 }
 0x25e   :  { %v2954_v51 = vadd.f32 %v2953_v39, %v2841_v42  ;;  %v2843_v12 = vadd.f32 %v2842_v0, %v2730_v38  ;;  %v3481_v63 = vmax.f32 %v2952_v37, 0.0  ;;  %v7296_v39 = vld [vmem:[#allocation10 + $0x304] ss:$16 sps:$4 sm:$0xff]   ;;  %4508 = vmatpush2.bf16.msra.mxu1 %v7291_v28  ;;  %v7294_v38 = vld [vmem:[#allocation10 + $0x300] ss:$16 sps:$4 sm:$0xff]  }
 0x25f   :  { %v2846_v22 = vpop.f32.mrf.mxu0  ;;  %v2959_v9 = vpop.f32.mrf.mxu1  ;;  %4509 = vmatprep.subr.bf16.mxu1 %v7296_v39 }
 0x260   :  { %v2956_v41 = vadd.f32 %v2955_v3, %v2843_v12  ;;  %v3484_v5 = vmax.f32 %v2954_v51, 0.0  ;;  %v2847_v56 = vadd.f32 %v2846_v22, %v8276_v16  ;;  %v7201_v51 = vld [vmem:[#allocation10 + $0xe8] ss:$16 sps:$4 sm:$0xff]   ;;  %v2635_v12 = vadd.f32 %v8297_v53, %v8248_v21 }
 0x261   :  { %v2848_v59 = vpop.f32.mrf.mxu0  ;;  %v2961_v43 = vpop.f32.mrf.mxu1 }
 0x262   :  { %v3485_v23 = vmax.f32 %v2956_v41, 0.0  ;;  %v2849_v0 = vadd.f32 %v2848_v59, %v8283_v29  ;;  %v8413_v25 = vpack.c.bf16 %v3484_v5, %v3480_v14  ;;  %v7206_v29 = vld [vmem:[#allocation10 + $0xcc] ss:$16 sps:$4 sm:$0xff]   ;;  %v2960_v61 = vadd.f32 %v2959_v9, %v2847_v56  ;;  %4510 = vmatpush2.bf16.msra.mxu1 %v7294_v38  ;;  %v7204_v59 = vld [vmem:[#allocation10 + $0xc8] ss:$16 sps:$4 sm:$0xff]  }
 0x263   :  { %v2850_v11 = vpop.f32.mrf.mxu0  ;;  %v2963_v15 = vpop.f32.mrf.mxu1  ;;  %v2637_v41 = vadd.f32 %v8303_v50, %v8251_v26  ;;  %4705 = vmatprep.subr.bf16.mxu1 %v7299_v62 }
 0x264   :  { %v2851_v42 = vadd.f32 %v2850_v11, %v2738_v52  ;;  %v8411_v3 = vpack.c.bf16 %v3485_v23, %v3481_v63  ;;  %v2962_v16 = vadd.f32 %v2961_v43, %v2849_v0  ;;  %v7209_v63 = vld [vmem:[#allocation10 + $0xac] ss:$16 sps:$4 sm:$0xff]   ;;  %v2748_v23 = vadd.f32 %v8299_v34, %v2635_v12 }
 0x265   :  { %v2852_v37 = vpop.f32.mrf.mxu0  ;;  %v2965_v7 = vpop.f32.mrf.mxu1  ;;  %v3488_v14 = vmax.f32 %v2960_v61, 0.0  ;;  %v7210_v61 = vld [vmem:[#allocation10 + $0x88] ss:$16 sps:$4 sm:$0xff]  }
 0x266   :  { %v2964_v22 = vadd.f32 %v2963_v15, %v2851_v42  ;;  %v2853_v33 = vadd.f32 %v2852_v37, %v2740_v60  ;;  %4398 = vmatprep.mubr.bf16.mxu0 %v8411_v3  ;;  %v3489_v9 = vmax.f32 %v2962_v16, 0.0  ;;  %v2750_v15 = vadd.f32 %v8305_v17, %v2637_v41  ;;  %v7207_v42 = vld [vmem:[#allocation10 + $0xa8] ss:$16 sps:$4 sm:$0xff]  }
 0x267   :  { %v2856_v28 = vpop.f32.mrf.mxu0  ;;  %v2969_v46 = vpop.f32.mrf.mxu1  ;;  %4399 = vmatmul.mubr.bf16.vlgmr.msra.gmra.mxu0 %v8413_v25 }
 0x268   :  { %v2966_v5 = vadd.f32 %v2965_v7, %v2853_v33  ;;  %4593 = vmatpush1.bf16.msra.mxu0 %v7201_v51  ;;  %v3492_v53 = vmax.f32 %v2964_v22, 0.0  ;;  %v2857_v56 = vadd.f32 %v2856_v28, %v8294_v6  ;;  %v7212_v7 = vld [vmem:[#allocation10 + $0x8c] ss:$16 sps:$4 sm:$0xff]   ;;  %v2647_v33 = vadd.f32 %v8321_v45, %v8251_v26 }
 0x269   :  { %v2858_v43 = vpop.f32.mrf.mxu0  ;;  %v2971_v52 = vpop.f32.mrf.mxu1  ;;  %4594 = vmatprep.subr.bf16.mxu0 %v7206_v29 }
 0x26a   :  { %v3493_v0 = vmax.f32 %v2966_v5, 0.0  ;;  %v2859_v39 = vadd.f32 %v2858_v43, %v8301_v49  ;;  %v8427_v51 = vpack.c.bf16 %v3492_v53, %v3488_v14  ;;  %v2645_v49 = vadd.f32 %v8315_v54, %v8248_v21  ;;  %v7215_v54 = vld [vmem:[#allocation10 + $0x6c] ss:$16 sps:$4 sm:$0xff]   ;;  %v7213_v14 = vld [vmem:[#allocation10 + $0x68] ss:$16 sps:$4 sm:$0xff]  }
 0x26b   :  { %v2860_v11 = vpop.f32.mrf.mxu0  ;;  %v2973_v50 = vpop.f32.mrf.mxu1  ;;  %v2970_v17 = vadd.f32 %v2969_v46, %v2857_v56  ;;  %v2760_v45 = vadd.f32 %v8323_v47, %v2647_v33 }
 0x26c   :  { %v2861_v38 = vadd.f32 %v2860_v11, %v2748_v23  ;;  %4595 = vmatpush1.bf16.msra.mxu0 %v7204_v59  ;;  %v8425_v60 = vpack.c.bf16 %v3493_v0, %v3489_v9  ;;  %v2972_v29 = vadd.f32 %v2971_v52, %v2859_v39  ;;  %v2758_v59 = vadd.f32 %v8317_v55, %v2645_v49  ;;  %v7216_v49 = vld [vmem:[#allocation10 + $0x48] ss:$16 sps:$4 sm:$0xff]  }
 0x26d   :  { %v2862_v37 = vpop.f32.mrf.mxu0  ;;  %v2975_v34 = vpop.f32.mrf.mxu1  ;;  %4596 = vmatprep.subr.bf16.mxu0 %v7209_v63  ;;  %v3496_v52 = vmax.f32 %v2970_v17, 0.0 }
 0x26e   :  { %v2974_v6 = vadd.f32 %v2973_v50, %v2861_v38  ;;  %v2863_v12 = vadd.f32 %v2862_v37, %v2750_v15  ;;  %4408 = vmatprep.mubr.bf16.mxu0 %v8425_v60  ;;  %v3497_v53 = vmax.f32 %v2972_v29, 0.0  ;;  %v7218_v50 = vld [vmem:[#allocation10 + $0x4c] ss:$16 sps:$4 sm:$0xff]  }
 0x26f   :  { %v2866_v16 = vpop.f32.mrf.mxu0  ;;  %v2979_v22 = vpop.f32.mrf.mxu1  ;;  %4409 = vmatmul.mubr.bf16.gmra.mxu0 %v8427_v51 }
 0x270   :  { %v2976_v62 = vadd.f32 %v2975_v34, %v2863_v12  ;;  %4597 = vmatpush1.bf16.msra.mxu0 %v7207_v42  ;;  %v3500_v28 = vmax.f32 %v2974_v6, 0.0  ;;  %v2867_v63 = vadd.f32 %v2866_v16, %v8312_v13  ;;  %v2657_v34 = vadd.f32 %v8339_v18, %v8251_v26 }
 0x271   :  { %v2868_v41 = vpop.f32.mrf.mxu0  ;;  %v2981_v5 = vpop.f32.mrf.mxu1  ;;  %4598 = vmatprep.subr.bf16.mxu0 %v7212_v7 }
 0x272   :  { %v3501_v43 = vmax.f32 %v2976_v62, 0.0  ;;  %v2869_v46 = vadd.f32 %v2868_v41, %v8319_v44  ;;  %v8441_v56 = vpack.c.bf16 %v3500_v28, %v3496_v52  ;;  %v2655_v44 = vadd.f32 %v8333_v30, %v8248_v21  ;;  %v7221_v30 = vld [vmem:[#allocation10 + $0x2c] ss:$16 sps:$4 sm:$0xff]  }
 0x273   :  { %v2870_v23 = vpop.f32.mrf.mxu0  ;;  %v2983_v9 = vpop.f32.mrf.mxu1  ;;  %v2980_v47 = vadd.f32 %v2979_v22, %v2867_v63  ;;  %v2770_v18 = vadd.f32 %v8341_v19, %v2657_v34 }
 0x274   :  { %v2871_v0 = vadd.f32 %v2870_v23, %v2758_v59  ;;  %4599 = vmatpush1.bf16.msra.mxu0 %v7210_v61  ;;  %v8439_v39 = vpack.c.bf16 %v3501_v43, %v3497_v53  ;;  %v2982_v15 = vadd.f32 %v2981_v5, %v2869_v46  ;;  %v2768_v17 = vadd.f32 %v8335_v40, %v2655_v44  ;;  %v7219_v59 = vld [vmem:[#allocation10 + $0x28] ss:$16 sps:$4 sm:$0xff]   ;;  %v7224_v46 = vld [vmem:[#allocation10 + $0xc] ss:$16 sps:$4 sm:$0xff]  }
 0x275   :  { %v2872_v11 = vpop.f32.mrf.mxu0  ;;  %v2985_v55 = vpop.f32.mrf.mxu1  ;;  %4600 = vmatprep.subr.bf16.mxu0 %v7215_v54  ;;  %v3504_v62 = vmax.f32 %v2980_v47, 0.0 }
 0x276   :  { %v2984_v13 = vadd.f32 %v2983_v9, %v2871_v0  ;;  %v2873_v38 = vadd.f32 %v2872_v11, %v2760_v45  ;;  %4418 = vmatprep.mubr.bf16.mxu0 %v8439_v39  ;;  %v3505_v16 = vmax.f32 %v2982_v15, 0.0  ;;  %v2667_v45 = vadd.f32 %v8357_v32, %v8251_v26 }
 0x277   :  { %v2876_v42 = vpop.f32.mrf.mxu0  ;;  %v2989_v37 = vpop.f32.mrf.mxu1  ;;  %4419 = vmatmul.mubr.bf16.gmra.mxu0 %v8441_v56 }
 0x278   :  { %v2986_v7 = vadd.f32 %v2985_v55, %v2873_v38  ;;  %4601 = vmatpush1.bf16.msra.mxu0 %v7213_v14  ;;  %v3508_v29 = vmax.f32 %v2984_v13, 0.0  ;;  %v2877_v61 = vadd.f32 %v2876_v42, %v8330_v36  ;;  %v7222_v14 = vld [vmem:[#allocation10 + $0x8] ss:$16 sps:$4 sm:$0xff]   ;;  %v2780_v32 = vadd.f32 %v8359_v24, %v2667_v45 }
 0x279   :  { %v2878_v6 = vpop.f32.mrf.mxu0  ;;  %v2991_v12 = vpop.f32.mrf.mxu1  ;;  %4602 = vmatprep.subr.bf16.mxu0 %v7218_v50 }
 0x27a   :  { %v3509_v33 = vmax.f32 %v2986_v7, 0.0  ;;  %v2879_v22 = vadd.f32 %v2878_v6, %v8337_v31  ;;  %v8455_v53 = vpack.c.bf16 %v3508_v29, %v3504_v62  ;;  %v2665_v31 = vadd.f32 %v8351_v8, %v8248_v21  ;;  %v7227_v8 = vld [vmem:[#allocation10 + $0x1ec] ss:$16 sps:$4 sm:$0xff]   ;;  %v7225_v29 = vld [vmem:[#allocation10 + $0x1e8] ss:$16 sps:$4 sm:$0xff]  }
 0x27b   :  { %v2880_v28 = vpop.f32.mrf.mxu0  ;;  %v2993_v41 = vpop.f32.mrf.mxu1  ;;  %v2990_v19 = vadd.f32 %v2989_v37, %v2877_v61  ;;  %v2677_v62 = vadd.f32 %v8375_v10, %v8251_v26 }
 0x27c   :  { %v2881_v5 = vadd.f32 %v2880_v28, %v2768_v17  ;;  %4603 = vmatpush1.bf16.msra.mxu0 %v7216_v49  ;;  %v8453_v54 = vpack.c.bf16 %v3509_v33, %v3505_v16  ;;  %v2992_v52 = vadd.f32 %v2991_v12, %v2879_v22  ;;  %v2778_v44 = vadd.f32 %v8353_v2, %v2665_v31  ;;  %v7228_v28 = vld [vmem:[#allocation10 + $0x1c8] ss:$16 sps:$4 sm:$0xff]  }
 0x27d   :  { %v2882_v43 = vpop.f32.mrf.mxu0  ;;  %v2995_v40 = vpop.f32.mrf.mxu1  ;;  %4604 = vmatprep.subr.bf16.mxu0 %v7221_v30  ;;  %v3512_v47 = vmax.f32 %v2990_v19, 0.0  ;;  %v7230_v30 = vld [vmem:[#allocation10 + $0x1cc] ss:$16 sps:$4 sm:$0xff]   ;;  %v2790_v10 = vadd.f32 %v8377_v27, %v2677_v62 }
 0x27e   :  { %v2994_v36 = vadd.f32 %v2993_v41, %v2881_v5  ;;  %v2883_v63 = vadd.f32 %v2882_v43, %v2770_v18  ;;  %4428 = vmatprep.mubr.bf16.mxu0 %v8453_v54  ;;  %v3513_v15 = vmax.f32 %v2992_v52, 0.0  ;;  %v9212_v62 = vld [vmem:[#allocation26_spill] sm:$0xff] }
 0x27f   :  { %v2886_v23 = vpop.f32.mrf.mxu0  ;;  %v2999_v9 = vpop.f32.mrf.mxu1  ;;  %4429 = vmatmul.mubr.bf16.gmra.mxu0 %v8455_v53 }
 0x280   :  { %v2996_v0 = vadd.f32 %v2995_v40, %v2883_v63  ;;  %4605 = vmatpush1.bf16.msra.mxu0 %v7219_v59  ;;  %v3516_v11 = vmax.f32 %v2994_v36, 0.0  ;;  %v2887_v42 = vadd.f32 %v2886_v23, %v8348_v4 }
 0x281   :  { %v2888_v55 = vpop.f32.mrf.mxu0  ;;  %v3001_v50 = vpop.f32.mrf.mxu1  ;;  %4606 = vmatprep.subr.bf16.mxu0 %v7224_v46 }
 0x282   :  { %v3517_v13 = vmax.f32 %v2996_v0, 0.0  ;;  %v2889_v38 = vadd.f32 %v2888_v55, %v8355_v48  ;;  %v8469_v6 = vpack.c.bf16 %v3516_v11, %v3512_v47  ;;  %v2675_v48 = vadd.f32 %v8369_v1, %v8248_v21  ;;  %v7233_v1 = vld [vmem:[#allocation10 + $0x1ac] ss:$16 sps:$4 sm:$0xff]  }
 0x283   :  { %v2890_v37 = vpop.f32.mrf.mxu0  ;;  %v3003_v34 = vpop.f32.mrf.mxu1  ;;  %v3000_v24 = vadd.f32 %v2999_v9, %v2887_v42  ;;  %v7231_v9 = vld [vmem:[#allocation10 + $0x1a8] ss:$16 sps:$4 sm:$0xff]  }
 0x284   :  { %v2891_v7 = vadd.f32 %v2890_v37, %v2778_v44  ;;  %4607 = vmatpush1.bf16.msra.mxu0 %v7222_v14  ;;  %v8467_v49 = vpack.c.bf16 %v3517_v13, %v3513_v15  ;;  %v3002_v17 = vadd.f32 %v3001_v50, %v2889_v38  ;;  %v2788_v59 = vadd.f32 %v8371_v20, %v2675_v48  ;;  %v7236_v14 = vld [vmem:[#allocation10 + $0x18c] ss:$16 sps:$4 sm:$0xff]   ;;  %v9207_v44 = vld [vmem:[#allocation31_spill] sm:$0xff]  ;;  %v7234_v38 = vld [vmem:[#allocation10 + $0x188] ss:$16 sps:$4 sm:$0xff]  }
 0x285   :  { %v2892_v12 = vpop.f32.mrf.mxu0  ;;  %v3005_v2 = vpop.f32.mrf.mxu1  ;;  %4608 = vmatprep.subr.bf16.mxu0 %v7227_v8  ;;  %v3520_v31 = vmax.f32 %v3000_v24, 0.0  ;;  %v2687_v15 = vadd.f32 %v9207_v44, %v8251_v26  ;;  %v9211_v26 = vld [vmem:[#allocation29_spill] sm:$0xff] }
 0x286   :  { %v3004_v4 = vadd.f32 %v3003_v34, %v2891_v7  ;;  %v2893_v16 = vadd.f32 %v2892_v12, %v2780_v32  ;;  %4438 = vmatprep.mubr.bf16.mxu0 %v8467_v49  ;;  %v3521_v43 = vmax.f32 %v3002_v17, 0.0 }
 0x287   :  { %v2896_v33 = vpop.f32.mrf.mxu0  ;;  %v3009_v22 = vpop.f32.mrf.mxu1  ;;  %4439 = vmatmul.mubr.bf16.gmra.mxu0 %v8469_v6 }
 0x288   :  { %v3006_v61 = vadd.f32 %v3005_v2, %v2893_v16  ;;  %4609 = vmatpush2.bf16.msra.mxu0 %v7225_v29  ;;  %v3524_v41 = vmax.f32 %v3004_v4, 0.0  ;;  %v2897_v52 = vadd.f32 %v2896_v33, %v8366_v57  ;;  %v9209_v29 = vld [vmem:[#allocation30_spill] sm:$0xff]  ;;  %v2800_v16 = vadd.f32 %v9211_v26, %v2687_v15 }
 0x289   :  { %v2898_v18 = vpop.f32.mrf.mxu0  ;;  %v3011_v5 = vpop.f32.mrf.mxu1  ;;  %4610 = vmatprep.subr.bf16.mxu0 %v7230_v30  ;;  %v9210_v30 = vld [vmem:[#allocation28_spill] sm:$0xff] }
 0x28a   :  { %v3525_v40 = vmax.f32 %v3006_v61, 0.0  ;;  %v2899_v46 = vadd.f32 %v2898_v18, %v8373_v35  ;;  %v8483_v45 = vpack.c.bf16 %v3524_v41, %v3520_v31  ;;  %v2685_v35 = vadd.f32 %v8385_v58, %v8248_v21  ;;  %v7239_v21 = vld [vmem:[#allocation10 + $0x16c] ss:$16 sps:$4 sm:$0xff]   ;;  %v9208_v58 = vld [vmem:[#allocation27_spill] sm:$0xff] }
 0x28b   :  { %v2900_v36 = vpop.f32.mrf.mxu0  ;;  %v3013_v63 = vpop.f32.mrf.mxu1  ;;  %v3010_v27 = vadd.f32 %v3009_v22, %v2897_v52  ;;  %v7465_v22 = vld [vmem:[%s9130_s4] sm:$0xf] }
 0x28c   :  { %v2901_v19 = vadd.f32 %v2900_v36, %v2788_v59  ;;  %4611 = vmatpush2.bf16.msra.mxu0 %v7228_v28  ;;  %v8481_v23 = vpack.c.bf16 %v3525_v40, %v3521_v43  ;;  %v3012_v11 = vadd.f32 %v3011_v5, %v2899_v46  ;;  %v2798_v34 = vadd.f32 %v9208_v58, %v2685_v35  ;;  %v7237_v28 = vld [vmem:[#allocation10 + $0x168] ss:$16 sps:$4 sm:$0xff]   ;;  %v9213_v46 = vld [vmem:[#allocation25_spill] sm:$0xff] }
 0x28d   :  { %v2902_v0 = vpop.f32.mrf.mxu0  ;;  %v3015_v20 = vpop.f32.mrf.mxu1  ;;  %4612 = vmatprep.subr.bf16.mxu0 %v7233_v1  ;;  %v3528_v2 = vmax.f32 %v3010_v27, 0.0  ;;  %v8501_v61 = vrot.slane %v7465_v22, %v9212_v62  ;;  %v7242_v1 = vld [vmem:[#allocation10 + $0x14c] ss:$16 sps:$4 sm:$0xff]   ;;  %v8507_v31 = vrot.slane %v7465_v22, %v9213_v46 }
 0x28e   :  { %v3014_v57 = vadd.f32 %v3013_v63, %v2901_v19  ;;  %v2903_v55 = vadd.f32 %v2902_v0, %v2790_v10  ;;  %4448 = vmatprep.mubr.bf16.mxu0 %v8481_v23  ;;  %v3529_v32 = vmax.f32 %v3012_v11, 0.0 }
 0x28f   :  { %v2906_v50 = vpop.f32.mrf.mxu0  ;;  %v3019_v8 = vpop.f32.mrf.mxu1  ;;  %4449 = vmatmul.mubr.bf16.gmra.mxu0 %v8483_v45 }
 0x290   :  { %v3016_v13 = vadd.f32 %v3015_v20, %v2903_v55  ;;  %4613 = vmatpush2.bf16.msra.mxu0 %v7231_v9  ;;  %v3532_v47 = vmax.f32 %v3014_v57, 0.0  ;;  %v2907_v48 = vadd.f32 %v2906_v50, %v9210_v30  ;;  %v7240_v9 = vld [vmem:[#allocation10 + $0x148] ss:$16 sps:$4 sm:$0xff]  }
 0x291   :  { %v2908_v42 = vpop.f32.mrf.mxu0  ;;  %v3021_v37 = vpop.f32.mrf.mxu1  ;;  %4614 = vmatprep.subr.bf16.mxu0 %v7236_v14  ;;  %v7245_v14 = vld [vmem:[#allocation10 + $0x12c] ss:$16 sps:$4 sm:$0xff]  }
 0x292   :  { %v3533_v7 = vmax.f32 %v3016_v13, 0.0  ;;  %v2909_v12 = vadd.f32 %v2908_v42, %v9209_v29  ;;  %v8503_v41 = vpack.c.bf16 %v3532_v47, %v3528_v2  ;;  %v3020_v52 = vadd.f32 %v3019_v8, %v2907_v48 }
 0x293   :  { %v2910_v17 = vpop.f32.mrf.mxu0  ;;  %v3023_v4 = vpop.f32.mrf.mxu1 }
 0x294   :  { %v2911_v24 = vadd.f32 %v2910_v17, %v2798_v34  ;;  %4615 = vmatpush2.bf16.msra.mxu0 %v7234_v38  ;;  %v8495_v33 = vpack.c.bf16 %v3533_v7, %v3529_v32  ;;  %v3022_v59 = vadd.f32 %v3021_v37, %v2909_v12  ;;  %v3536_v50 = vmax.f32 %v3020_v52, 0.0  ;;  %v7243_v38 = vld [vmem:[#allocation10 + $0x128] ss:$16 sps:$4 sm:$0xff]   ;;  %v7248_v37 = vld [vmem:[#allocation10 + $0x10c] ss:$16 sps:$4 sm:$0xff]  }
 0x295   :  { %v2912_v18 = vpop.f32.mrf.mxu0  ;;  %v3025_v5 = vpop.f32.mrf.mxu1  ;;  %4616 = vmatprep.subr.bf16.mxu0 %v7239_v21  ;;  %v7246_v7 = vld [vmem:[#allocation10 + $0x108] ss:$16 sps:$4 sm:$0xff]  }
 0x296   :  { %v3024_v43 = vadd.f32 %v3023_v4, %v2911_v24  ;;  %v2913_v40 = vadd.f32 %v2912_v18, %v2800_v16  ;;  %4458 = vmatprep.mubr.bf16.mxu0 %v8495_v33  ;;  %v3537_v35 = vmax.f32 %v3022_v59, 0.0 }
 0x297   :  { %v3062_v36 = vpop.f32.mrf.mxu0  ;;  %4459 = vmatmul.mubr.bf16.gmra.mxu0 %v8503_v41 }
 0x298   :  { %v3026_v63 = vadd.f32 %v3025_v5, %v2913_v40  ;;  %v3063_v10 = vadd.f32 %v3062_v36, %v8501_v61  ;;  %v3175_v19 = vpop.f32.mrf.mxu1  ;;  %4617 = vmatpush2.bf16.msra.mxu0 %v7237_v28  ;;  %v3540_v0 = vmax.f32 %v3024_v43, 0.0 }
 0x299   :  { %v3064_v20 = vpop.f32.mrf.mxu0  ;;  %4618 = vmatprep.subr.bf16.mxu0 %v7242_v1 }
 0x29a   :  { %v3541_v11 = vmax.f32 %v3026_v63, 0.0  ;;  %v8511_v57 = vadd.f32 %v3175_v19, %v3063_v10  ;;  %v3065_v55 = vadd.f32 %v3064_v20, %v8507_v31  ;;  %v3177_v27 = vpop.f32.mrf.mxu1  ;;  %v8522_v47 = vpack.c.bf16 %v3540_v0, %v3536_v50 }
 0x29b   :  { %v8514_v8 = vpop.f32.mrf.mxu0 }
 0x29c   :  { %v8516_v44 = vadd.f32 %v3177_v27, %v3065_v55  ;;  %v8518_v15 = vpop.f32.mrf.mxu1  ;;  %4619 = vmatpush2.bf16.msra.mxu0 %v7240_v9  ;;  %v8520_v13 = vpack.c.bf16 %v3541_v11, %v3537_v35 }
 0x29d   :  { %v8524_v42 = vpop.f32.mrf.mxu0  ;;  %4620 = vmatprep.subr.bf16.mxu0 %v7245_v14 }
 0x29e   :  { %v8526_v21 = vpop.f32.mrf.mxu1  ;;  %4468 = vmatprep.mubr.bf16.mxu0 %v8520_v13 }
 0x29f   :  { %v3072_v58 = vpop.f32.mrf.mxu0  ;;  %4469 = vmatmul.mubr.bf16.gmra.mxu0 %v8522_v47 }
 0x2a0   :  { %v3073_v34 = vadd.f32 %v3072_v58, %v8501_v61  ;;  %v3185_v32 = vpop.f32.mrf.mxu1  ;;  %4621 = vmatpush2.bf16.msra.mxu0 %v7243_v38  ;;  %4624 = vmatprep.mubr.bf16.mxu0 %v8411_v3 }
 0x2a1   :  { %v3074_v29 = vpop.f32.mrf.mxu0  ;;  %4622 = vmatprep.subr.bf16.mxu0 %v7248_v37 }
 0x2a2   :  { %v8532_v12 = vadd.f32 %v3185_v32, %v3073_v34  ;;  %v3075_v2 = vadd.f32 %v3074_v29, %v8507_v31  ;;  %v3187_v30 = vpop.f32.mrf.mxu1 }
 0x2a3   :  { %v8535_v48 = vpop.f32.mrf.mxu0 }
 0x2a4   :  { %v8537_v17 = vadd.f32 %v3187_v30, %v3075_v2  ;;  %v8539_v4 = vpop.f32.mrf.mxu1  ;;  %4623 = vmatpush2.bf16.msra.mxu0 %v7246_v7 }
 0x2a5   :  { %v8541_v26 = vpop.f32.mrf.mxu0 }
 0x2a6   :  { %v8543_v16 = vpop.f32.mrf.mxu1 }
 0x2a7   :  { %v3082_v3 = vpop.f32.mrf.mxu0  ;;  %4625 = vmatmul.mubr.bf16.vlgmr.msra.gmra.mxu0 %v8413_v25 }
 0x2a8   :  { %v3083_v24 = vadd.f32 %v3082_v3, %v8501_v61  ;;  %v3195_v22 = vpop.f32.mrf.mxu1  ;;  %4634 = vmatprep.mubr.bf16.mxu0 %v8425_v60 }
 0x2a9   :  { %v3084_v28 = vpop.f32.mrf.mxu0 }
 0x2aa   :  { %v8548_v18 = vadd.f32 %v3195_v22, %v3083_v24  ;;  %v3085_v5 = vadd.f32 %v3084_v28, %v8507_v31  ;;  %v3197_v1 = vpop.f32.mrf.mxu1 }
 0x2ab   :  { %v8551_v59 = vpop.f32.mrf.mxu0 }
 0x2ac   :  { %v8553_v43 = vadd.f32 %v3197_v1, %v3085_v5  ;;  %v8555_v40 = vpop.f32.mrf.mxu1 }
 0x2ad   :  { %v8557_v52 = vpop.f32.mrf.mxu0 }
 0x2ae   :  { %v8559_v25 = vpop.f32.mrf.mxu1 }
 0x2af   :  { %v3092_v36 = vpop.f32.mrf.mxu0  ;;  %4635 = vmatmul.mubr.bf16.gmra.mxu0 %v8427_v51 }
 0x2b0   :  { %v3093_v60 = vadd.f32 %v3092_v36, %v8501_v61  ;;  %v3205_v63 = vpop.f32.mrf.mxu1  ;;  %4644 = vmatprep.mubr.bf16.mxu0 %v8439_v39 }
 0x2b1   :  { %v3094_v10 = vpop.f32.mrf.mxu0 }
 0x2b2   :  { %v8564_v19 = vadd.f32 %v3205_v63, %v3093_v60  ;;  %v3095_v9 = vadd.f32 %v3094_v10, %v8507_v31  ;;  %v3207_v0 = vpop.f32.mrf.mxu1 }
 0x2b3   :  { %v8567_v20 = vpop.f32.mrf.mxu0 }
 0x2b4   :  { %v8569_v14 = vadd.f32 %v3207_v0, %v3095_v9  ;;  %v8571_v35 = vpop.f32.mrf.mxu1 }
 0x2b5   :  { %v8573_v11 = vpop.f32.mrf.mxu0 }
 0x2b6   :  { %v8575_v51 = vpop.f32.mrf.mxu1 }
 0x2b7   :  { %v3102_v55 = vpop.f32.mrf.mxu0  ;;  %4645 = vmatmul.mubr.bf16.gmra.mxu0 %v8441_v56 }
 0x2b8   :  { %v3103_v39 = vadd.f32 %v3102_v55, %v8501_v61  ;;  %v3215_v27 = vpop.f32.mrf.mxu1  ;;  %4654 = vmatprep.mubr.bf16.mxu0 %v8453_v54 }
 0x2b9   :  { %v3104_v50 = vpop.f32.mrf.mxu0 }
 0x2ba   :  { %v8580_v38 = vadd.f32 %v3215_v27, %v3103_v39  ;;  %v3105_v37 = vadd.f32 %v3104_v50, %v8507_v31  ;;  %v3217_v58 = vpop.f32.mrf.mxu1 }
 0x2bb   :  { %v8583_v34 = vpop.f32.mrf.mxu0 }
 0x2bc   :  { %v8585_v32 = vadd.f32 %v3217_v58, %v3105_v37  ;;  %v8587_v7 = vpop.f32.mrf.mxu1 }
 0x2bd   :  { %v8589_v29 = vpop.f32.mrf.mxu0 }
 0x2be   :  { %v8591_v56 = vpop.f32.mrf.mxu1 }
 0x2bf   :  { %v3112_v2 = vpop.f32.mrf.mxu0  ;;  %4655 = vmatmul.mubr.bf16.gmra.mxu0 %v8455_v53 }
 0x2c0   :  { %v3113_v54 = vadd.f32 %v3112_v2, %v8501_v61  ;;  %v3225_v30 = vpop.f32.mrf.mxu1  ;;  %4664 = vmatprep.mubr.bf16.mxu0 %v8467_v49 }
 0x2c1   :  { %v3114_v3 = vpop.f32.mrf.mxu0 }
 0x2c2   :  { %v8596_v24 = vadd.f32 %v3225_v30, %v3113_v54  ;;  %v3115_v22 = vadd.f32 %v3114_v3, %v8507_v31  ;;  %v3227_v28 = vpop.f32.mrf.mxu1 }
 0x2c3   :  { %v8599_v5 = vpop.f32.mrf.mxu0 }
 0x2c4   :  { %v8601_v1 = vadd.f32 %v3227_v28, %v3115_v22  ;;  %v8603_v36 = vpop.f32.mrf.mxu1 }
 0x2c5   :  { %v8605_v60 = vpop.f32.mrf.mxu0 }
 0x2c6   :  { %v8607_v53 = vpop.f32.mrf.mxu1 }
 0x2c7   :  { %v3122_v63 = vpop.f32.mrf.mxu0  ;;  %4665 = vmatmul.mubr.bf16.gmra.mxu0 %v8469_v6 }
 0x2c8   :  { %v3123_v49 = vadd.f32 %v3122_v63, %v8501_v61  ;;  %v3235_v10 = vpop.f32.mrf.mxu1  ;;  %4674 = vmatprep.mubr.bf16.mxu0 %v8481_v23 }
 0x2c9   :  { %v3124_v9 = vpop.f32.mrf.mxu0 }
 0x2ca   :  { %v8612_v0 = vadd.f32 %v3235_v10, %v3123_v49  ;;  %v3125_v55 = vadd.f32 %v3124_v9, %v8507_v31  ;;  %v3237_v39 = vpop.f32.mrf.mxu1 }
 0x2cb   :  { %v8615_v27 = vpop.f32.mrf.mxu0 }
 0x2cc   :  { %v8617_v50 = vadd.f32 %v3237_v39, %v3125_v55  ;;  %v8619_v37 = vpop.f32.mrf.mxu1  ;;  %v3067_v55 = vadd.f32 %v8514_v8, %v8501_v61 }
 0x2cd   :  { %v8621_v58 = vpop.f32.mrf.mxu0 }
 0x2ce   :  { %v8623_v6 = vpop.f32.mrf.mxu1 }
 0x2cf   :  { %v3132_v2 = vpop.f32.mrf.mxu0  ;;  %4675 = vmatmul.mubr.bf16.gmra.mxu0 %v8483_v45 }
 0x2d0   :  { %v3133_v23 = vadd.f32 %v3132_v2, %v8501_v61  ;;  %v3245_v54 = vpop.f32.mrf.mxu1  ;;  %4684 = vmatprep.mubr.bf16.mxu0 %v8495_v33  ;;  %v3069_v2 = vadd.f32 %v8524_v42, %v8507_v31 }
 0x2d1   :  { %v3134_v30 = vpop.f32.mrf.mxu0 }
 0x2d2   :  { %v8628_v3 = vadd.f32 %v3245_v54, %v3133_v23  ;;  %v3135_v22 = vadd.f32 %v3134_v30, %v8507_v31  ;;  %v3247_v28 = vpop.f32.mrf.mxu1  ;;  %v3180_v30 = vadd.f32 %v8518_v15, %v3067_v55  ;;  %v3182_v8 = vadd.f32 %v8526_v21, %v3069_v2 }
 0x2d3   :  { %v8631_v63 = vpop.f32.mrf.mxu0 }
 0x2d4   :  { %9214 = vst [vmem:[#allocation32_spill] sm:$0xff] %v8628_v3  ;;  %v8633_v49 = vadd.f32 %v3247_v28, %v3135_v22  ;;  %v8635_v10 = vpop.f32.mrf.mxu1 }
 0x2d5   :  { %9216 = vst [vmem:[#allocation34_spill] sm:$0xff] %v8635_v10  ;;  %v8637_v9 = vpop.f32.mrf.mxu0 }
 0x2d6   :  { %9215 = vst [vmem:[#allocation33_spill] sm:$0xff] %v8633_v49  ;;  %9217 = vst [vmem:[#allocation36_spill] sm:$0xff] %v8637_v9  ;;  %v8639_v45 = vpop.f32.mrf.mxu1 }
 0x2d7   :  { %9218 = vst [vmem:[#allocation37_spill] sm:$0xff] %v8639_v45  ;;  %4685 = vmatmul.mubr.bf16.gmra.mxu0 %v8503_v41 }
 0x2d8   :  { %v3288_v33 = vpop.f32.mrf.mxu0  ;;  %v3401_v39 = vpop.f32.mrf.mxu1  ;;  %4694 = vmatprep.mubr.bf16.mxu0 %v8520_v13  ;;  %v3077_v13 = vadd.f32 %v8535_v48, %v8501_v61 }
 0x2d9   :  { %v3289_v28 = vadd.f32 %v3288_v33, %v8511_v57  ;;  %v3079_v57 = vadd.f32 %v8541_v26, %v8507_v31  ;;  %v7297_v26 = vld [vmem:[#allocation10 + $0x2e8] ss:$16 sps:$4 sm:$0xff]  }
 0x2da   :  { %v3290_v23 = vpop.f32.mrf.mxu0  ;;  %v3403_v54 = vpop.f32.mrf.mxu1  ;;  %v3190_v2 = vadd.f32 %v8539_v4, %v3077_v13  ;;  %v7302_v4 = vld [vmem:[#allocation10 + $0x2cc] ss:$16 sps:$4 sm:$0xff]  }
 0x2db   :  { %v3291_v22 = vadd.f32 %v3290_v23, %v8516_v44  ;;  %v3402_v15 = vadd.f32 %v3401_v39, %v3289_v28 }
 0x2dc   :  { %v3292_v62 = vpop.f32.mrf.mxu0  ;;  %v3405_v46 = vpop.f32.mrf.mxu1 }
 0x2dd   :  { %v3293_v41 = vadd.f32 %v3292_v62, %v3180_v30  ;;  %v3404_v49 = vadd.f32 %v3403_v54, %v3291_v22  ;;  %v3192_v54 = vadd.f32 %v8543_v16, %v3079_v57 }
 0x2de   :  { %v3294_v45 = vpop.f32.mrf.mxu0  ;;  %v3407_v3 = vpop.f32.mrf.mxu1 }
 0x2df   :  { %v3406_v42 = vadd.f32 %v3405_v46, %v3293_v41  ;;  %v3295_v10 = vadd.f32 %v3294_v45, %v3182_v8  ;;  %4695 = vmatmul.mubr.bf16.gmra.mxu0 %v8522_v47  ;;  %v3483_v30 = vmax.f32 %v3404_v49, 0.0  ;;  %v3482_v46 = vmax.f32 %v3402_v15, 0.0 }
 0x2e0   :  { %v3298_v55 = vpop.f32.mrf.mxu0  ;;  %v3411_v44 = vpop.f32.mrf.mxu1  ;;  %v3087_v49 = vadd.f32 %v8551_v59, %v8501_v61  ;;  %v7305_v59 = vld [vmem:[#allocation10 + $0x2ac] ss:$16 sps:$4 sm:$0xff]  }
 0x2e1   :  { %v3408_v33 = vadd.f32 %v3407_v3, %v3295_v10  ;;  %v3486_v23 = vmax.f32 %v3406_v42, 0.0  ;;  %v3299_v45 = vadd.f32 %v3298_v55, %v8532_v12  ;;  %v7300_v55 = vld [vmem:[#allocation10 + $0x2c8] ss:$16 sps:$4 sm:$0xff]  }
 0x2e2   :  { %v3300_v21 = vpop.f32.mrf.mxu0  ;;  %v3413_v62 = vpop.f32.mrf.mxu1 }
 0x2e3   :  { %v3487_v9 = vmax.f32 %v3408_v33, 0.0  ;;  %v3301_v48 = vadd.f32 %v3300_v21, %v8537_v17  ;;  %v8662_v3 = vpack.c.bf16 %v3486_v23, %v3482_v46  ;;  %v3412_v12 = vadd.f32 %v3411_v44, %v3299_v45 }
 0x2e4   :  { %v3302_v47 = vpop.f32.mrf.mxu0  ;;  %v3415_v39 = vpop.f32.mrf.mxu1  ;;  %v3200_v21 = vadd.f32 %v8555_v40, %v3087_v49 }
 0x2e5   :  { %v3303_v22 = vadd.f32 %v3302_v47, %v3190_v2  ;;  %v8660_v28 = vpack.c.bf16 %v3487_v9, %v3483_v30  ;;  %v3414_v17 = vadd.f32 %v3413_v62, %v3301_v48  ;;  %v3089_v9 = vadd.f32 %v8557_v52, %v8507_v31 }
 0x2e6   :  { %v3304_v10 = vpop.f32.mrf.mxu0  ;;  %v3417_v8 = vpop.f32.mrf.mxu1  ;;  %v3490_v30 = vmax.f32 %v3412_v12, 0.0  ;;  %v7306_v12 = vld [vmem:[#allocation10 + $0x288] ss:$16 sps:$4 sm:$0xff]  }
 0x2e7   :  { %v3416_v41 = vadd.f32 %v3415_v39, %v3303_v22  ;;  %v3305_v13 = vadd.f32 %v3304_v10, %v3192_v54  ;;  %4511 = vmatprep.mubr.bf16.mxu1 %v8660_v28  ;;  %v3491_v62 = vmax.f32 %v3414_v17, 0.0  ;;  %v3202_v52 = vadd.f32 %v8559_v25, %v3089_v9  ;;  %v7303_v54 = vld [vmem:[#allocation10 + $0x2a8] ss:$16 sps:$4 sm:$0xff]   ;;  %v7308_v10 = vld [vmem:[#allocation10 + $0x28c] ss:$16 sps:$4 sm:$0xff]  }
 0x2e8   :  { %v3308_v42 = vpop.f32.mrf.mxu0  ;;  %v3421_v16 = vpop.f32.mrf.mxu1  ;;  %4512 = vmatmul.mubr.bf16.vlgmr.msra.gmra.mxu1 %v8662_v3 }
 0x2e9   :  { %v3418_v15 = vadd.f32 %v3417_v8, %v3305_v13  ;;  %4706 = vmatpush1.bf16.msra.mxu1 %v7297_v26  ;;  %v3494_v57 = vmax.f32 %v3416_v41, 0.0  ;;  %v3309_v48 = vadd.f32 %v3308_v42, %v8548_v18  ;;  %v3099_v41 = vadd.f32 %v8573_v11, %v8507_v31  ;;  %v7347_v11 = vld [vmem:[#allocation11 + $0x74] ss:$8 sps:$4 sm:$0xff]  }
 0x2ea   :  { %v3310_v33 = vpop.f32.mrf.mxu0  ;;  %v3423_v23 = vpop.f32.mrf.mxu1  ;;  %4707 = vmatprep.subr.bf16.mxu1 %v7302_v4  ;;  %5310 = vmatprep.subr.bf16.mxu0 %v7347_v11 }
 0x2eb   :  { %v3495_v2 = vmax.f32 %v3418_v15, 0.0  ;;  %v3311_v44 = vadd.f32 %v3310_v33, %v8553_v43  ;;  %v8676_v22 = vpack.c.bf16 %v3494_v57, %v3490_v30  ;;  %v3097_v43 = vadd.f32 %v8567_v20, %v8501_v61  ;;  %v7311_v20 = vld [vmem:[#allocation10 + $0x26c] ss:$16 sps:$4 sm:$0xff]  }
 0x2ec   :  { %v3312_v46 = vpop.f32.mrf.mxu0  ;;  %v3425_v45 = vpop.f32.mrf.mxu1  ;;  %v3422_v25 = vadd.f32 %v3421_v16, %v3309_v48  ;;  %v7309_v48 = vld [vmem:[#allocation10 + $0x268] ss:$16 sps:$4 sm:$0xff]  }
 0x2ed   :  { %v3313_v47 = vadd.f32 %v3312_v46, %v3200_v21  ;;  %4708 = vmatpush1.bf16.msra.mxu1 %v7300_v55  ;;  %v8674_v39 = vpack.c.bf16 %v3495_v2, %v3491_v62  ;;  %v3424_v8 = vadd.f32 %v3423_v23, %v3311_v44  ;;  %v3210_v55 = vadd.f32 %v8571_v35, %v3097_v43  ;;  %v7345_v46 = vld [vmem:[#allocation11 + $0x70] ss:$8 sps:$4 sm:$0xff]   ;;  %v7350_v43 = vld [vmem:[#allocation11 + $0x64] ss:$8 sps:$4 sm:$0xff]  }
 0x2ee   :  { %v3314_v26 = vpop.f32.mrf.mxu0  ;;  %v3427_v40 = vpop.f32.mrf.mxu1  ;;  %4709 = vmatprep.subr.bf16.mxu1 %v7305_v59  ;;  %v3498_v23 = vmax.f32 %v3422_v25, 0.0  ;;  %v3212_v2 = vadd.f32 %v8575_v51, %v3099_v41  ;;  %v3107_v35 = vadd.f32 %v8583_v34, %v8501_v61  ;;  %5311 = vmatpush1.bf16.msra.mxu0 %v7345_v46  ;;  %v3109_v34 = vadd.f32 %v8589_v29, %v8507_v31 }
 0x2ef   :  { %v3426_v18 = vadd.f32 %v3425_v45, %v3313_v47  ;;  %v3315_v4 = vadd.f32 %v3314_v26, %v3202_v52  ;;  %4521 = vmatprep.mubr.bf16.mxu1 %v8674_v39  ;;  %v3499_v57 = vmax.f32 %v3424_v8, 0.0  ;;  %5312 = vmatprep.subr.bf16.mxu0 %v7350_v43 }
 0x2f0   :  { %v3318_v49 = vpop.f32.mrf.mxu0  ;;  %v3431_v17 = vpop.f32.mrf.mxu1  ;;  %4522 = vmatmul.mubr.bf16.gmra.mxu1 %v8676_v22 }
 0x2f1   :  { %v3428_v13 = vadd.f32 %v3427_v40, %v3315_v4  ;;  %4710 = vmatpush1.bf16.msra.mxu1 %v7303_v54  ;;  %v3502_v42 = vmax.f32 %v3426_v18, 0.0  ;;  %v3319_v59 = vadd.f32 %v3318_v49, %v8564_v19  ;;  %v7314_v19 = vld [vmem:[#allocation10 + $0x24c] ss:$16 sps:$4 sm:$0xff]   ;;  %v7312_v18 = vld [vmem:[#allocation10 + $0x248] ss:$16 sps:$4 sm:$0xff]  }
 0x2f2   :  { %v3320_v9 = vpop.f32.mrf.mxu0  ;;  %v3433_v15 = vpop.f32.mrf.mxu1  ;;  %4711 = vmatprep.subr.bf16.mxu1 %v7308_v10  ;;  %v7348_v4 = vld [vmem:[#allocation11 + $0x60] ss:$8 sps:$4 sm:$0xff]  }
 0x2f3   :  { %v3503_v33 = vmax.f32 %v3428_v13, 0.0  ;;  %v3321_v16 = vadd.f32 %v3320_v9, %v8569_v14  ;;  %v8692_v45 = vpack.c.bf16 %v3502_v42, %v3498_v23  ;;  %v3432_v51 = vadd.f32 %v3431_v17, %v3319_v59  ;;  %v7317_v13 = vld [vmem:[#allocation10 + $0x22c] ss:$16 sps:$4 sm:$0xff]   ;;  %5313 = vmatpush1.bf16.msra.mxu0 %v7348_v4  ;;  %v7315_v59 = vld [vmem:[#allocation10 + $0x228] ss:$16 sps:$4 sm:$0xff]  }
 0x2f4   :  { %v3322_v21 = vpop.f32.mrf.mxu0  ;;  %v3435_v62 = vpop.f32.mrf.mxu1  ;;  %v3220_v17 = vadd.f32 %v8587_v7, %v3107_v35  ;;  %v3117_v7 = vadd.f32 %v8599_v5, %v8501_v61  ;;  %v3119_v5 = vadd.f32 %v8605_v60, %v8507_v31 }
 0x2f5   :  { %v3323_v44 = vadd.f32 %v3322_v21, %v3210_v55  ;;  %4712 = vmatpush1.bf16.msra.mxu1 %v7306_v12  ;;  %v8688_v30 = vpack.c.bf16 %v3503_v33, %v3499_v57  ;;  %v3434_v47 = vadd.f32 %v3433_v15, %v3321_v16  ;;  %v3506_v15 = vmax.f32 %v3432_v51, 0.0  ;;  %v7353_v57 = vld [vmem:[#allocation11 + $0x54] ss:$8 sps:$4 sm:$0xff]   ;;  %v7351_v21 = vld [vmem:[#allocation11 + $0x50] ss:$8 sps:$4 sm:$0xff]  }
 0x2f6   :  { %v3324_v14 = vpop.f32.mrf.mxu0  ;;  %v3437_v52 = vpop.f32.mrf.mxu1  ;;  %4713 = vmatprep.subr.bf16.mxu1 %v7311_v20  ;;  %v3222_v33 = vadd.f32 %v8591_v56, %v3109_v34  ;;  %5314 = vmatprep.subr.bf16.mxu0 %v7353_v57 }
 0x2f7   :  { %v3436_v54 = vadd.f32 %v3435_v62, %v3323_v44  ;;  %v3325_v26 = vadd.f32 %v3324_v14, %v3212_v2  ;;  %4531 = vmatprep.mubr.bf16.mxu1 %v8688_v30  ;;  %v3507_v12 = vmax.f32 %v3434_v47, 0.0  ;;  %5315 = vmatpush1.bf16.msra.mxu0 %v7351_v21  ;;  %v7356_v14 = vld [vmem:[#allocation11 + $0x44] ss:$8 sps:$4 sm:$0xff]   ;;  %v7354_v47 = vld [vmem:[#allocation11 + $0x40] ss:$8 sps:$4 sm:$0xff]  }
 0x2f8   :  { %v3328_v40 = vpop.f32.mrf.mxu0  ;;  %v3441_v10 = vpop.f32.mrf.mxu1  ;;  %4532 = vmatmul.mubr.bf16.gmra.mxu1 %v8692_v45  ;;  %5316 = vmatprep.subr.bf16.mxu0 %v7356_v14  ;;  %v7324_v21 = vld [vmem:[#allocation10 + $0x3c8] ss:$16 sps:$4 sm:$0xff]  }
 0x2f9   :  { %v3438_v8 = vadd.f32 %v3437_v52, %v3325_v26  ;;  %4714 = vmatpush1.bf16.msra.mxu1 %v7309_v48  ;;  %v3510_v25 = vmax.f32 %v3436_v54, 0.0  ;;  %v3329_v29 = vadd.f32 %v3328_v40, %v8580_v38  ;;  %v7320_v38 = vld [vmem:[#allocation10 + $0x20c] ss:$16 sps:$4 sm:$0xff]  }
 0x2fa   :  { %v3330_v49 = vpop.f32.mrf.mxu0  ;;  %v3443_v41 = vpop.f32.mrf.mxu1  ;;  %4715 = vmatprep.subr.bf16.mxu1 %v7314_v19  ;;  %v7318_v19 = vld [vmem:[#allocation10 + $0x208] ss:$16 sps:$4 sm:$0xff]   ;;  %v7323_v40 = vld [vmem:[#allocation10 + $0x3ec] ss:$16 sps:$4 sm:$0xff]  }
 0x2fb   :  { %v3511_v42 = vmax.f32 %v3438_v8, 0.0  ;;  %v3331_v9 = vadd.f32 %v3330_v49, %v8585_v32  ;;  %v8706_v62 = vpack.c.bf16 %v3510_v25, %v3506_v15  ;;  %v3442_v56 = vadd.f32 %v3441_v10, %v3329_v29  ;;  %5317 = vmatpush1.bf16.msra.mxu0 %v7354_v47  ;;  %v7359_v49 = vld [vmem:[#allocation11 + $0x34] ss:$8 sps:$4 sm:$0xff]  }
 0x2fc   :  { %v3332_v20 = vpop.f32.mrf.mxu0  ;;  %v3445_v55 = vpop.f32.mrf.mxu1  ;;  %v3230_v10 = vadd.f32 %v8603_v36, %v3117_v7  ;;  %v3127_v36 = vadd.f32 %v8615_v27, %v8501_v61  ;;  %5318 = vmatprep.subr.bf16.mxu0 %v7359_v49  ;;  %v3129_v27 = vadd.f32 %v8621_v58, %v8507_v31  ;;  %v7360_v7 = vld [vmem:[#allocation11 + $0x20] ss:$8 sps:$4 sm:$0xff]  }
 0x2fd   :  { %v3333_v16 = vadd.f32 %v3332_v20, %v3220_v17  ;;  %4716 = vmatpush1.bf16.msra.mxu1 %v7312_v18  ;;  %v8702_v23 = vpack.c.bf16 %v3511_v42, %v3507_v12  ;;  %v3444_v2 = vadd.f32 %v3443_v41, %v3331_v9  ;;  %v3514_v18 = vmax.f32 %v3442_v56, 0.0  ;;  %v7321_v12 = vld [vmem:[#allocation10 + $0x3e8] ss:$16 sps:$4 sm:$0xff]  }
 0x2fe   :  { %v3334_v32 = vpop.f32.mrf.mxu0  ;;  %v3447_v11 = vpop.f32.mrf.mxu1  ;;  %4717 = vmatprep.subr.bf16.mxu1 %v7317_v13  ;;  %v3232_v41 = vadd.f32 %v8607_v53, %v3119_v5  ;;  %v7357_v42 = vld [vmem:[#allocation11 + $0x30] ss:$8 sps:$4 sm:$0xff]  }
 0x2ff   :  { %v3446_v44 = vadd.f32 %v3445_v55, %v3333_v16  ;;  %v3335_v48 = vadd.f32 %v3334_v32, %v3222_v33  ;;  %4541 = vmatprep.mubr.bf16.mxu1 %v8702_v23  ;;  %v3515_v43 = vmax.f32 %v3444_v2, 0.0  ;;  %5319 = vmatpush1.bf16.msra.mxu0 %v7357_v42  ;;  %v7362_v16 = vld [vmem:[#allocation11 + $0x24] ss:$8 sps:$4 sm:$0xff]   ;;  %v7330_v49 = vld [vmem:[#allocation10 + $0x388] ss:$16 sps:$4 sm:$0xff]  }
 0x300   :  { %v3338_v46 = vpop.f32.mrf.mxu0  ;;  %v3451_v35 = vpop.f32.mrf.mxu1  ;;  %4542 = vmatmul.mubr.bf16.gmra.mxu1 %v8706_v62  ;;  %v7329_v2 = vld [vmem:[#allocation10 + $0x3ac] ss:$16 sps:$4 sm:$0xff]   ;;  %5320 = vmatprep.subr.bf16.mxu0 %v7362_v16 }
 0x301   :  { %v3448_v52 = vadd.f32 %v3447_v11, %v3335_v48  ;;  %4718 = vmatpush1.bf16.msra.mxu1 %v7315_v59  ;;  %v3518_v54 = vmax.f32 %v3446_v44, 0.0  ;;  %v3339_v60 = vadd.f32 %v3338_v46, %v8596_v24  ;;  %v7326_v24 = vld [vmem:[#allocation10 + $0x3cc] ss:$16 sps:$4 sm:$0xff]   ;;  %v3240_v44 = vadd.f32 %v8619_v37, %v3127_v36 }
 0x302   :  { %v3340_v26 = vpop.f32.mrf.mxu0  ;;  %v3453_v51 = vpop.f32.mrf.mxu1  ;;  %4719 = vmatprep.subr.bf16.mxu1 %v7320_v38  ;;  %v3137_v37 = vadd.f32 %v8631_v63, %v8501_v61  ;;  %v9219_v61 = vld [vmem:[#allocation36_spill] sm:$0xff] }
 0x303   :  { %v3519_v34 = vmax.f32 %v3448_v52, 0.0  ;;  %v3341_v8 = vadd.f32 %v3340_v26, %v8601_v1  ;;  %v8720_v9 = vpack.c.bf16 %v3518_v54, %v3514_v18  ;;  %v3452_v53 = vadd.f32 %v3451_v35, %v3339_v60  ;;  %5321 = vmatpush1.bf16.msra.mxu0 %v7360_v7  ;;  %v7365_v52 = vld [vmem:[#allocation11 + $0x14] ss:$8 sps:$4 sm:$0xff]   ;;  %v7327_v26 = vld [vmem:[#allocation10 + $0x3a8] ss:$16 sps:$4 sm:$0xff]  }
 0x304   :  { %v3342_v4 = vpop.f32.mrf.mxu0  ;;  %v3455_v25 = vpop.f32.mrf.mxu1  ;;  %5322 = vmatprep.subr.bf16.mxu0 %v7365_v52  ;;  %v3139_v63 = vadd.f32 %v9219_v61, %v8507_v31  ;;  %v7335_v36 = vld [vmem:[#allocation10 + $0x36c] ss:$16 sps:$4 sm:$0xff]   ;;  %v7378_v61 = vld [vmem:[#allocation11 + $0xc0] ss:$8 sps:$4 sm:$0xff]  }
 0x305   :  { %v3343_v13 = vadd.f32 %v3342_v4, %v3230_v10  ;;  %4720 = vmatpush1.bf16.msra.mxu1 %v7318_v19  ;;  %v8716_v17 = vpack.c.bf16 %v3519_v34, %v3515_v43  ;;  %v3454_v29 = vadd.f32 %v3453_v51, %v3341_v8  ;;  %v3522_v35 = vmax.f32 %v3452_v53, 0.0  ;;  %v7363_v51 = vld [vmem:[#allocation11 + $0x10] ss:$8 sps:$4 sm:$0xff]   ;;  %v7368_v4 = vld [vmem:[#allocation11 + $0x4] ss:$8 sps:$4 sm:$0xff]  }
 0x306   :  { %v3344_v1 = vpop.f32.mrf.mxu0  ;;  %v3457_v15 = vpop.f32.mrf.mxu1  ;;  %4721 = vmatprep.subr.bf16.mxu1 %v7323_v40  ;;  %v3242_v19 = vadd.f32 %v8623_v6, %v3129_v27  ;;  %v7371_v27 = vld [vmem:[#allocation11 + $0xf4] ss:$8 sps:$4 sm:$0xff]  }
 0x307   :  { %v3456_v20 = vadd.f32 %v3455_v25, %v3343_v13  ;;  %v3345_v55 = vadd.f32 %v3344_v1, %v3232_v41  ;;  %4551 = vmatprep.mubr.bf16.mxu1 %v8716_v17  ;;  %v3523_v48 = vmax.f32 %v3454_v29, 0.0  ;;  %5323 = vmatpush1.bf16.msra.mxu0 %v7363_v51  ;;  %v7366_v41 = vld [vmem:[#allocation11] ss:$8 sps:$4 sm:$0xff]   ;;  %v9220_v1 = vld [vmem:[#allocation34_spill] sm:$0xff] }
 0x308   :  { %v3348_v57 = vpop.f32.mrf.mxu0  ;;  %v3461_v33 = vpop.f32.mrf.mxu1  ;;  %4552 = vmatmul.mubr.bf16.gmra.mxu1 %v8720_v9  ;;  %5324 = vmatprep.subr.bf16.mxu0 %v7368_v4  ;;  %v7341_v51 = vld [vmem:[#allocation10 + $0x32c] ss:$16 sps:$4 sm:$0xff]   ;;  %v7342_v4 = vld [vmem:[#allocation10 + $0x308] ss:$16 sps:$4 sm:$0xff]  }
 0x309   :  { %v3458_v59 = vadd.f32 %v3457_v15, %v3345_v55  ;;  %4722 = vmatpush2.bf16.msra.mxu1 %v7321_v12  ;;  %v3526_v32 = vmax.f32 %v3456_v20, 0.0  ;;  %v3349_v58 = vadd.f32 %v3348_v57, %v8612_v0  ;;  %v7332_v0 = vld [vmem:[#allocation10 + $0x38c] ss:$16 sps:$4 sm:$0xff]   ;;  %v3250_v15 = vadd.f32 %v9220_v1, %v3137_v37  ;;  %v9221_v20 = vld [vmem:[#allocation33_spill] sm:$0xff] }
 0x30a   :  { %v3350_v11 = vpop.f32.mrf.mxu0  ;;  %v3463_v38 = vpop.f32.mrf.mxu1  ;;  %4723 = vmatprep.subr.bf16.mxu1 %v7326_v24  ;;  %v9222_v57 = vld [vmem:[#allocation32_spill] sm:$0xff] }
 0x30b   :  { %v3527_v56 = vmax.f32 %v3458_v59, 0.0  ;;  %v3351_v46 = vadd.f32 %v3350_v11, %v8617_v50  ;;  %v8734_v40 = vpack.c.bf16 %v3526_v32, %v3522_v35  ;;  %v3462_v6 = vadd.f32 %v3461_v33, %v3349_v58  ;;  %5325 = vmatpush1.bf16.msra.mxu0 %v7366_v41  ;;  %v9223_v59 = vld [vmem:[#allocation37_spill] sm:$0xff]  ;;  %v7333_v11 = vld [vmem:[#allocation10 + $0x368] ss:$16 sps:$4 sm:$0xff]   ;;  %v7386_v41 = vld [vmem:[#allocation11 + $0xa4] ss:$8 sps:$4 sm:$0xff]  }
 0x30c   :  { %v3352_v14 = vpop.f32.mrf.mxu0  ;;  %v3465_v5 = vpop.f32.mrf.mxu1  ;;  %5326 = vmatprep.subr.bf16.mxu0 %v7371_v27  ;;  %v7392_v1 = vld [vmem:[#allocation11 + $0x84] ss:$8 sps:$4 sm:$0xff]  }
 0x30d   :  { %v3353_v47 = vadd.f32 %v3352_v14, %v3240_v44  ;;  %4724 = vmatpush2.bf16.msra.mxu1 %v7324_v21  ;;  %v8730_v54 = vpack.c.bf16 %v3527_v56, %v3523_v48  ;;  %v3464_v43 = vadd.f32 %v3463_v38, %v3351_v46  ;;  %v3530_v53 = vmax.f32 %v3462_v6, 0.0  ;;  %v7369_v38 = vld [vmem:[#allocation11 + $0xf0] ss:$8 sps:$4 sm:$0xff]   ;;  %v7338_v48 = vld [vmem:[#allocation10 + $0x34c] ss:$16 sps:$4 sm:$0xff]  }
 0x30e   :  { %v3354_v50 = vpop.f32.mrf.mxu0  ;;  %v3467_v10 = vpop.f32.mrf.mxu1  ;;  %4725 = vmatprep.subr.bf16.mxu1 %v7329_v2  ;;  %v3252_v21 = vadd.f32 %v9223_v59, %v3139_v63  ;;  %v7383_v63 = vld [vmem:[#allocation11 + $0xb4] ss:$8 sps:$4 sm:$0xff]   ;;  %v7410_v59 = vld [vmem:[#allocation11 + $0x124] ss:$8 sps:$4 sm:$0xff]  }
 0x30f   :  { %v3466_v34 = vadd.f32 %v3465_v5, %v3353_v47  ;;  %v3355_v8 = vadd.f32 %v3354_v50, %v3242_v19  ;;  %4561 = vmatprep.mubr.bf16.mxu1 %v8730_v54  ;;  %v3531_v24 = vmax.f32 %v3464_v43, 0.0  ;;  %5327 = vmatpush2.bf16.msra.mxu0 %v7369_v38  ;;  %v7374_v5 = vld [vmem:[#allocation11 + $0xe4] ss:$8 sps:$4 sm:$0xff]   ;;  %v7336_v19 = vld [vmem:[#allocation10 + $0x348] ss:$16 sps:$4 sm:$0xff]  }
 0x310   :  { %v3358_v18 = vpop.f32.mrf.mxu0  ;;  %v3471_v60 = vpop.f32.mrf.mxu1  ;;  %4562 = vmatmul.mubr.bf16.gmra.mxu1 %v8734_v40  ;;  %v7372_v47 = vld [vmem:[#allocation11 + $0xe0] ss:$8 sps:$4 sm:$0xff]   ;;  %5328 = vmatprep.subr.bf16.mxu0 %v7374_v5  ;;  %v7416_v38 = vld [vmem:[#allocation11 + $0x104] ss:$8 sps:$4 sm:$0xff]  }
 0x311   :  { %v3468_v25 = vadd.f32 %v3467_v10, %v3355_v8  ;;  %4726 = vmatpush2.bf16.msra.mxu1 %v7327_v26  ;;  %v3534_v13 = vmax.f32 %v3466_v34, 0.0  ;;  %v3359_v31 = vadd.f32 %v3358_v18, %v9222_v57  ;;  %v7339_v34 = vld [vmem:[#allocation10 + $0x328] ss:$16 sps:$4 sm:$0xff]   ;;  %v7344_v18 = vld [vmem:[#allocation10 + $0x30c] ss:$16 sps:$4 sm:$0xff]  }
 0x312   :  { %v3360_v12 = vpop.f32.mrf.mxu0  ;;  %v3473_v42 = vpop.f32.mrf.mxu1  ;;  %4727 = vmatprep.subr.bf16.mxu1 %v7332_v0  ;;  %v7377_v0 = vld [vmem:[#allocation11 + $0xd4] ss:$8 sps:$4 sm:$0xff]   ;;  %v7375_v8 = vld [vmem:[#allocation11 + $0xd0] ss:$8 sps:$4 sm:$0xff]   ;;  %v7428_v5 = vld [vmem:[#allocation11 + $0x1c4] ss:$8 sps:$4 sm:$0xff]  }
 0x313   :  { %v3535_v29 = vmax.f32 %v3468_v25, 0.0  ;;  %v3361_v55 = vadd.f32 %v3360_v12, %v9221_v20  ;;  %v8746_v2 = vpack.c.bf16 %v3534_v13, %v3530_v53  ;;  %v3472_v58 = vadd.f32 %v3471_v60, %v3359_v31  ;;  %5329 = vmatpush2.bf16.msra.mxu0 %v7372_v47  ;;  %v7380_v60 = vld [vmem:[#allocation11 + $0xc4] ss:$8 sps:$4 sm:$0xff]   ;;  %v7381_v25 = vld [vmem:[#allocation11 + $0xb0] ss:$8 sps:$4 sm:$0xff]  }
 0x314   :  { %v3362_v33 = vpop.f32.mrf.mxu0  ;;  %v3475_v16 = vpop.f32.mrf.mxu1  ;;  %5330 = vmatprep.subr.bf16.mxu0 %v7377_v0  ;;  %v7384_v13 = vld [vmem:[#allocation11 + $0xa0] ss:$8 sps:$4 sm:$0xff]   ;;  %v7398_v20 = vld [vmem:[#allocation11 + $0x164] ss:$8 sps:$4 sm:$0xff]   ;;  %v7399_v53 = vld [vmem:[#allocation11 + $0x150] ss:$8 sps:$4 sm:$0xff]  }
 0x315   :  { %v3363_v7 = vadd.f32 %v3362_v33, %v3250_v15  ;;  %4728 = vmatpush2.bf16.msra.mxu1 %v7330_v49  ;;  %v8744_v32 = vpack.c.bf16 %v3535_v29, %v3531_v24  ;;  %v3474_v56 = vadd.f32 %v3473_v42, %v3361_v55  ;;  %v3538_v10 = vmax.f32 %v3472_v58, 0.0  ;;  %v7387_v42 = vld [vmem:[#allocation11 + $0x90] ss:$8 sps:$4 sm:$0xff]   ;;  %v7404_v31 = vld [vmem:[#allocation11 + $0x144] ss:$8 sps:$4 sm:$0xff]  }
 0x316   :  { %v3364_v44 = vpop.f32.mrf.mxu0  ;;  %4729 = vmatprep.subr.bf16.mxu1 %v7335_v36  ;;  %v3477_v14 = vpop.f32.mrf.mxu1  ;;  %v7393_v24 = vld [vmem:[#allocation11 + $0x170] ss:$8 sps:$4 sm:$0xff]  }
 0x317   :  { %v3476_v46 = vadd.f32 %v3475_v16, %v3363_v7  ;;  %v3365_v35 = vadd.f32 %v3364_v44, %v3252_v21  ;;  %4571 = vmatprep.mubr.bf16.mxu1 %v8744_v32  ;;  %v3539_v37 = vmax.f32 %v3474_v56, 0.0  ;;  %5331 = vmatpush2.bf16.msra.mxu0 %v7375_v8  ;;  %v7405_v16 = vld [vmem:[#allocation11 + $0x130] ss:$8 sps:$4 sm:$0xff]   ;;  %v7438_v8 = vld [vmem:[#allocation11 + $0x180] ss:$8 sps:$4 sm:$0xff]  }
 0x318   :  { %4572 = vmatmul.mubr.bf16.gmra.mxu1 %v8746_v2  ;;  %5332 = vmatprep.subr.bf16.mxu0 %v7380_v60  ;;  %v7411_v7 = vld [vmem:[#allocation11 + $0x110] ss:$8 sps:$4 sm:$0xff]  }
 0x319   :  { %v3478_v52 = vadd.f32 %v3477_v14, %v3365_v35  ;;  %4730 = vmatpush2.bf16.msra.mxu1 %v7333_v11  ;;  %v3542_v26 = vmax.f32 %v3476_v46, 0.0  ;;  %v7422_v46 = vld [vmem:[#allocation11 + $0x1e4] ss:$8 sps:$4 sm:$0xff]   ;;  %v7423_v58 = vld [vmem:[#allocation11 + $0x1d0] ss:$8 sps:$4 sm:$0xff]  }
 0x31a   :  { %4731 = vmatprep.subr.bf16.mxu1 %v7338_v48  ;;  %v7417_v48 = vld [vmem:[#allocation11 + $0x1f0] ss:$8 sps:$4 sm:$0xff]  }
 0x31b   :  { %v3543_v50 = vmax.f32 %v3478_v52, 0.0  ;;  %v8752_v6 = vpack.c.bf16 %v3542_v26, %v3538_v10  ;;  %5333 = vmatpush2.bf16.msra.mxu0 %v7378_v61  ;;  %v7426_v52 = vld [vmem:[#allocation11 + $0x1c0] ss:$8 sps:$4 sm:$0xff]   ;;  %v7429_v47 = vld [vmem:[#allocation11 + $0x1b0] ss:$8 sps:$4 sm:$0xff]  }
 0x31c   :  { %5334 = vmatprep.subr.bf16.mxu0 %v7383_v63  ;;  %v7437_v10 = vld [vmem:[#allocation11 + $0x194] ss:$8 sps:$4 sm:$0xff]   ;;  %v7435_v0 = vld [vmem:[#allocation11 + $0x190] ss:$8 sps:$4 sm:$0xff]  }
 0x31d   :  { %4732 = vmatpush2.bf16.msra.mxu1 %v7336_v19  ;;  %v8750_v43 = vpack.c.bf16 %v3543_v50, %v3539_v37  ;;  %v7432_v37 = vld [vmem:[#allocation11 + $0x1a0] ss:$8 sps:$4 sm:$0xff]  }
 0x31e   :  { %4733 = vmatprep.subr.bf16.mxu1 %v7341_v51  ;;  %v7434_v51 = vld [vmem:[#allocation11 + $0x1a4] ss:$8 sps:$4 sm:$0xff]  }
 0x31f   :  { %4581 = vmatprep.mubr.bf16.mxu1 %v8750_v43  ;;  %5335 = vmatpush2.bf16.msra.mxu0 %v7381_v25 }
 0x320   :  { %4582 = vmatmul.mubr.bf16.gmra.mxu1 %v8752_v6  ;;  %5336 = vmatprep.subr.bf16.mxu0 %v7386_v41 }
 0x321   :  { %4734 = vmatpush2.bf16.msra.mxu1 %v7339_v34  ;;  %4737 = vmatprep.mubr.bf16.mxu1 %v8660_v28  ;;  %v7389_v28 = vld [vmem:[#allocation11 + $0x94] ss:$8 sps:$4 sm:$0xff]   ;;  %v7440_v34 = vld [vmem:[#allocation11 + $0x184] ss:$8 sps:$4 sm:$0xff]  }
 0x322   :  { %4735 = vmatprep.subr.bf16.mxu1 %v7344_v18 }
 0x323   :  { %5337 = vmatpush2.bf16.msra.mxu0 %v7384_v13 }
 0x324   :  { %5338 = vmatprep.subr.bf16.mxu0 %v7389_v28 }
 0x325   :  { %4736 = vmatpush2.bf16.msra.mxu1 %v7342_v4 }
 0x327   :  { %v8757_v49 = vpop.f32.mrf.mxu0  ;;  %5339 = vmatpush2.bf16.msra.mxu0 %v7387_v42 }
 0x328   :  { %4738 = vmatmul.mubr.bf16.vlgmr.msra.gmra.mxu1 %v8662_v3  ;;  %v7390_v3 = vld [vmem:[#allocation11 + $0x80] ss:$8 sps:$4 sm:$0xff]   ;;  %5340 = vmatprep.subr.bf16.mxu0 %v7392_v1 }
 0x329   :  { %4747 = vmatprep.mubr.bf16.mxu1 %v8674_v39  ;;  %v8761_v12 = vpop.f32.mrf.mxu0  ;;  %v7395_v39 = vld [vmem:[#allocation11 + $0x174] ss:$8 sps:$4 sm:$0xff]  }
 0x32a   :  { %5423 = vmatprep.subr.bf16.mxu1 %v7395_v39  ;;  %v8839_v39 = vld [vmem:[%s9132_s6] sm:$0xf] }
 0x32b   :  { %v8763_v36 = vpop.f32.mrf.mxu0  ;;  %5341 = vmatpush2.bf16.msra.mxu0 %v7390_v3  ;;  %5424 = vmatpush1.bf16.msra.mxu1 %v7393_v24 }
 0x32c   :  { %5425 = vmatprep.subr.bf16.mxu1 %v7398_v20  ;;  %v9224_v20 = vld [vmem:[#allocation24_spill] sm:$0xff] }
 0x32d   :  { %v8767_v15 = vpop.f32.mrf.mxu0 }
 0x32f   :  { %v8769_v29 = vpop.f32.mrf.mxu0 }
 0x330   :  { %4748 = vmatmul.mubr.bf16.gmra.mxu1 %v8676_v22  ;;  %v7396_v22 = vld [vmem:[#allocation11 + $0x160] ss:$8 sps:$4 sm:$0xff]  }
 0x331   :  { %4757 = vmatprep.mubr.bf16.mxu1 %v8688_v30  ;;  %v8773_v55 = vpop.f32.mrf.mxu0  ;;  %5426 = vmatpush1.bf16.msra.mxu1 %v7396_v22  ;;  %v7401_v30 = vld [vmem:[#allocation11 + $0x154] ss:$8 sps:$4 sm:$0xff]   ;;  %v8845_v22 = vrot.slane %v8839_v39, %v9224_v20 }
 0x332   :  { %5427 = vmatprep.subr.bf16.mxu1 %v7401_v30  ;;  %v9225_v30 = vld [vmem:[#allocation23_spill] sm:$0xff] }
 0x333   :  { %v8775_v57 = vpop.f32.mrf.mxu0 }
 0x335   :  { %5428 = vmatpush1.bf16.msra.mxu1 %v7399_v53  ;;  %v8779_v33 = vpop.f32.mrf.mxu0  ;;  %v8849_v53 = vrot.slane %v8839_v39, %v9225_v30 }
 0x336   :  { %5429 = vmatprep.subr.bf16.mxu1 %v7404_v31 }
 0x337   :  { %v8781_v27 = vpop.f32.mrf.mxu0 }
 0x338   :  { %4758 = vmatmul.mubr.bf16.gmra.mxu1 %v8692_v45  ;;  %v7402_v45 = vld [vmem:[#allocation11 + $0x140] ss:$8 sps:$4 sm:$0xff]  }
 0x339   :  { %4767 = vmatprep.mubr.bf16.mxu1 %v8702_v23  ;;  %5430 = vmatpush1.bf16.msra.mxu1 %v7402_v45  ;;  %v7407_v23 = vld [vmem:[#allocation11 + $0x134] ss:$8 sps:$4 sm:$0xff]   ;;  %v8785_v21 = vpop.f32.mrf.mxu0 }
 0x33a   :  { %5431 = vmatprep.subr.bf16.mxu1 %v7407_v23 }
 0x33b   :  { %v8787_v11 = vpop.f32.mrf.mxu0 }
 0x33d   :  { %5432 = vmatpush1.bf16.msra.mxu1 %v7405_v16  ;;  %v8791_v44 = vpop.f32.mrf.mxu0  ;;  %v4403_v16 = vadd.f32 %v8761_v12, %v8845_v22 }
 0x33e   :  { %5433 = vmatprep.subr.bf16.mxu1 %v7410_v59  ;;  %v4405_v59 = vadd.f32 %v8763_v36, %v8849_v53 }
 0x33f   :  { %v8793_v56 = vpop.f32.mrf.mxu0 }
 0x340   :  { %4768 = vmatmul.mubr.bf16.gmra.mxu1 %v8706_v62  ;;  %v7408_v62 = vld [vmem:[#allocation11 + $0x120] ss:$8 sps:$4 sm:$0xff]  }
 0x341   :  { %4777 = vmatprep.mubr.bf16.mxu1 %v8716_v17  ;;  %5434 = vmatpush1.bf16.msra.mxu1 %v7408_v62  ;;  %v7413_v17 = vld [vmem:[#allocation11 + $0x114] ss:$8 sps:$4 sm:$0xff]   ;;  %v8797_v35 = vpop.f32.mrf.mxu0  ;;  %v4401_v62 = vadd.f32 %v8757_v49, %v8849_v53  ;;  %v4413_v49 = vadd.f32 %v8773_v55, %v8845_v22 }
 0x342   :  { %5435 = vmatprep.subr.bf16.mxu1 %v7413_v17 }
 0x343   :  { %v8799_v14 = vpop.f32.mrf.mxu0 }
 0x345   :  { %5436 = vmatpush1.bf16.msra.mxu1 %v7411_v7  ;;  %v8802_v19 = vpop.f32.mrf.mxu0  ;;  %v4407_v7 = vadd.f32 %v8767_v15, %v8845_v22  ;;  %v4415_v15 = vadd.f32 %v8775_v57, %v8849_v53 }
 0x346   :  { %5437 = vmatprep.subr.bf16.mxu1 %v7416_v38 }
 0x347   :  { %v8804_v26 = vpop.f32.mrf.mxu0 }
 0x348   :  { %4778 = vmatmul.mubr.bf16.gmra.mxu1 %v8720_v9  ;;  %v7414_v9 = vld [vmem:[#allocation11 + $0x100] ss:$8 sps:$4 sm:$0xff]  }
 0x349   :  { %4787 = vmatprep.mubr.bf16.mxu1 %v8730_v54  ;;  %5438 = vmatpush1.bf16.msra.mxu1 %v7414_v9  ;;  %v7419_v54 = vld [vmem:[#allocation11 + $0x1f4] ss:$8 sps:$4 sm:$0xff]   ;;  %v8806_v50 = vpop.f32.mrf.mxu0 }
 0x34a   :  { %5439 = vmatprep.subr.bf16.mxu1 %v7419_v54 }
 0x34d   :  { %5440 = vmatpush2.bf16.msra.mxu1 %v7417_v48 }
 0x34e   :  { %5441 = vmatprep.subr.bf16.mxu1 %v7422_v46 }
 0x350   :  { %4788 = vmatmul.mubr.bf16.gmra.mxu1 %v8734_v40  ;;  %v7420_v40 = vld [vmem:[#allocation11 + $0x1e0] ss:$8 sps:$4 sm:$0xff]  }
 0x351   :  { %4797 = vmatprep.mubr.bf16.mxu1 %v8744_v32  ;;  %5442 = vmatpush2.bf16.msra.mxu1 %v7420_v40  ;;  %v7425_v32 = vld [vmem:[#allocation11 + $0x1d4] ss:$8 sps:$4 sm:$0xff]  }
 0x352   :  { %5443 = vmatprep.subr.bf16.mxu1 %v7425_v32 }
 0x355   :  { %5444 = vmatpush2.bf16.msra.mxu1 %v7423_v58 }
 0x356   :  { %5445 = vmatprep.subr.bf16.mxu1 %v7428_v5 }
 0x358   :  { %4798 = vmatmul.mubr.bf16.gmra.mxu1 %v8746_v2  ;;  %v7431_v2 = vld [vmem:[#allocation11 + $0x1b4] ss:$8 sps:$4 sm:$0xff]  }
 0x359   :  { %4807 = vmatprep.mubr.bf16.mxu1 %v8750_v43  ;;  %5446 = vmatpush2.bf16.msra.mxu1 %v7426_v52  ;;  %v8808_v43 = vpop.f32.mrf.mxu0 }
 0x35a   :  { %5447 = vmatprep.subr.bf16.mxu1 %v7431_v2 }
 0x35d   :  { %5448 = vmatpush2.bf16.msra.mxu1 %v7429_v47 }
 0x35e   :  { %5449 = vmatprep.subr.bf16.mxu1 %v7434_v51  ;;  %v4411_v51 = vadd.f32 %v8769_v29, %v8849_v53 }
 0x360   :  { %4808 = vmatmul.mubr.bf16.gmra.mxu1 %v8752_v6  ;;  %v8810_v6 = vpop.f32.mrf.mxu0 }
 0x361   :  { %5450 = vmatpush2.bf16.msra.mxu1 %v7432_v37 }
 0x362   :  { %5451 = vmatprep.subr.bf16.mxu1 %v7437_v10  ;;  %v8812_v18 = vpop.f32.mrf.mxu0 }
 0x364   :  { %v8814_v60 = vpop.f32.mrf.mxu0 }
 0x365   :  { %5452 = vmatpush2.bf16.msra.mxu1 %v7435_v0  ;;  %v4417_v0 = vadd.f32 %v8779_v33, %v8845_v22  ;;  %v4423_v33 = vadd.f32 %v8785_v21, %v8845_v22 }
 0x366   :  { %5453 = vmatprep.subr.bf16.mxu1 %v7440_v34  ;;  %v8816_v4 = vpop.f32.mrf.mxu0 }
 0x368   :  { %v8818_v61 = vpop.f32.mrf.mxu0 }
 0x369   :  { %5454 = vmatpush2.bf16.msra.mxu1 %v7438_v8 }
 0x36a   :  { %v8820_v63 = vpop.f32.mrf.mxu0 }
 0x36c   :  { %v8822_v25 = vpop.f32.mrf.mxu0 }
 0x36e   :  { %v8824_v41 = vpop.f32.mrf.mxu0 }
 0x370   :  { %v8826_v13 = vpop.f32.mrf.mxu0 }
 0x372   :  { %v8828_v28 = vpop.f32.mrf.mxu0 }
 0x374   :  { %v8830_v42 = vpop.f32.mrf.mxu0 }
 0x376   :  { %v8832_v1 = vpop.f32.mrf.mxu0 }
 0x378   :  { %v8834_v3 = vpop.f32.mrf.mxu0 }
 0x37a   :  { %v8841_v24 = vpop.f32.mrf.mxu0 }
 0x37c   :  { %v8851_v45 = vpop.f32.mrf.mxu0 }
 0x37e   :  { %v8861_v54 = vpop.f32.mrf.mxu0 }
 0x380   :  { %v8863_v52 = vpop.f32.mrf.mxu0 }
 0x3a8   :  { %v4513_v31 = vpop.f32.mrf.mxu1 }
 0x3a9   :  { %v4514_v48 = vadd.f32 %v4513_v31, %v4401_v62  ;;  %v8873_v31 = vpop.f32.mrf.mxu0 }
 0x3aa   :  { %v4515_v23 = vpop.f32.mrf.mxu1 }
 0x3ab   :  { %v4516_v38 = vadd.f32 %v4515_v23, %v4403_v16  ;;  %v4818_v36 = vmax.f32 %v4514_v48, 0.0 }
 0x3ac   :  { %v4517_v17 = vpop.f32.mrf.mxu1 }
 0x3ad   :  { %v4518_v9 = vadd.f32 %v4517_v17, %v4405_v59  ;;  %v4819_v12 = vmax.f32 %v4516_v38, 0.0 }
 0x3ae   :  { %v4519_v46 = vpop.f32.mrf.mxu1 }
 0x3af   :  { %v4520_v40 = vadd.f32 %v4519_v46, %v4407_v7  ;;  %v4822_v32 = vmax.f32 %v4518_v9, 0.0  ;;  %v8875_v7 = vpop.f32.mrf.mxu0  ;;  %v4425_v9 = vadd.f32 %v8787_v11, %v8849_v53  ;;  %v4421_v46 = vadd.f32 %v8781_v27, %v8849_v53 }
 0x3b0   :  { %v4523_v58 = vpop.f32.mrf.mxu1 }
 0x3b1   :  { %v4823_v5 = vmax.f32 %v4520_v40, 0.0  ;;  %v4882_v37 = vpack.c.bf16 %v4822_v32, %v4818_v36  ;;  %v4524_v23 = vadd.f32 %v4523_v58, %v4411_v51  ;;  %v4427_v58 = vadd.f32 %v8791_v44, %v8845_v22  ;;  %v8885_v36 = vpop.f32.mrf.mxu0 }
 0x3b2   :  { %v4525_v2 = vpop.f32.mrf.mxu1  ;;  %v4433_v44 = vadd.f32 %v8797_v35, %v8845_v22 }
 0x3b3   :  { %v4883_v47 = vpack.c.bf16 %v4823_v5, %v4819_v12  ;;  %v4526_v34 = vadd.f32 %v4525_v2, %v4413_v49  ;;  %v4826_v29 = vmax.f32 %v4524_v23, 0.0 }
 0x3b4   :  { %v4527_v10 = vpop.f32.mrf.mxu1 }
 0x3b5   :  { %v4528_v8 = vadd.f32 %v4527_v10, %v4415_v15  ;;  %5342 = vmatprep.mubr.bf16.mxu0 %v4883_v47  ;;  %v4827_v62 = vmax.f32 %v4526_v34, 0.0 }
 0x3b6   :  { %v4529_v16 = vpop.f32.mrf.mxu1  ;;  %5343 = vmatmul.mubr.bf16.vlgmr.msra.gmra.mxu0 %v4882_v37  ;;  %v8887_v37 = vpop.f32.mrf.mxu0 }
 0x3b7   :  { %v4530_v55 = vadd.f32 %v4529_v16, %v4417_v0  ;;  %v4830_v59 = vmax.f32 %v4528_v8, 0.0  ;;  %v4435_v0 = vadd.f32 %v8799_v14, %v8849_v53  ;;  %v4431_v8 = vadd.f32 %v8793_v56, %v8849_v53 }
 0x3b8   :  { %v4533_v57 = vpop.f32.mrf.mxu1 }
 0x3b9   :  { %v4831_v17 = vmax.f32 %v4530_v55, 0.0  ;;  %v4886_v40 = vpack.c.bf16 %v4830_v59, %v4826_v29  ;;  %v4534_v2 = vadd.f32 %v4533_v57, %v4421_v46  ;;  %v4437_v55 = vadd.f32 %v8802_v19, %v8845_v22 }
 0x3ba   :  { %v4535_v38 = vpop.f32.mrf.mxu1  ;;  %v4443_v19 = vadd.f32 %v8806_v50, %v8845_v22 }
 0x3bb   :  { %v4887_v48 = vpack.c.bf16 %v4831_v17, %v4827_v62  ;;  %v4536_v12 = vadd.f32 %v4535_v38, %v4423_v33  ;;  %v4834_v27 = vmax.f32 %v4534_v2, 0.0  ;;  %v8897_v62 = vpop.f32.mrf.mxu0  ;;  %v4447_v2 = vadd.f32 %v8810_v6, %v8845_v22 }
 0x3bc   :  { %v4537_v32 = vpop.f32.mrf.mxu1  ;;  %v4453_v6 = vadd.f32 %v8814_v60, %v8845_v22 }
 0x3bd   :  { %v4538_v5 = vadd.f32 %v4537_v32, %v4425_v9  ;;  %5352 = vmatprep.mubr.bf16.mxu0 %v4887_v48  ;;  %v4835_v47 = vmax.f32 %v4536_v12, 0.0  ;;  %v8899_v48 = vpop.f32.mrf.mxu0 }
 0x3be   :  { %v4539_v49 = vpop.f32.mrf.mxu1  ;;  %5353 = vmatmul.mubr.bf16.gmra.mxu0 %v4886_v40  ;;  %v4445_v40 = vadd.f32 %v8808_v43, %v8849_v53 }
 0x3bf   :  { %v4540_v21 = vadd.f32 %v4539_v49, %v4427_v58  ;;  %v4838_v15 = vmax.f32 %v4538_v5, 0.0  ;;  %v4441_v58 = vadd.f32 %v8804_v26, %v8849_v53 }
 0x3c0   :  { %v4543_v11 = vpop.f32.mrf.mxu1 }
 0x3c1   :  { %v4839_v51 = vmax.f32 %v4540_v21, 0.0  ;;  %v4890_v23 = vpack.c.bf16 %v4838_v15, %v4834_v27  ;;  %v4544_v17 = vadd.f32 %v4543_v11, %v4431_v8  ;;  %v8909_v15 = vpop.f32.mrf.mxu0 }
 0x3c2   :  { %v4545_v10 = vpop.f32.mrf.mxu1 }
 0x3c3   :  { %v4891_v34 = vpack.c.bf16 %v4839_v51, %v4835_v47  ;;  %v4546_v59 = vadd.f32 %v4545_v10, %v4433_v44  ;;  %v4842_v56 = vmax.f32 %v4544_v17, 0.0  ;;  %v8911_v44 = vpop.f32.mrf.mxu0 }
 0x3c4   :  { %v4547_v16 = vpop.f32.mrf.mxu1 }
 0x3c5   :  { %v4548_v57 = vadd.f32 %v4547_v16, %v4435_v0  ;;  %5362 = vmatprep.mubr.bf16.mxu0 %v4891_v34  ;;  %v4843_v33 = vmax.f32 %v4546_v59, 0.0  ;;  %v4455_v34 = vadd.f32 %v8816_v4, %v8849_v53  ;;  %v4457_v59 = vadd.f32 %v8818_v61, %v8845_v22 }
 0x3c6   :  { %v4549_v29 = vpop.f32.mrf.mxu1  ;;  %5363 = vmatmul.mubr.bf16.gmra.mxu0 %v4890_v23  ;;  %v4451_v23 = vadd.f32 %v8812_v18, %v8849_v53  ;;  %v4463_v61 = vadd.f32 %v8822_v25, %v8845_v22 }
 0x3c7   :  { %v4550_v35 = vadd.f32 %v4549_v29, %v4437_v55  ;;  %v4846_v38 = vmax.f32 %v4548_v57, 0.0  ;;  %v8921_v29 = vpop.f32.mrf.mxu0 }
 0x3c8   :  { %v4553_v14 = vpop.f32.mrf.mxu1 }
 0x3c9   :  { %v4847_v9 = vmax.f32 %v4550_v35, 0.0  ;;  %v4894_v12 = vpack.c.bf16 %v4846_v38, %v4842_v56  ;;  %v4554_v11 = vadd.f32 %v4553_v14, %v4441_v58  ;;  %v8923_v56 = vpop.f32.mrf.mxu0 }
 0x3ca   :  { %v4555_v46 = vpop.f32.mrf.mxu1 }
 0x3cb   :  { %v4895_v32 = vpack.c.bf16 %v4847_v9, %v4843_v33  ;;  %v4556_v49 = vadd.f32 %v4555_v46, %v4443_v19  ;;  %v4850_v26 = vmax.f32 %v4554_v11, 0.0  ;;  %v4465_v19 = vadd.f32 %v8824_v41, %v8849_v53 }
 0x3cc   :  { %v4557_v5 = vpop.f32.mrf.mxu1 }
 0x3cd   :  { %v4558_v21 = vadd.f32 %v4557_v5, %v4445_v40  ;;  %5372 = vmatprep.mubr.bf16.mxu0 %v4895_v32  ;;  %v4851_v27 = vmax.f32 %v4556_v49, 0.0  ;;  %v4461_v32 = vadd.f32 %v8820_v63, %v8849_v53  ;;  %v4467_v5 = vadd.f32 %v8826_v13, %v8845_v22 }
 0x3ce   :  { %v4559_v47 = vpop.f32.mrf.mxu1  ;;  %5373 = vmatmul.mubr.bf16.gmra.mxu0 %v4894_v12  ;;  %v4473_v13 = vadd.f32 %v8830_v42, %v8845_v22  ;;  %v9226_v42 = vld [vmem:[#allocation25_spill] sm:$0xff] }
 0x3cf   :  { %v4560_v50 = vadd.f32 %v4559_v47, %v4447_v2  ;;  %v4854_v51 = vmax.f32 %v4558_v21, 0.0  ;;  %v8933_v21 = vpop.f32.mrf.mxu0 }
 0x3d0   :  { %v4563_v43 = vpop.f32.mrf.mxu1 }
 0x3d1   :  { %v4855_v10 = vmax.f32 %v4560_v50, 0.0  ;;  %v4898_v16 = vpack.c.bf16 %v4854_v51, %v4850_v26  ;;  %v4564_v35 = vadd.f32 %v4563_v43, %v4451_v23  ;;  %v4475_v26 = vadd.f32 %v8832_v1, %v8849_v53 }
 0x3d2   :  { %v4565_v0 = vpop.f32.mrf.mxu1  ;;  %v4477_v23 = vadd.f32 %v8834_v3, %v8845_v22  ;;  %v8949_v1 = vrot.slane %v8839_v39, %v9226_v42 }
 0x3d3   :  { %v4899_v8 = vpack.c.bf16 %v4855_v10, %v4851_v27  ;;  %v4566_v57 = vadd.f32 %v4565_v0, %v4453_v6  ;;  %v4858_v18 = vmax.f32 %v4564_v35, 0.0  ;;  %v8935_v27 = vpop.f32.mrf.mxu0  ;;  %v4471_v6 = vadd.f32 %v8828_v28, %v8849_v53 }
 0x3d4   :  { %v4567_v55 = vpop.f32.mrf.mxu1 }
 0x3d5   :  { %v4568_v17 = vadd.f32 %v4567_v55, %v4455_v34  ;;  %5382 = vmatprep.mubr.bf16.mxu0 %v4899_v8  ;;  %v4859_v33 = vmax.f32 %v4566_v57, 0.0 }
 0x3d6   :  { %v4569_v38 = vpop.f32.mrf.mxu1  ;;  %5383 = vmatmul.mubr.bf16.gmra.mxu0 %v4898_v16 }
 0x3d7   :  { %v4570_v60 = vadd.f32 %v4569_v38, %v4457_v59  ;;  %v4862_v14 = vmax.f32 %v4568_v17, 0.0  ;;  %v8945_v59 = vpop.f32.mrf.mxu0  ;;  %v9227_v38 = vld [vmem:[#allocation26_spill] sm:$0xff] }
 0x3d8   :  { %v4573_v4 = vpop.f32.mrf.mxu1  ;;  %v8953_v28 = vrot.slane %v8839_v39, %v9227_v38 }
 0x3d9   :  { %v4863_v9 = vmax.f32 %v4570_v60, 0.0  ;;  %v4902_v58 = vpack.c.bf16 %v4862_v14, %v4858_v18  ;;  %v4574_v11 = vadd.f32 %v4573_v4, %v4461_v32  ;;  %v8955_v14 = vpop.f32.mrf.mxu0 }
 0x3da   :  { %v4575_v46 = vpop.f32.mrf.mxu1  ;;  %v4631_v18 = vadd.f32 %v8861_v54, %v8953_v28  ;;  %v4651_v42 = vadd.f32 %v8909_v15, %v8953_v28  ;;  %v4647_v38 = vadd.f32 %v8897_v62, %v8953_v28 }
 0x3db   :  { %v4903_v40 = vpack.c.bf16 %v4863_v9, %v4859_v33  ;;  %v4576_v2 = vadd.f32 %v4575_v46, %v4463_v61  ;;  %v4866_v63 = vmax.f32 %v4574_v11, 0.0  ;;  %v4629_v9 = vadd.f32 %v8851_v45, %v8949_v1 }
 0x3dc   :  { %v4577_v12 = vpop.f32.mrf.mxu1  ;;  %v4627_v61 = vadd.f32 %v8841_v24, %v8953_v28 }
 0x3dd   :  { %v4578_v49 = vadd.f32 %v4577_v12, %v4465_v19  ;;  %5392 = vmatprep.mubr.bf16.mxu0 %v4903_v40  ;;  %v4867_v51 = vmax.f32 %v4576_v2, 0.0  ;;  %v4633_v40 = vadd.f32 %v8863_v52, %v8949_v1  ;;  %v8965_v12 = vpop.f32.mrf.mxu0  ;;  %v4639_v52 = vadd.f32 %v8875_v7, %v8949_v1 }
 0x3de   :  { %v4579_v47 = vpop.f32.mrf.mxu1  ;;  %5393 = vmatmul.mubr.bf16.gmra.mxu0 %v4902_v58 }
 0x3df   :  { %v4580_v25 = vadd.f32 %v4579_v47, %v4467_v5  ;;  %v4870_v50 = vmax.f32 %v4578_v49, 0.0 }
 0x3e0   :  { %v4583_v41 = vpop.f32.mrf.mxu1 }
 0x3e1   :  { %v4871_v43 = vmax.f32 %v4580_v25, 0.0  ;;  %v4906_v34 = vpack.c.bf16 %v4870_v50, %v4866_v63  ;;  %v4584_v57 = vadd.f32 %v4583_v41, %v4471_v6  ;;  %v8967_v25 = vpop.f32.mrf.mxu0  ;;  %v4641_v41 = vadd.f32 %v8885_v36, %v8953_v28 }
 0x3e2   :  { %v4585_v10 = vpop.f32.mrf.mxu1 }
 0x3e3   :  { %v4907_v0 = vpack.c.bf16 %v4871_v43, %v4867_v51  ;;  %v4586_v16 = vadd.f32 %v4585_v10, %v4473_v13  ;;  %v4874_v4 = vmax.f32 %v4584_v57, 0.0  ;;  %v4637_v43 = vadd.f32 %v8873_v31, %v8953_v28  ;;  %v8977_v6 = vpop.f32.mrf.mxu0 }
 0x3e4   :  { %v4587_v8 = vpop.f32.mrf.mxu1  ;;  %v4643_v13 = vadd.f32 %v8887_v37, %v8949_v1  ;;  %v4649_v37 = vadd.f32 %v8899_v48, %v8949_v1 }
 0x3e5   :  { %v4588_v55 = vadd.f32 %v4587_v8, %v4475_v26  ;;  %5402 = vmatprep.mubr.bf16.mxu0 %v4907_v0  ;;  %v4875_v3 = vmax.f32 %v4586_v16, 0.0  ;;  %v8979_v57 = vpop.f32.mrf.mxu0 }
 0x3e6   :  { %v4589_v17 = vpop.f32.mrf.mxu1  ;;  %5403 = vmatmul.mubr.bf16.gmra.mxu0 %v4906_v34 }
 0x3e7   :  { %v4590_v35 = vadd.f32 %v4589_v17, %v4477_v23  ;;  %v4878_v53 = vmax.f32 %v4588_v55, 0.0 }
 0x3e8   :  { %v4739_v60 = vpop.f32.mrf.mxu1 }
 0x3e9   :  { %v4879_v22 = vmax.f32 %v4590_v35, 0.0  ;;  %v4910_v39 = vpack.c.bf16 %v4878_v53, %v4874_v4  ;;  %v4740_v5 = vadd.f32 %v4739_v60, %v4627_v61 }
 0x3ea   :  { %v4741_v33 = vpop.f32.mrf.mxu1 }
 0x3eb   :  { %v4911_v46 = vpack.c.bf16 %v4879_v22, %v4875_v3  ;;  %v4742_v32 = vadd.f32 %v4741_v33, %v4629_v9  ;;  %v4820_v24 = vmax.f32 %v4740_v5, 0.0  ;;  %v4653_v3 = vadd.f32 %v8911_v44, %v8949_v1  ;;  %v8989_v33 = vpop.f32.mrf.mxu0 }
 0x3ec   :  { %v4743_v19 = vpop.f32.mrf.mxu1  ;;  %v4661_v44 = vadd.f32 %v8933_v21, %v8953_v28  ;;  %v4657_v5 = vadd.f32 %v8921_v29, %v8953_v28 }
 0x3ed   :  { %v4744_v58 = vadd.f32 %v4743_v19, %v4631_v18  ;;  %5412 = vmatprep.mubr.bf16.mxu0 %v4911_v46  ;;  %v4821_v11 = vmax.f32 %v4742_v32, 0.0  ;;  %v4682_v19 = vpop.f32.mrf.mxu0  ;;  %v4659_v32 = vadd.f32 %v8923_v56, %v8949_v1 }
 0x3ee   :  { %v4745_v2 = vpop.f32.mrf.mxu1  ;;  %5413 = vmatmul.mubr.bf16.gmra.mxu0 %v4910_v39 }
 0x3ef   :  { %v4746_v45 = vadd.f32 %v4745_v2, %v4633_v40  ;;  %v4824_v49 = vmax.f32 %v4744_v58, 0.0 }
 0x3f0   :  { %v4749_v54 = vpop.f32.mrf.mxu1 }
 0x3f1   :  { %v4825_v47 = vmax.f32 %v4746_v45, 0.0  ;;  %v4884_v63 = vpack.c.bf16 %v4824_v49, %v4820_v24  ;;  %v4750_v34 = vadd.f32 %v4749_v54, %v4637_v43  ;;  %v4663_v49 = vadd.f32 %v8935_v27, %v8949_v1  ;;  %v7442_v24 = vld [vmem:[#allocation13 + $0x38] sm:$0xff]  }
 0x3f2   :  { %v4751_v50 = vpop.f32.mrf.mxu1 }
 0x3f3   :  { %v4885_v51 = vpack.c.bf16 %v4825_v47, %v4821_v11  ;;  %v4752_v26 = vadd.f32 %v4751_v50, %v4639_v52  ;;  %v4828_v31 = vmax.f32 %v4750_v34, 0.0  ;;  %v7441_v47 = vld [vmem:[#allocation13 + $0x78] sm:$0xff]   ;;  %v8999_v50 = vpop.f32.mrf.mxu0  ;;  %v4667_v34 = vadd.f32 %v8945_v59, %v8953_v28 }
 0x3f4   :  { %v4753_v10 = vpop.f32.mrf.mxu1  ;;  %6567 = vmatprep.subr.bf16.mxu0 %v7441_v47  ;;  %v4687_v47 = vadd.f32 %v8999_v50, %v8953_v28 }
 0x3f5   :  { %v4754_v0 = vadd.f32 %v4753_v10, %v4641_v41  ;;  %5455 = vmatprep.mubr.bf16.mxu1 %v4885_v51  ;;  %v4829_v16 = vmax.f32 %v4752_v26, 0.0  ;;  %6568 = vmatpush3.bf16.msra.mxu0 %v7442_v24  ;;  %v4671_v26 = vadd.f32 %v8965_v12, %v8953_v28 }
 0x3f6   :  { %v4755_v8 = vpop.f32.mrf.mxu1  ;;  %5456 = vmatmul.mubr.bf16.vlgmr.msra.gmra.mxu1 %v4884_v63  ;;  %v4688_v63 = vpop.f32.mrf.mxu0 }
 0x3f7   :  { %v4756_v7 = vadd.f32 %v4755_v8, %v4643_v13  ;;  %v4832_v23 = vmax.f32 %v4754_v0, 0.0  ;;  %v4669_v13 = vadd.f32 %v8955_v14, %v8949_v1 }
 0x3f8   :  { %v4759_v36 = vpop.f32.mrf.mxu1 }
 0x3f9   :  { %v4833_v55 = vmax.f32 %v4756_v7, 0.0  ;;  %v4888_v53 = vpack.c.bf16 %v4832_v23, %v4828_v31  ;;  %v4760_v9 = vadd.f32 %v4759_v36, %v4647_v38  ;;  %v4673_v23 = vadd.f32 %v8967_v25, %v8949_v1  ;;  %v7444_v31 = vld [vmem:[#allocation13 + $0x30] sm:$0xff]  }
 0x3fa   :  { %v4761_v17 = vpop.f32.mrf.mxu1  ;;  %v4679_v25 = vadd.f32 %v8979_v57, %v8949_v1 }
 0x3fb   :  { %v4889_v35 = vpack.c.bf16 %v4833_v55, %v4829_v16  ;;  %v4762_v22 = vadd.f32 %v4761_v17, %v4649_v37  ;;  %v4836_v62 = vmax.f32 %v4760_v9, 0.0  ;;  %v7443_v55 = vld [vmem:[#allocation13 + $0x70] sm:$0xff]   ;;  %v4690_v17 = vpop.f32.mrf.mxu0  ;;  %v4677_v9 = vadd.f32 %v8977_v6, %v8953_v28 }
 0x3fc   :  { %v4763_v60 = vpop.f32.mrf.mxu1  ;;  %6569 = vmatprep.subr.bf16.mxu0 %v7443_v55 }
 0x3fd   :  { %v4764_v4 = vadd.f32 %v4763_v60, %v4651_v42  ;;  %5465 = vmatprep.mubr.bf16.mxu1 %v4889_v35  ;;  %v4837_v61 = vmax.f32 %v4762_v22, 0.0  ;;  %6570 = vmatpush3.bf16.msra.mxu0 %v7444_v31  ;;  %v4681_v22 = vadd.f32 %v8989_v33, %v8953_v28 }
 0x3fe   :  { %v4765_v18 = vpop.f32.mrf.mxu1  ;;  %5466 = vmatmul.mubr.bf16.gmra.mxu1 %v4888_v53  ;;  %v4692_v53 = vpop.f32.mrf.mxu0 }
 0x3ff   :  { %v4766_v48 = vadd.f32 %v4765_v18, %v4653_v3  ;;  %v4840_v46 = vmax.f32 %v4764_v4, 0.0 }
 0x400   :  { %v4769_v15 = vpop.f32.mrf.mxu1 }
 0x401   :  { %v4841_v39 = vmax.f32 %v4766_v48, 0.0  ;;  %v4892_v2 = vpack.c.bf16 %v4840_v46, %v4836_v62  ;;  %v4770_v56 = vadd.f32 %v4769_v15, %v4657_v5  ;;  %v4683_v46 = vadd.f32 %v4682_v19, %v8949_v1  ;;  %v7446_v62 = vld [vmem:[#allocation13 + $0x28] sm:$0xff]  }
 0x402   :  { %v4771_v40 = vpop.f32.mrf.mxu1  ;;  %v4689_v19 = vadd.f32 %v4688_v63, %v8949_v1 }
 0x403   :  { %v4893_v58 = vpack.c.bf16 %v4841_v39, %v4837_v61  ;;  %v4772_v54 = vadd.f32 %v4771_v40, %v4659_v32  ;;  %v4844_v10 = vmax.f32 %v4770_v56, 0.0  ;;  %v7445_v39 = vld [vmem:[#allocation13 + $0x68] sm:$0xff]   ;;  %v4696_v40 = vpop.f32.mrf.mxu0 }
 0x404   :  { %v4773_v45 = vpop.f32.mrf.mxu1  ;;  %6571 = vmatprep.subr.bf16.mxu0 %v7445_v39  ;;  %v4697_v55 = vadd.f32 %v4696_v40, %v8953_v28  ;;  %v7457_v40 = vld [vmem:[#allocation14 + $0x38] sm:$0xff]  }
 0x405   :  { %v4774_v11 = vadd.f32 %v4773_v45, %v4661_v44  ;;  %5475 = vmatprep.mubr.bf16.mxu1 %v4893_v58  ;;  %v4845_v29 = vmax.f32 %v4772_v54, 0.0  ;;  %6572 = vmatpush3.bf16.msra.mxu0 %v7446_v62  ;;  %v4691_v54 = vadd.f32 %v4690_v17, %v8953_v28 }
 0x406   :  { %v4775_v52 = vpop.f32.mrf.mxu1  ;;  %5476 = vmatmul.mubr.bf16.gmra.mxu1 %v4892_v2  ;;  %v4698_v2 = vpop.f32.mrf.mxu0  ;;  %6679 = vmatprep.subr.bf16.mxu1 %v7457_v40 }
 0x407   :  { %v4776_v21 = vadd.f32 %v4775_v52, %v4663_v49  ;;  %v4848_v41 = vmax.f32 %v4774_v11, 0.0  ;;  %v4693_v52 = vadd.f32 %v4692_v53, %v8949_v1  ;;  %6680 = vmatpush3.bf16.msra.mxu1 %v7457_v40 }
 0x408   :  { %v4779_v51 = vpop.f32.mrf.mxu1 }
 0x409   :  { %v4849_v43 = vmax.f32 %v4776_v21, 0.0  ;;  %v4896_v8 = vpack.c.bf16 %v4848_v41, %v4844_v10  ;;  %v4780_v37 = vadd.f32 %v4779_v51, %v4667_v34  ;;  %v7447_v51 = vld [vmem:[#allocation13 + $0x60] sm:$0xff]  }
 0x40a   :  { %v4781_v27 = vpop.f32.mrf.mxu1  ;;  %6573 = vmatprep.subr.bf16.mxu0 %v7447_v51 }
 0x40b   :  { %v4897_v0 = vpack.c.bf16 %v4849_v43, %v4845_v29  ;;  %v4782_v36 = vadd.f32 %v4781_v27, %v4669_v13  ;;  %v4852_v60 = vmax.f32 %v4780_v37, 0.0  ;;  %v7448_v29 = vld [vmem:[#allocation13 + $0x20] sm:$0xff]   ;;  %v4700_v43 = vpop.f32.mrf.mxu0 }
 0x40c   :  { %v4783_v7 = vpop.f32.mrf.mxu1  ;;  %6574 = vmatpush3.bf16.msra.mxu0 %v7448_v29 }
 0x40d   :  { %v4784_v16 = vadd.f32 %v4783_v7, %v4671_v26  ;;  %5485 = vmatprep.mubr.bf16.mxu1 %v4897_v0  ;;  %v4853_v59 = vmax.f32 %v4782_v36, 0.0  ;;  %v4702_v34 = vpop.f32.mrf.mxu0  ;;  %v4701_v36 = vadd.f32 %v4700_v43, %v8953_v28 }
 0x40e   :  { %v4785_v14 = vpop.f32.mrf.mxu1  ;;  %5486 = vmatmul.mubr.bf16.gmra.mxu1 %v4896_v8  ;;  %v4703_v37 = vadd.f32 %v4702_v34, %v8949_v1 }
 0x40f   :  { %v4786_v42 = vadd.f32 %v4785_v14, %v4673_v23  ;;  %v4856_v12 = vmax.f32 %v4784_v16, 0.0  ;;  %v4699_v23 = vadd.f32 %v4698_v2, %v8949_v1  ;;  %v7452_v1 = vld [vmem:[#allocation13 + $0x10] sm:$0xff]  }
 0x410   :  { %v4789_v35 = vpop.f32.mrf.mxu1 }
 0x411   :  { %v4857_v38 = vmax.f32 %v4786_v42, 0.0  ;;  %v4900_v18 = vpack.c.bf16 %v4856_v12, %v4852_v60  ;;  %v4790_v32 = vadd.f32 %v4789_v35, %v4677_v9  ;;  %v7449_v12 = vld [vmem:[#allocation13 + $0x58] sm:$0xff]   ;;  %v7451_v9 = vld [vmem:[#allocation13 + $0x50] sm:$0xff]  }
 0x412   :  { %v4791_v3 = vpop.f32.mrf.mxu1  ;;  %v7450_v35 = vld [vmem:[#allocation13 + $0x18] sm:$0xff]   ;;  %6575 = vmatprep.subr.bf16.mxu0 %v7449_v12 }
 0x413   :  { %v4901_v4 = vpack.c.bf16 %v4857_v38, %v4853_v59  ;;  %v4792_v15 = vadd.f32 %v4791_v3, %v4679_v25  ;;  %v4860_v45 = vmax.f32 %v4790_v32, 0.0  ;;  %6576 = vmatpush3.bf16.msra.mxu0 %v7450_v35  ;;  %v7458_v32 = vld [vmem:[#allocation14 + $0x30] sm:$0xff]  }
 0x414   :  { %v4793_v48 = vpop.f32.mrf.mxu1  ;;  %6577 = vmatprep.subr.bf16.mxu0 %v7451_v9  ;;  %6681 = vmatprep.subr.bf16.mxu1 %v7458_v32 }
 0x415   :  { %v4794_v61 = vadd.f32 %v4793_v48, %v4681_v22  ;;  %5495 = vmatprep.mubr.bf16.mxu1 %v4901_v4  ;;  %v4861_v5 = vmax.f32 %v4792_v15, 0.0  ;;  %v7454_v48 = vld [vmem:[#allocation13 + $0x8] sm:$0xff]   ;;  %v7456_v15 = vld [vmem:[#allocation13] sm:$0xff]   ;;  %6682 = vmatpush3.bf16.msra.mxu1 %v7458_v32 }
 0x416   :  { %v4795_v44 = vpop.f32.mrf.mxu1  ;;  %5496 = vmatmul.mubr.bf16.gmra.mxu1 %v4900_v18  ;;  %v7453_v18 = vld [vmem:[#allocation13 + $0x48] sm:$0xff]  }
 0x417   :  { %v4796_v57 = vadd.f32 %v4795_v44, %v4683_v46  ;;  %v4864_v33 = vmax.f32 %v4794_v61, 0.0  ;;  %6578 = vmatpush3.bf16.msra.mxu0 %v7452_v1  ;;  %v7455_v46 = vld [vmem:[#allocation13 + $0x40] sm:$0xff]  }
 0x418   :  { %v4799_v58 = vpop.f32.mrf.mxu1  ;;  %6579 = vmatprep.subr.bf16.mxu0 %v7453_v18 }
 0x419   :  { %v4865_v6 = vmax.f32 %v4796_v57, 0.0  ;;  %v4904_v24 = vpack.c.bf16 %v4864_v33, %v4860_v45  ;;  %v4800_v10 = vadd.f32 %v4799_v58, %v4687_v47  ;;  %v7459_v57 = vld [vmem:[#allocation14 + $0x28] sm:$0xff]  }
 0x41a   :  { %v4801_v49 = vpop.f32.mrf.mxu1  ;;  %6683 = vmatprep.subr.bf16.mxu1 %v7459_v57 }
 0x41b   :  { %v4905_v11 = vpack.c.bf16 %v4865_v6, %v4861_v5  ;;  %v4802_v21 = vadd.f32 %v4801_v49, %v4689_v19  ;;  %v4868_v8 = vmax.f32 %v4800_v10, 0.0  ;;  %6580 = vmatpush3.bf16.msra.mxu0 %v7454_v48  ;;  %6684 = vmatpush3.bf16.msra.mxu1 %v7459_v57 }
 0x41c   :  { %v4803_v56 = vpop.f32.mrf.mxu1  ;;  %6581 = vmatprep.subr.bf16.mxu0 %v7455_v46 }
 0x41d   :  { %v4804_v41 = vadd.f32 %v4803_v56, %v4691_v54  ;;  %5505 = vmatprep.mubr.bf16.mxu1 %v4905_v11  ;;  %v4869_v0 = vmax.f32 %v4802_v21, 0.0  ;;  %v4978_v56 = vld [vmem:[%s9134_s8] sm:$0x3] }
 0x41e   :  { %v4805_v27 = vpop.f32.mrf.mxu1  ;;  %5506 = vmatmul.mubr.bf16.gmra.mxu1 %v4904_v24  ;;  %v9039_v21 = vrot.slane %v4978_v56, %v9224_v20 }
 0x41f   :  { %v4806_v63 = vadd.f32 %v4805_v27, %v4693_v52  ;;  %v4872_v13 = vmax.f32 %v4804_v41, 0.0  ;;  %6582 = vmatpush3.bf16.msra.mxu0 %v7456_v15  ;;  %v9042_v41 = vrot.slane %v4978_v56, %v9225_v30 }
 0x420   :  { %v4809_v26 = vpop.f32.mrf.mxu1 }
 0x421   :  { %v4873_v50 = vmax.f32 %v4806_v63, 0.0  ;;  %v4908_v31 = vpack.c.bf16 %v4872_v13, %v4868_v8  ;;  %v4810_v59 = vadd.f32 %v4809_v26, %v4697_v55 }
 0x422   :  { %v4811_v7 = vpop.f32.mrf.mxu1 }
 0x423   :  { %v4909_v16 = vpack.c.bf16 %v4873_v50, %v4869_v0  ;;  %v4812_v14 = vadd.f32 %v4811_v7, %v4699_v23  ;;  %v4876_v22 = vmax.f32 %v4810_v59, 0.0 }
 0x424   :  { %v4813_v17 = vpop.f32.mrf.mxu1 }
 0x425   :  { %v4814_v42 = vadd.f32 %v4813_v17, %v4701_v36  ;;  %5515 = vmatprep.mubr.bf16.mxu1 %v4909_v16  ;;  %v4877_v3 = vmax.f32 %v4812_v14, 0.0 }
 0x426   :  { %v4815_v38 = vpop.f32.mrf.mxu1  ;;  %5516 = vmatmul.mubr.bf16.gmra.mxu1 %v4908_v31 }
 0x427   :  { %v4816_v53 = vadd.f32 %v4815_v38, %v4703_v37  ;;  %v4880_v60 = vmax.f32 %v4814_v42, 0.0 }
 0x429   :  { %v4881_v25 = vmax.f32 %v4816_v53, 0.0  ;;  %v4912_v4 = vpack.c.bf16 %v4880_v60, %v4876_v22 }
 0x42b   :  { %v4913_v28 = vpack.c.bf16 %v4881_v25, %v4877_v3 }
 0x42d   :  { %5525 = vmatprep.mubr.bf16.mxu1 %v4913_v28 }
 0x42e   :  { %5526 = vmatmul.mubr.bf16.gmra.mxu1 %v4912_v4 }
 0x476   :  { %v5344_v61 = vpop.f32.mrf.mxu0 }
 0x477   :  { %v5345_v63 = vadd.f32 %v5344_v61, %v9042_v41 }
 0x478   :  { %v5346_v39 = vpop.f32.mrf.mxu0 }
 0x479   :  { %v5347_v10 = vadd.f32 %v5346_v39, %v9039_v21 }
 0x47a   :  { %v5348_v62 = vpop.f32.mrf.mxu0 }
 0x47b   :  { %v5349_v27 = vadd.f32 %v5348_v62, %v9042_v41 }
 0x47c   :  { %v5350_v44 = vpop.f32.mrf.mxu0 }
 0x47d   :  { %v5351_v26 = vadd.f32 %v5350_v44, %v9039_v21 }
 0x47e   :  { %v5354_v33 = vpop.f32.mrf.mxu0 }
 0x47f   :  { %v5355_v12 = vadd.f32 %v5354_v33, %v9042_v41 }
 0x480   :  { %v5356_v58 = vpop.f32.mrf.mxu0 }
 0x481   :  { %v5357_v37 = vadd.f32 %v5356_v58, %v9039_v21 }
 0x482   :  { %v5358_v5 = vpop.f32.mrf.mxu0 }
 0x483   :  { %v5359_v14 = vadd.f32 %v5358_v5, %v9042_v41 }
 0x484   :  { %v5360_v6 = vpop.f32.mrf.mxu0 }
 0x485   :  { %v5361_v38 = vadd.f32 %v5360_v6, %v9039_v21 }
 0x486   :  { %v5364_v2 = vpop.f32.mrf.mxu0 }
 0x487   :  { %v5365_v40 = vadd.f32 %v5364_v2, %v9042_v41 }
 0x488   :  { %v5366_v45 = vpop.f32.mrf.mxu0 }
 0x489   :  { %v5367_v61 = vadd.f32 %v5366_v45, %v9039_v21 }
 0x48a   :  { %v5368_v49 = vpop.f32.mrf.mxu0 }
 0x48b   :  { %v5369_v39 = vadd.f32 %v5368_v49, %v9042_v41 }
 0x48c   :  { %v5370_v19 = vpop.f32.mrf.mxu0 }
 0x48d   :  { %v5371_v57 = vadd.f32 %v5370_v19, %v9039_v21 }
 0x48e   :  { %v9025_v54 = vpop.f32.mrf.mxu0 }
 0x490   :  { %v9027_v11 = vpop.f32.mrf.mxu0 }
 0x491   :  { %v5377_v2 = vadd.f32 %v9027_v11, %v9039_v21 }
 0x492   :  { %v9029_v47 = vpop.f32.mrf.mxu0 }
 0x493   :  { %v5379_v19 = vadd.f32 %v9029_v47, %v9042_v41 }
 0x494   :  { %v9031_v24 = vpop.f32.mrf.mxu0 }
 0x496   :  { %v9036_v52 = vpop.f32.mrf.mxu0 }
 0x498   :  { %v9044_v29 = vpop.f32.mrf.mxu0 }
 0x49a   :  { %v9050_v20 = vpop.f32.mrf.mxu0 }
 0x49c   :  { %v9052_v55 = vpop.f32.mrf.mxu0 }
 0x49e   :  { %v9058_v3 = vpop.f32.mrf.mxu0 }
 0x4a0   :  { %v9060_v48 = vpop.f32.mrf.mxu0 }
 0x4a2   :  { %v5398_v5 = vpop.f32.mrf.mxu0 }
 0x4a4   :  { %v5400_v49 = vpop.f32.mrf.mxu0 }
 0x4b6   :  { %v5457_v51 = vpop.f32.mrf.mxu1 }
 0x4b7   :  { %v5458_v34 = vadd.f32 %v5457_v51, %v5345_v63 }
 0x4b8   :  { %v5459_v43 = vpop.f32.mrf.mxu1 }
 0x4b9   :  { %v5460_v0 = vadd.f32 %v5459_v43, %v5347_v10  ;;  %v5536_v31 = vmax.f32 %v5458_v34, 0.0 }
 0x4ba   :  { %v5461_v13 = vpop.f32.mrf.mxu1 }
 0x4bb   :  { %v5462_v50 = vadd.f32 %v5461_v13, %v5349_v27  ;;  %v5537_v36 = vmax.f32 %v5460_v0, 0.0  ;;  %v5375_v0 = vadd.f32 %v9025_v54, %v9042_v41 }
 0x4bc   :  { %v5463_v30 = vpop.f32.mrf.mxu1 }
 0x4bd   :  { %v5464_v8 = vadd.f32 %v5463_v30, %v5351_v26  ;;  %v5538_v7 = vmax.f32 %v5462_v50, 0.0  ;;  %v5381_v30 = vadd.f32 %v9031_v24, %v9039_v21  ;;  %v5389_v24 = vadd.f32 %v9050_v20, %v9042_v41 }
 0x4be   :  { %v5467_v23 = vpop.f32.mrf.mxu1 }
 0x4bf   :  { %v5539_v16 = vmax.f32 %v5464_v8, 0.0  ;;  %v5568_v35 = vpack.c.bf16 %v5538_v7, %v5536_v31  ;;  %v5468_v25 = vadd.f32 %v5467_v23, %v5355_v12  ;;  %v5404_v23 = vpop.f32.mrf.mxu0  ;;  %v5387_v12 = vadd.f32 %v9044_v29, %v9039_v21 }
 0x4c0   :  { %v5469_v17 = vpop.f32.mrf.mxu1 }
 0x4c1   :  { %v5569_v42 = vpack.c.bf16 %v5539_v16, %v5537_v36  ;;  %v5470_v53 = vadd.f32 %v5469_v17, %v5357_v37  ;;  %v5540_v46 = vmax.f32 %v5468_v25, 0.0 }
 0x4c2   :  { %v5471_v59 = vpop.f32.mrf.mxu1 }
 0x4c3   :  { %v5472_v60 = vadd.f32 %v5471_v59, %v5359_v14  ;;  %5751 = vmatprep.mubr.bf16.mxu0 %v5569_v42  ;;  %v5541_v1 = vmax.f32 %v5470_v53, 0.0  ;;  %v5406_v14 = vpop.f32.mrf.mxu0  ;;  %v5385_v59 = vadd.f32 %v9036_v52, %v9042_v41 }
 0x4c4   :  { %v5473_v22 = vpop.f32.mrf.mxu1  ;;  %5752 = vmatmul.mubr.bf16.vlgmr.msra.gmra.mxu0 %v5568_v35 }
 0x4c5   :  { %v5474_v28 = vadd.f32 %v5473_v22, %v5361_v38  ;;  %v5542_v4 = vmax.f32 %v5472_v60, 0.0  ;;  %v5391_v60 = vadd.f32 %v9052_v55, %v9039_v21  ;;  %v5399_v55 = vadd.f32 %v5398_v5, %v9042_v41 }
 0x4c6   :  { %v5477_v9 = vpop.f32.mrf.mxu1 }
 0x4c7   :  { %v5543_v18 = vmax.f32 %v5474_v28, 0.0  ;;  %v5570_v32 = vpack.c.bf16 %v5542_v4, %v5540_v46  ;;  %v5478_v6 = vadd.f32 %v5477_v9, %v5365_v40  ;;  %v5408_v28 = vpop.f32.mrf.mxu0  ;;  %v5395_v40 = vadd.f32 %v9058_v3, %v9042_v41 }
 0x4c8   :  { %v5479_v15 = vpop.f32.mrf.mxu1  ;;  %v5407_v3 = vadd.f32 %v5406_v14, %v9039_v21 }
 0x4c9   :  { %v5571_v62 = vpack.c.bf16 %v5543_v18, %v5541_v1  ;;  %v5480_v33 = vadd.f32 %v5479_v15, %v5367_v61  ;;  %v5544_v63 = vmax.f32 %v5478_v6, 0.0  ;;  %v5410_v15 = vpop.f32.mrf.mxu0 }
 0x4ca   :  { %v5481_v44 = vpop.f32.mrf.mxu1 }
 0x4cb   :  { %v5482_v58 = vadd.f32 %v5481_v44, %v5369_v39  ;;  %5759 = vmatprep.mubr.bf16.mxu0 %v5571_v62  ;;  %v5545_v45 = vmax.f32 %v5480_v33, 0.0  ;;  %v5397_v39 = vadd.f32 %v9060_v48, %v9039_v21  ;;  %v5414_v6 = vpop.f32.mrf.mxu0 }
 0x4cc   :  { %v5483_v56 = vpop.f32.mrf.mxu1  ;;  %5760 = vmatmul.mubr.bf16.gmra.mxu0 %v5570_v32 }
 0x4cd   :  { %v5484_v51 = vadd.f32 %v5483_v56, %v5371_v57  ;;  %v5546_v43 = vmax.f32 %v5482_v58, 0.0  ;;  %v5401_v57 = vadd.f32 %v5400_v49, %v9039_v21 }
 0x4ce   :  { %v5487_v10 = vpop.f32.mrf.mxu1 }
 0x4cf   :  { %v5547_v27 = vmax.f32 %v5484_v51, 0.0  ;;  %v5572_v50 = vpack.c.bf16 %v5546_v43, %v5544_v63  ;;  %v5488_v36 = vadd.f32 %v5487_v10, %v5375_v0 }
 0x4d0   :  { %v5489_v13 = vpop.f32.mrf.mxu1 }
 0x4d1   :  { %v5573_v26 = vpack.c.bf16 %v5547_v27, %v5545_v45  ;;  %v5490_v8 = vadd.f32 %v5489_v13, %v5377_v2  ;;  %v5548_v42 = vmax.f32 %v5488_v36, 0.0  ;;  %v5416_v27 = vpop.f32.mrf.mxu0  ;;  %v5409_v2 = vadd.f32 %v5408_v28, %v9042_v41 }
 0x4d2   :  { %v5491_v34 = vpop.f32.mrf.mxu1 }
 0x4d3   :  { %v5492_v7 = vadd.f32 %v5491_v34, %v5379_v19  ;;  %5767 = vmatprep.mubr.bf16.mxu0 %v5573_v26  ;;  %v5549_v47 = vmax.f32 %v5490_v8, 0.0  ;;  %v5405_v19 = vadd.f32 %v5404_v23, %v9042_v41  ;;  %v5418_v8 = vpop.f32.mrf.mxu0  ;;  %v5417_v23 = vadd.f32 %v5416_v27, %v9039_v21 }
 0x4d4   :  { %v5493_v16 = vpop.f32.mrf.mxu1  ;;  %5768 = vmatmul.mubr.bf16.gmra.mxu0 %v5572_v50  ;;  %v5411_v50 = vadd.f32 %v5410_v15, %v9039_v21  ;;  %v7463_v15 = vld [vmem:[#allocation14 + $0x8] sm:$0xff]  }
 0x4d5   :  { %v5494_v11 = vadd.f32 %v5493_v16, %v5381_v30  ;;  %v5550_v31 = vmax.f32 %v5492_v7, 0.0 }
 0x4d6   :  { %v5497_v17 = vpop.f32.mrf.mxu1 }
 0x4d7   :  { %v5551_v37 = vmax.f32 %v5494_v11, 0.0  ;;  %v5574_v38 = vpack.c.bf16 %v5550_v31, %v5548_v42  ;;  %v5498_v4 = vadd.f32 %v5497_v17, %v5385_v59 }
 0x4d8   :  { %v5499_v54 = vpop.f32.mrf.mxu1 }
 0x4d9   :  { %v5575_v35 = vpack.c.bf16 %v5551_v37, %v5549_v47  ;;  %v5500_v25 = vadd.f32 %v5499_v54, %v5387_v12  ;;  %v5552_v61 = vmax.f32 %v5498_v4, 0.0  ;;  %v5420_v37 = vpop.f32.mrf.mxu0  ;;  %v5419_v54 = vadd.f32 %v5418_v8, %v9042_v41 }
 0x4da   :  { %v5501_v53 = vpop.f32.mrf.mxu1 }
 0x4db   :  { %v5502_v22 = vadd.f32 %v5501_v53, %v5389_v24  ;;  %5775 = vmatprep.mubr.bf16.mxu0 %v5575_v35  ;;  %v5553_v20 = vmax.f32 %v5500_v25, 0.0  ;;  %v5415_v24 = vadd.f32 %v5414_v6, %v9042_v41  ;;  %v7460_v41 = vld [vmem:[#allocation14 + $0x20] sm:$0xff]  }
 0x4dc   :  { %v5503_v9 = vpop.f32.mrf.mxu1  ;;  %5776 = vmatmul.mubr.bf16.gmra.mxu0 %v5574_v38  ;;  %v5421_v38 = vadd.f32 %v5420_v37, %v9039_v21  ;;  %6685 = vmatprep.subr.bf16.mxu1 %v7460_v41  ;;  %v7462_v21 = vld [vmem:[#allocation14 + $0x10] sm:$0xff]  }
 0x4dd   :  { %v5504_v29 = vadd.f32 %v5503_v9, %v5391_v60  ;;  %v5554_v1 = vmax.f32 %v5502_v22, 0.0  ;;  %6686 = vmatpush3.bf16.msra.mxu1 %v7460_v41 }
 0x4de   :  { %v5507_v18 = vpop.f32.mrf.mxu1 }
 0x4df   :  { %v5555_v46 = vmax.f32 %v5504_v29, 0.0  ;;  %v5576_v32 = vpack.c.bf16 %v5554_v1, %v5552_v61  ;;  %v5508_v56 = vadd.f32 %v5507_v18, %v5395_v40  ;;  %v7464_v61 = vld [vmem:[#allocation14] sm:$0xff]  }
 0x4e0   :  { %v5509_v52 = vpop.f32.mrf.mxu1 }
 0x4e1   :  { %v5577_v62 = vpack.c.bf16 %v5555_v46, %v5553_v20  ;;  %v5510_v33 = vadd.f32 %v5509_v52, %v5397_v39  ;;  %v5556_v63 = vmax.f32 %v5508_v56, 0.0  ;;  %v7461_v46 = vld [vmem:[#allocation14 + $0x18] sm:$0xff]  }
 0x4e2   :  { %v5511_v44 = vpop.f32.mrf.mxu1  ;;  %6687 = vmatprep.subr.bf16.mxu1 %v7461_v46 }
 0x4e3   :  { %v5512_v58 = vadd.f32 %v5511_v44, %v5399_v55  ;;  %5783 = vmatprep.mubr.bf16.mxu0 %v5577_v62  ;;  %v5557_v45 = vmax.f32 %v5510_v33, 0.0  ;;  %6688 = vmatpush3.bf16.msra.mxu1 %v7461_v46  ;;  %v9099_v62 = vld [vmem:[%s9136_s10] ss:$0 sm:$0xff] }
 0x4e4   :  { %v5513_v51 = vpop.f32.mrf.mxu1  ;;  %5784 = vmatmul.mubr.bf16.gmra.mxu0 %v5576_v32  ;;  %6689 = vmatprep.subr.bf16.mxu1 %v7462_v21 }
 0x4e5   :  { %v5514_v43 = vadd.f32 %v5513_v51, %v5401_v57  ;;  %v5558_v10 = vmax.f32 %v5512_v58, 0.0 }
 0x4e6   :  { %v5517_v48 = vpop.f32.mrf.mxu1 }
 0x4e7   :  { %v5559_v5 = vmax.f32 %v5514_v43, 0.0  ;;  %v5578_v26 = vpack.c.bf16 %v5558_v10, %v5556_v63  ;;  %v5518_v7 = vadd.f32 %v5517_v48, %v5405_v19  ;;  %6690 = vmatpush3.bf16.msra.mxu1 %v7462_v21 }
 0x4e8   :  { %v5519_v13 = vpop.f32.mrf.mxu1  ;;  %6691 = vmatprep.subr.bf16.mxu1 %v7463_v15 }
 0x4e9   :  { %v5579_v49 = vpack.c.bf16 %v5559_v5, %v5557_v45  ;;  %v5520_v34 = vadd.f32 %v5519_v13, %v5407_v3  ;;  %v5560_v14 = vmax.f32 %v5518_v7, 0.0 }
 0x4ea   :  { %v5521_v0 = vpop.f32.mrf.mxu1 }
 0x4eb   :  { %v5522_v30 = vadd.f32 %v5521_v0, %v5409_v2  ;;  %5791 = vmatprep.mubr.bf16.mxu0 %v5579_v49  ;;  %v5561_v17 = vmax.f32 %v5520_v34, 0.0  ;;  %6692 = vmatpush3.bf16.msra.mxu1 %v7463_v15 }
 0x4ec   :  { %v5523_v36 = vpop.f32.mrf.mxu1  ;;  %5792 = vmatmul.mubr.bf16.gmra.mxu0 %v5578_v26  ;;  %6693 = vmatprep.subr.bf16.mxu1 %v7464_v61 }
 0x4ed   :  { %v5524_v16 = vadd.f32 %v5523_v36, %v5411_v50  ;;  %v5562_v11 = vmax.f32 %v5522_v30, 0.0 }
 0x4ee   :  { %v5527_v31 = vpop.f32.mrf.mxu1 }
 0x4ef   :  { %v5563_v47 = vmax.f32 %v5524_v16, 0.0  ;;  %v5580_v35 = vpack.c.bf16 %v5562_v11, %v5560_v14  ;;  %v5528_v25 = vadd.f32 %v5527_v31, %v5415_v24  ;;  %6694 = vmatpush3.bf16.msra.mxu1 %v7464_v61 }
 0x4f0   :  { %v5529_v42 = vpop.f32.mrf.mxu1 }
 0x4f1   :  { %v5581_v12 = vpack.c.bf16 %v5563_v47, %v5561_v17  ;;  %v5530_v53 = vadd.f32 %v5529_v42, %v5417_v23  ;;  %v5564_v1 = vmax.f32 %v5528_v25, 0.0 }
 0x4f2   :  { %v5531_v59 = vpop.f32.mrf.mxu1 }
 0x4f3   :  { %v5532_v60 = vadd.f32 %v5531_v59, %v5419_v54  ;;  %5799 = vmatprep.mubr.bf16.mxu0 %v5581_v12  ;;  %v5565_v9 = vmax.f32 %v5530_v53, 0.0 }
 0x4f4   :  { %v5533_v22 = vpop.f32.mrf.mxu1  ;;  %5800 = vmatmul.mubr.bf16.gmra.mxu0 %v5580_v35 }
 0x4f5   :  { %v5534_v28 = vadd.f32 %v5533_v22, %v5421_v38  ;;  %v5566_v4 = vmax.f32 %v5532_v60, 0.0 }
 0x4f7   :  { %v5567_v29 = vmax.f32 %v5534_v28, 0.0  ;;  %v5582_v20 = vpack.c.bf16 %v5566_v4, %v5564_v1 }
 0x4f9   :  { %v5583_v18 = vpack.c.bf16 %v5567_v29, %v5565_v9 }
 0x4fb   :  { %5807 = vmatprep.mubr.bf16.mxu0 %v5583_v18 }
 0x4fc   :  { %5808 = vmatmul.mubr.bf16.gmra.mxu0 %v5582_v20 }
 0x584   :  { %v6583_v52 = vpop.f32.mrf.mxu0 }
 0x586   :  { %v6584_v39 = vpop.f32.mrf.mxu0 }
 0x587   :  { %v6585_v55 = vadd.f32 %v6584_v39, %v6583_v52 }
 0x588   :  { %v6586_v40 = vpop.f32.mrf.mxu0 }
 0x589   :  { %v5754_v44 = vadd.f32 %v6585_v55, %v9099_v62 }
 0x58a   :  { %v6587_v32 = vpop.f32.mrf.mxu0 }
 0x58b   :  { %v6588_v57 = vadd.f32 %v6587_v32, %v6586_v40  ;;  %v5816_v56 = vmax.f32 %v5754_v44, 0.0 }
 0x58c   :  { %v6589_v33 = vpop.f32.mrf.mxu0 }
 0x58d   :  { %v5757_v58 = vadd.f32 %v6588_v57, %v9099_v62 }
 0x58e   :  { %v6590_v6 = vpop.f32.mrf.mxu0 }
 0x58f   :  { %v5817_v51 = vmax.f32 %v5757_v58, 0.0  ;;  %v6591_v43 = vadd.f32 %v6590_v6, %v6589_v33 }
 0x590   :  { %v6592_v10 = vpop.f32.mrf.mxu0 }
 0x591   :  { %v5832_v48 = vpack.c.bf16 %v5817_v51, %v5816_v56  ;;  %v5762_v5 = vadd.f32 %v6591_v43, %v9099_v62 }
 0x592   :  { %v6593_v45 = vpop.f32.mrf.mxu0 }
 0x593   :  { %v6594_v27 = vadd.f32 %v6593_v45, %v6592_v10  ;;  %6695 = vmatprep.mubr.bf16.mxu1 %v5832_v48  ;;  %v5818_v2 = vmax.f32 %v5762_v5, 0.0 }
 0x594   :  { %v6595_v63 = vpop.f32.mrf.mxu0 }
 0x595   :  { %v5765_v13 = vadd.f32 %v6594_v27, %v9099_v62 }
 0x596   :  { %v6596_v3 = vpop.f32.mrf.mxu0 }
 0x597   :  { %v5819_v49 = vmax.f32 %v5765_v13, 0.0  ;;  %v6597_v19 = vadd.f32 %v6596_v3, %v6595_v63 }
 0x598   :  { %v6598_v26 = vpop.f32.mrf.mxu0 }
 0x599   :  { %v5833_v0 = vpack.c.bf16 %v5819_v49, %v5818_v2  ;;  %v5770_v34 = vadd.f32 %v6597_v19, %v9099_v62 }
 0x59a   :  { %v6599_v50 = vpop.f32.mrf.mxu0 }
 0x59b   :  { %v6600_v30 = vadd.f32 %v6599_v50, %v6598_v26  ;;  %6696 = vmatmul.mubr.bf16.vlgmr.msra.gmra.mxu1 %v5833_v0  ;;  %v5820_v16 = vmax.f32 %v5770_v34, 0.0  ;;  %v6542_v0 = vld [vmem:[%s9138_s12] ss:$0 sm:$0xff]  ;;  %s7675_s12 = smov [#allocation16]  }
 0x59c   :  { %v6601_v8 = vpop.f32.mrf.mxu0  ;;  %s6029_s23 = sshll.u32 %s7675_s12, 4  ;;  %s6030_s23 = int_to_ptr.vmem [resolvable:$true] %s6029_s23 }
 0x59d   :  { %v5773_v7 = vadd.f32 %v6600_v30, %v9099_v62  ;;  %s7626_s26 = scalar_lea.vmem %s6030_s23, 2048  ;;  %p7631_p13 = scmp.lt.s32.totalorder %s6030_s23, %s6030_s23 }
 0x59e   :  { %v6602_v36 = vpop.f32.mrf.mxu0  ;;  %p7627_p12 = scmp.ne.s32.totalorder %s6030_s23, %s7626_s26  ;;  %p7632_p0 = scmp.lt.s32.totalorder %s7626_s26, %s7626_s26 }
 0x59f   :  { %v5821_v11 = vmax.f32 %v5773_v7, 0.0  ;;  %v6603_v31 = vadd.f32 %v6602_v36, %v6601_v8 }
 0x5a0   :  { %v6604_v17 = vpop.f32.mrf.mxu0  ;;  %p7633_p1 = por %p7632_p0, %p7631_p13 }
 0x5a1   :  { %v5834_v47 = vpack.c.bf16 %v5821_v11, %v5820_v16  ;;  %v5778_v14 = vadd.f32 %v6603_v31, %v9099_v62 }
 0x5a2   :  { %v6605_v37 = vpop.f32.mrf.mxu0  ;;  %p7634_p2 = pnand %p7633_p1, %p7627_p12 }
 0x5a3   :  { %v6606_v42 = vadd.f32 %v6605_v37, %v6604_v17  ;;  %6699 = vmatprep.mubr.bf16.mxu1 %v5834_v47  ;;  %v5822_v24 = vmax.f32 %v5778_v14, 0.0 }
 0x5a4   :  { %v6607_v23 = vpop.f32.mrf.mxu0 }
 0x5a5   :  { %v5781_v54 = vadd.f32 %v6606_v42, %v9099_v62 }
 0x5a6   :  { %v6608_v12 = vpop.f32.mrf.mxu0 }
 0x5a7   :  { %v5823_v35 = vmax.f32 %v5781_v54, 0.0  ;;  %v6609_v59 = vadd.f32 %v6608_v12, %v6607_v23 }
 0x5a8   :  { %v6610_v38 = vpop.f32.mrf.mxu0 }
 0x5a9   :  { %v5835_v53 = vpack.c.bf16 %v5823_v35, %v5822_v24  ;;  %v5786_v25 = vadd.f32 %v6609_v59, %v9099_v62 }
 0x5aa   :  { %v6611_v60 = vpop.f32.mrf.mxu0 }
 0x5ab   :  { %v6612_v22 = vadd.f32 %v6611_v60, %v6610_v38  ;;  %6700 = vmatmul.mubr.bf16.gmra.mxu1 %v5835_v53  ;;  %v5824_v29 = vmax.f32 %v5786_v25, 0.0 }
 0x5ac   :  { %v6613_v28 = vpop.f32.mrf.mxu0 }
 0x5ad   :  { %v5789_v4 = vadd.f32 %v6612_v22, %v9099_v62 }
 0x5ae   :  { %v6614_v9 = vpop.f32.mrf.mxu0 }
 0x5af   :  { %v5825_v1 = vmax.f32 %v5789_v4, 0.0  ;;  %v6615_v18 = vadd.f32 %v6614_v9, %v6613_v28 }
 0x5b0   :  { %v6616_v20 = vpop.f32.mrf.mxu0 }
 0x5b1   :  { %v5836_v41 = vpack.c.bf16 %v5825_v1, %v5824_v29  ;;  %v5794_v21 = vadd.f32 %v6615_v18, %v9099_v62 }
 0x5b2   :  { %v6617_v46 = vpop.f32.mrf.mxu0 }
 0x5b3   :  { %v6618_v15 = vadd.f32 %v6617_v46, %v6616_v20  ;;  %6703 = vmatprep.mubr.bf16.mxu1 %v5836_v41  ;;  %v5826_v55 = vmax.f32 %v5794_v21, 0.0 }
 0x5b4   :  { %v6619_v61 = vpop.f32.mrf.mxu0 }
 0x5b5   :  { %v5797_v52 = vadd.f32 %v6618_v15, %v9099_v62 }
 0x5b6   :  { %v6620_v39 = vpop.f32.mrf.mxu0 }
 0x5b7   :  { %v5827_v40 = vmax.f32 %v5797_v52, 0.0  ;;  %v6621_v32 = vadd.f32 %v6620_v39, %v6619_v61 }
 0x5b8   :  { %v6622_v44 = vpop.f32.mrf.mxu0 }
 0x5b9   :  { %v5837_v57 = vpack.c.bf16 %v5827_v40, %v5826_v55  ;;  %v5802_v58 = vadd.f32 %v6621_v32, %v9099_v62 }
 0x5ba   :  { %v6623_v33 = vpop.f32.mrf.mxu0 }
 0x5bb   :  { %v6624_v6 = vadd.f32 %v6623_v33, %v6622_v44  ;;  %6704 = vmatmul.mubr.bf16.gmra.mxu1 %v5837_v57  ;;  %v5828_v10 = vmax.f32 %v5802_v58, 0.0 }
 0x5bc   :  { %v6625_v56 = vpop.f32.mrf.mxu0 }
 0x5bd   :  { %v5805_v51 = vadd.f32 %v6624_v6, %v9099_v62 }
 0x5be   :  { %v6626_v43 = vpop.f32.mrf.mxu0 }
 0x5bf   :  { %v5829_v48 = vmax.f32 %v5805_v51, 0.0  ;;  %v6627_v45 = vadd.f32 %v6626_v43, %v6625_v56 }
 0x5c0   :  { %v6628_v5 = vpop.f32.mrf.mxu0 }
 0x5c1   :  { %v5838_v27 = vpack.c.bf16 %v5829_v48, %v5828_v10  ;;  %v5810_v13 = vadd.f32 %v6627_v45, %v9099_v62 }
 0x5c2   :  { %v6629_v63 = vpop.f32.mrf.mxu0 }
 0x5c3   :  { %v6630_v3 = vadd.f32 %v6629_v63, %v6628_v5  ;;  %6707 = vmatprep.mubr.bf16.mxu1 %v5838_v27  ;;  %v5830_v49 = vmax.f32 %v5810_v13, 0.0 }
 0x5c5   :  { %v5813_v2 = vadd.f32 %v6630_v3, %v9099_v62 }
 0x5c7   :  { %v5831_v19 = vmax.f32 %v5813_v2, 0.0 }
 0x5c9   :  { %v5839_v26 = vpack.c.bf16 %v5831_v19, %v5830_v49 }
 0x5cb   :  { %6708 = vmatmul.mubr.bf16.gmra.mxu1 %v5839_v26 }
 0x65b   :  { %v6697_v50 = vpop.f32.mrf.mxu1 }
 0x65c   :  { %v5954_v34 = vadd.f32 %v6697_v50, %v6542_v0 }
 0x65d   :  { %v5945_v30 = vpop.f32.mrf.mxu1 }
 0x65e   :  { %6010 = vst [vmem:[#allocation16 + $0x10] sm:$0xff] %v5954_v34  ;;  %v5946_v8 = vadd.f32 %v6542_v0, %v5945_v30 }
 0x65f   :  { %v6698_v7 = vpop.f32.mrf.mxu1 }
 0x660   :  { %6008 = vst [vmem:[#allocation16] sm:$0xff] %v5946_v8  ;;  %v5957_v36 = vadd.f32 %v6698_v7, %v6542_v0 }
 0x661   :  { %v5948_v16 = vpop.f32.mrf.mxu1 }
 0x662   :  { %6011 = vst [vmem:[#allocation16 + $0x18] sm:$0xff] %v5957_v36  ;;  %v5949_v11 = vadd.f32 %v6542_v0, %v5948_v16 }
 0x664   :  { %6009 = vst [vmem:[#allocation16 + $0x8] sm:$0xff] %v5949_v11 }
 0x66b   :  { %v6701_v62 = vpop.f32.mrf.mxu1 }
 0x66c   :  { %v5970_v31 = vadd.f32 %v6701_v62, %v6542_v0 }
 0x66d   :  { %v5961_v17 = vpop.f32.mrf.mxu1 }
 0x66e   :  { %6014 = vst [vmem:[#allocation16 + $0x30] sm:$0xff] %v5970_v31  ;;  %v5962_v47 = vadd.f32 %v6542_v0, %v5961_v17 }
 0x66f   :  { %v6702_v37 = vpop.f32.mrf.mxu1 }
 0x670   :  { %6012 = vst [vmem:[#allocation16 + $0x20] sm:$0xff] %v5962_v47  ;;  %v5973_v14 = vadd.f32 %v6702_v37, %v6542_v0 }
 0x671   :  { %v5964_v42 = vpop.f32.mrf.mxu1 }
 0x672   :  { %6015 = vst [vmem:[#allocation16 + $0x38] sm:$0xff] %v5973_v14  ;;  %v5965_v23 = vadd.f32 %v6542_v0, %v5964_v42 }
 0x674   :  { %6013 = vst [vmem:[#allocation16 + $0x28] sm:$0xff] %v5965_v23 }
 0x67b   :  { %v6705_v54 = vpop.f32.mrf.mxu1 }
 0x67c   :  { %v5986_v12 = vadd.f32 %v6705_v54, %v6542_v0 }
 0x67d   :  { %v5977_v24 = vpop.f32.mrf.mxu1 }
 0x67e   :  { %6018 = vst [vmem:[#allocation16 + $0x50] sm:$0xff] %v5986_v12  ;;  %v5978_v35 = vadd.f32 %v6542_v0, %v5977_v24 }
 0x67f   :  { %v6706_v59 = vpop.f32.mrf.mxu1 }
 0x680   :  { %6016 = vst [vmem:[#allocation16 + $0x40] sm:$0xff] %v5978_v35  ;;  %v5989_v38 = vadd.f32 %v6706_v59, %v6542_v0 }
 0x681   :  { %v5980_v53 = vpop.f32.mrf.mxu1 }
 0x682   :  { %6019 = vst [vmem:[#allocation16 + $0x58] sm:$0xff] %v5989_v38  ;;  %v5981_v60 = vadd.f32 %v6542_v0, %v5980_v53 }
 0x684   :  { %6017 = vst [vmem:[#allocation16 + $0x48] sm:$0xff] %v5981_v60 }
 0x68b   :  { %v6709_v25 = vpop.f32.mrf.mxu1 }
 0x68c   :  { %v6002_v22 = vadd.f32 %v6709_v25, %v6542_v0 }
 0x68d   :  { %v5993_v28 = vpop.f32.mrf.mxu1 }
 0x68e   :  { %6022 = vst [vmem:[#allocation16 + $0x70] sm:$0xff] %v6002_v22  ;;  %v5994_v4 = vadd.f32 %v6542_v0, %v5993_v28 }
 0x68f   :  { %v6710_v9 = vpop.f32.mrf.mxu1 }
 0x690   :  { %6020 = vst [vmem:[#allocation16 + $0x60] sm:$0xff] %v5994_v4  ;;  %v6005_v29 = vadd.f32 %v6710_v9, %v6542_v0 }
 0x691   :  { %v5996_v1 = vpop.f32.mrf.mxu1 }
 0x692   :  { %6023 = vst [vmem:[#allocation16 + $0x78] sm:$0xff] %v6005_v29  ;;  %v5997_v18 = vadd.f32 %v6542_v0, %v5996_v1 }
 0x694   :  { %6021 = vst [vmem:[#allocation16 + $0x68] sm:$0xff] %v5997_v18 }
 0x695   :  { %7637 = shalt.err (!%p7634_p2)
}
 0x696   :  { %6035 = dma.vmem_to_hbm [thread:$0]  %s6030_s23, 2048, %s9139_s13, [#allocation4], %s7665_s24, %s7665_s24, %s7666_s25  }
 0x697   :  { %7656 = dma.done.wait [#allocation4], 2048  }
 0x698   :  { %7657 = vsyncadd [#allocation4], 4294965248 }
 0x699   :  { %6039 = vsyncpa [#allocation3], 1 }
 0x69a   :  { %6040 = vsyncpa [#allocation6], 1 }
 0x69b   :  { %6041 = vsyncpa [#allocation9], 1 }
 0x69c   :  { %6042 = vsyncpa [#allocation12], 1 }
 0x69d   :  { %6043 = vsyncpa [#allocation15], 1 }
 0x69e   :  { %6044 = vsyncpa [#allocation4], 1 }

</bundles_post_ra>
